<compile_context>
chip_gen: v6e
topology: v6e:2x2x1
jax: 0.10.0
libtpu: 0.0.40
codegen_flags: <defaults>
</compile_context>

<pallas_src>
import numpy as np
import jax
import jax.numpy as jnp
from jax.experimental import pallas as pl
from jax.experimental.pallas import tpu as pltpu

# ---- module config: MelSpectrogram(sampling_rate, win_length, n_mels) ----
SAMPLING_RATE = 16000
WIN_LENGTH = 256                     # K of the DFT matmul (nonzero window taps)
N_MELS = 80
N_FFT = 2048                         # fixed by the module
HOP = WIN_LENGTH // 4                # 64
N_FREQS = N_FFT // 2 + 1             # 1025 one-sided bins
F_PAD = 1024                         # bins kept in-kernel (Nyquist bin has zero mel weight)
N_CHUNKS = 4                         # frequency chunks inside the kernel
F_CHUNK = F_PAD // N_CHUNKS          # 256
MEL_PAD = 128                        # 80 mels padded to a full lane width
MAX_T_TILE = 512                     # M-tile cap (frames per grid step)
B_CONST = 1.0                        # self.B


def _hz_to_mel(f):
    return 2595.0 * np.log10(1.0 + f / 700.0)


def _mel_to_hz(m):
    return 700.0 * (10.0 ** (m / 2595.0) - 1.0)


def make_mel_fb(n_freqs, f_min, f_max, n_mels, sample_rate):
    # torchaudio.functional.melscale_fbanks, mel_scale="htk", norm=None
    all_freqs = np.linspace(0.0, sample_rate / 2.0, n_freqs)
    m_pts = np.linspace(_hz_to_mel(f_min), _hz_to_mel(f_max), n_mels + 2)
    f_pts = _mel_to_hz(m_pts)
    f_diff = f_pts[1:] - f_pts[:-1]
    slopes = f_pts[None, :] - all_freqs[:, None]
    down = -slopes[:, :-2] / f_diff[:-1]
    up = slopes[:, 2:] / f_diff[1:]
    return np.maximum(0.0, np.minimum(down, up))          # (n_freqs, n_mels)


def make_params():
    # periodic Hann window (torch.hann_window default), normalized=True norm.
    n = np.arange(WIN_LENGTH)
    win = 0.5 - 0.5 * np.cos(2.0 * np.pi * n / WIN_LENGTH)
    win_norm = np.sqrt(np.sum(win ** 2))
    left = (N_FFT - WIN_LENGTH) // 2                       # window center offset

    fb = make_mel_fb(N_FREQS, 0.0, SAMPLING_RATE / 2.0, N_MELS, SAMPLING_RATE)
    # Truncating the spectrum to 1024 bins is (numerically) exact only because
    # the mel weight at the Nyquist bin is zero for f_max = sr/2.
    assert float(np.max(fb[N_FREQS - 1, :])) < 1e-10, "Nyquist mel weight must be ~0"

    # DFT weights restricted to the 256 nonzero window taps and 1024 kept bins.
    t = (left + np.arange(WIN_LENGTH))[:, None].astype(np.float64)
    k = np.arange(F_PAD)[None, :].astype(np.float64)
    ang = 2.0 * np.pi * t * k / N_FFT
    cw = (win[:, None] * np.cos(ang)) / win_norm           # (256, 1024)
    sw = (win[:, None] * np.sin(ang)) / win_norm           # (256, 1024)

    # mel filterbank: 1024 freq rows, mel columns padded 80 -> 128 with zeros.
    fb_p = np.zeros((F_PAD, MEL_PAD))
    fb_p[:, :N_MELS] = fb[:F_PAD, :]

    # full 2048-tap window for the rfft reference path.
    w_pad = np.zeros(N_FFT)
    w_pad[left:left + WIN_LENGTH] = win

    return (jnp.asarray(cw, jnp.bfloat16),
            jnp.asarray(sw, jnp.bfloat16),
            jnp.asarray(fb_p, jnp.bfloat16),
            jnp.asarray(w_pad / win_norm, jnp.float32),
            jnp.asarray(fb, jnp.float32))


def mel_kernel(frames_ref, cos_ref, sin_ref, fb_ref, out_ref):
    """Grid = (M tiles of frames,); weights are VMEM-resident (constant maps).

    Frequency-chunked: per 256-bin chunk do re/im matmul -> sqrt -> mel
    accumulate, so MXU work of chunk i+1 overlaps VPU/EUP work of chunk i and
    no full-spectrum intermediate is ever materialized.
    """
    fr = frames_ref[...]                                   # (T_TILE, 256) bf16
    acc = jnp.zeros(out_ref.shape, jnp.float32)            # (T_TILE, 128) f32
    for c in range(N_CHUNKS):                              # static unroll
        lo = c * F_CHUNK
        hi = lo + F_CHUNK
        re = jnp.dot(fr, cos_ref[:, lo:hi], preferred_element_type=jnp.float32)
        im = jnp.dot(fr, sin_ref[:, lo:hi], preferred_element_type=jnp.float32)
        mag = jnp.sqrt(re * re + im * im)                  # f32 elementwise (power=1.0)
        acc = acc + jnp.dot(mag.astype(jnp.bfloat16), fb_ref[lo:hi, :],
                            preferred_element_type=jnp.float32)
    out_ref[...] = jnp.log1p(B_CONST * acc) * jnp.float32(1.0 / np.log(10.0))


def _pick_t_tile(m_rows):
    """Biggest tile <= MAX_T_TILE that still leaves >=4 grid steps when possible
    (so v7x's two TensorCores both get work); never below 128 rows."""
    t = MAX_T_TILE
    while t > 128 and pl.cdiv(m_rows, t) < 4:
        t //= 2
    return t


def mel_spectrogram(x, cos_w, sin_w, fb_pad):
    B, L = x.shape
    n_frames = 1 + L // HOP
    pad = N_FFT // 2
    left = (N_FFT - WIN_LENGTH) // 2

    # center=True reflect padding (glue).
    x_pad = jnp.pad(x, ((0, 0), (pad, pad)), mode="reflect")

    # Frame extraction without an XLA gather: HOP divides WIN_LENGTH, so
    # reshape into 64-sample chunks and concat 4 shifted strided views.
    # TODO(synk): for very long signals, assemble frames in-kernel via manual
    # DMA of the raw sample span to avoid the 4x (bf16: 2x vs f32 signal)
    # duplication of the materialized frames tensor.
    n_chunk_cols = n_frames + (WIN_LENGTH // HOP) - 1      # n_frames + 3
    seg = x_pad[:, left:left + n_chunk_cols * HOP]
    chunks = seg.reshape(B, n_chunk_cols, HOP)
    frames = jnp.concatenate(
        [chunks[:, s:s + n_frames] for s in range(WIN_LENGTH // HOP)], axis=-1)
    # frames: (B, n_frames, 256) == x_pad[:, i*HOP + left : ... + 256]

    # fold batch into the matmul M dimension, pad rows to the tile, cast bf16.
    M = B * n_frames
    t_tile = _pick_t_tile(M)
    M_pad = int(pl.cdiv(M, t_tile)) * t_tile
    frames = frames.reshape(M, WIN_LENGTH)
    frames = jnp.pad(frames, ((0, M_pad - M), (0, 0))).astype(jnp.bfloat16)

    cost = pl.CostEstimate(
        flops=2 * M_pad * WIN_LENGTH * (2 * F_PAD) + 2 * M_pad * F_PAD * MEL_PAD,
        transcendentals=M_pad * (F_PAD + MEL_PAD),
        bytes_accessed=(M_pad * WIN_LENGTH * 2            # frames (bf16)
                        + 2 * WIN_LENGTH * F_PAD * 2      # cos + sin (bf16)
                        + F_PAD * MEL_PAD * 2             # fb (bf16)
                        + M_pad * MEL_PAD * 4))           # out (f32)

    out = pl.pallas_call(
        mel_kernel,
        out_shape=jax.ShapeDtypeStruct((M_pad, MEL_PAD), jnp.float32),
        grid=(M_pad // t_tile,),
        in_specs=[
            pl.BlockSpec((t_tile, WIN_LENGTH), lambda m: (m, 0)),
            pl.BlockSpec((WIN_LENGTH, F_PAD), lambda m: (0, 0)),   # resident
            pl.BlockSpec((WIN_LENGTH, F_PAD), lambda m: (0, 0)),   # resident
            pl.BlockSpec((F_PAD, MEL_PAD), lambda m: (0, 0)),      # resident
        ],
        out_specs=pl.BlockSpec((t_tile, MEL_PAD), lambda m: (m, 0)),
        compiler_params=pltpu.CompilerParams(
            dimension_semantics=("parallel",),
            vmem_limit_bytes=32 * 1024 * 1024),
        cost_estimate=cost,
    )(frames, cos_w, sin_w, fb_pad)

    out = out[:M, :N_MELS].reshape(B, n_frames, N_MELS)    # drop row/lane padding
    return jnp.transpose(out, (0, 2, 1))                   # (B, N_MELS, T)


def reference(x, w_over_norm, fb):
    """Pure-JAX f32 reference using rfft (matches torchaudio semantics)."""
    B, L = x.shape
    n_frames = 1 + L // HOP
    pad = N_FFT // 2
    x_pad = jnp.pad(x, ((0, 0), (pad, pad)), mode="reflect")
    idx = (np.arange(n_frames) * HOP)[:, None] + np.arange(N_FFT)[None, :]
    frames = x_pad[:, idx] * w_over_norm[None, None, :]
    spec = jnp.abs(jnp.fft.rfft(frames, axis=-1))          # (B, T, N_FREQS)
    mel = spec @ fb                                        # (B, T, N_MELS)
    return jnp.transpose(jnp.log10(1.0 + B_CONST * mel), (0, 2, 1))


if __name__ == "__main__":
    key = jax.random.PRNGKey(0)
    B, L = 2, 4096
    x = jax.random.normal(key, (B, L), dtype=jnp.float32)

    cos_w, sin_w, fb_pad, w_over_norm, fb_full = make_params()

    out = jax.block_until_ready(mel_spectrogram(x, cos_w, sin_w, fb_pad))
    ref = jax.block_until_ready(reference(x, w_over_norm, fb_full))

    assert out.shape == (B, N_MELS, 1 + L // HOP), out.shape
    # bf16 MXU operands quantize frames/weights (~2^-9 relative); log10(1+mel)
    # compresses the error, but the check is against the full-f32 rfft path so
    # the tolerance is set slightly above pure-f32 levels.
    np.testing.assert_allclose(np.asarray(out), np.asarray(ref), rtol=1e-2, atol=1e-2)
    print("KERNEL_OK")
</pallas_src>

<mosaic_0001>
module attributes {stable_mosaic.version = 11 : i64} {
  func.func @mel_kernel(%arg0: i32, %arg1: memref<128x256xbf16, #tpu.memory_space<vmem>>, %arg2: memref<256x1024xbf16, #tpu.memory_space<vmem>>, %arg3: memref<256x1024xbf16, #tpu.memory_space<vmem>>, %arg4: memref<1024x128xbf16, #tpu.memory_space<vmem>>, %arg5: memref<128x128xf32, #tpu.memory_space<vmem>>) attributes {dimension_semantics = [#tpu.dimension_semantics<parallel>], iteration_bounds = array<i64: 2>, scalar_prefetch = 0 : i64, scratch_operands = 0 : i64, tpu.core_type = #tpu.core_type<tc>, window_params = [{transform_indices = @transform_0, window_bounds = array<i64: 128, 256>}, {pipeline_mode = #tpu.pipeline_mode<synchronous>, transform_indices = @transform_1, window_bounds = array<i64: 256, 1024>}, {pipeline_mode = #tpu.pipeline_mode<synchronous>, transform_indices = @transform_2, window_bounds = array<i64: 256, 1024>}, {pipeline_mode = #tpu.pipeline_mode<synchronous>, transform_indices = @transform_3, window_bounds = array<i64: 1024, 128>}, {transform_indices = @transform_4, window_bounds = array<i64: 128, 128>}]} {
    %c0 = arith.constant 0 : index
    %c0_0 = arith.constant 0 : index
    %0 = vector.load %arg1[%c0, %c0_0] : memref<128x256xbf16, #tpu.memory_space<vmem>>, vector<128x256xbf16>
    %cst = arith.constant 0.000000e+00 : f32
    %1 = vector.broadcast %cst : f32 to vector<128x128xf32>
    %c0_1 = arith.constant 0 : index
    %c0_2 = arith.constant 0 : index
    %2 = vector.load %arg2[%c0_1, %c0_2] : memref<256x1024xbf16, #tpu.memory_space<vmem>>, vector<256x256xbf16>
    %cst_3 = arith.constant dense<0.000000e+00> : vector<128x256xf32>
    %3 = tpu.matmul %0, %2, %cst_3 {dimension_numbers = #tpu.dot_dimension_numbers<[1], [0], [0], [1], [0, 0, 1, 1], [], []>} : vector<128x256xbf16>, vector<256x256xbf16>, vector<128x256xf32> -> vector<128x256xf32>
    %c0_4 = arith.constant 0 : index
    %c0_5 = arith.constant 0 : index
    %4 = vector.load %arg3[%c0_4, %c0_5] : memref<256x1024xbf16, #tpu.memory_space<vmem>>, vector<256x256xbf16>
    %cst_6 = arith.constant dense<0.000000e+00> : vector<128x256xf32>
    %5 = tpu.matmul %0, %4, %cst_6 {dimension_numbers = #tpu.dot_dimension_numbers<[1], [0], [0], [1], [0, 0, 1, 1], [], []>} : vector<128x256xbf16>, vector<256x256xbf16>, vector<128x256xf32> -> vector<128x256xf32>
    %6 = arith.mulf %3, %3 : vector<128x256xf32>
    %7 = arith.mulf %5, %5 : vector<128x256xf32>
    %8 = arith.addf %6, %7 : vector<128x256xf32>
    %9 = math.sqrt %8 : vector<128x256xf32>
    %10 = arith.truncf %9 : vector<128x256xf32> to vector<128x256xbf16>
    %c0_7 = arith.constant 0 : index
    %c0_8 = arith.constant 0 : index
    %11 = vector.load %arg4[%c0_7, %c0_8] : memref<1024x128xbf16, #tpu.memory_space<vmem>>, vector<256x128xbf16>
    %cst_9 = arith.constant dense<0.000000e+00> : vector<128x128xf32>
    %12 = tpu.matmul %10, %11, %cst_9 {dimension_numbers = #tpu.dot_dimension_numbers<[1], [0], [0], [1], [0, 0, 1, 1], [], []>} : vector<128x256xbf16>, vector<256x128xbf16>, vector<128x128xf32> -> vector<128x128xf32>
    %13 = arith.addf %1, %12 : vector<128x128xf32>
    %c0_10 = arith.constant 0 : index
    %c256 = arith.constant 256 : index
    %14 = vector.load %arg2[%c0_10, %c256] : memref<256x1024xbf16, #tpu.memory_space<vmem>>, vector<256x256xbf16>
    %cst_11 = arith.constant dense<0.000000e+00> : vector<128x256xf32>
    %15 = tpu.matmul %0, %14, %cst_11 {dimension_numbers = #tpu.dot_dimension_numbers<[1], [0], [0], [1], [0, 0, 1, 1], [], []>} : vector<128x256xbf16>, vector<256x256xbf16>, vector<128x256xf32> -> vector<128x256xf32>
    %c0_12 = arith.constant 0 : index
    %c256_13 = arith.constant 256 : index
    %16 = vector.load %arg3[%c0_12, %c256_13] : memref<256x1024xbf16, #tpu.memory_space<vmem>>, vector<256x256xbf16>
    %cst_14 = arith.constant dense<0.000000e+00> : vector<128x256xf32>
    %17 = tpu.matmul %0, %16, %cst_14 {dimension_numbers = #tpu.dot_dimension_numbers<[1], [0], [0], [1], [0, 0, 1, 1], [], []>} : vector<128x256xbf16>, vector<256x256xbf16>, vector<128x256xf32> -> vector<128x256xf32>
    %18 = arith.mulf %15, %15 : vector<128x256xf32>
    %19 = arith.mulf %17, %17 : vector<128x256xf32>
    %20 = arith.addf %18, %19 : vector<128x256xf32>
    %21 = math.sqrt %20 : vector<128x256xf32>
    %22 = arith.truncf %21 : vector<128x256xf32> to vector<128x256xbf16>
    %c256_15 = arith.constant 256 : index
    %c0_16 = arith.constant 0 : index
    %23 = vector.load %arg4[%c256_15, %c0_16] : memref<1024x128xbf16, #tpu.memory_space<vmem>>, vector<256x128xbf16>
    %cst_17 = arith.constant dense<0.000000e+00> : vector<128x128xf32>
    %24 = tpu.matmul %22, %23, %cst_17 {dimension_numbers = #tpu.dot_dimension_numbers<[1], [0], [0], [1], [0, 0, 1, 1], [], []>} : vector<128x256xbf16>, vector<256x128xbf16>, vector<128x128xf32> -> vector<128x128xf32>
    %25 = arith.addf %13, %24 : vector<128x128xf32>
    %c0_18 = arith.constant 0 : index
    %c512 = arith.constant 512 : index
    %26 = vector.load %arg2[%c0_18, %c512] : memref<256x1024xbf16, #tpu.memory_space<vmem>>, vector<256x256xbf16>
    %cst_19 = arith.constant dense<0.000000e+00> : vector<128x256xf32>
    %27 = tpu.matmul %0, %26, %cst_19 {dimension_numbers = #tpu.dot_dimension_numbers<[1], [0], [0], [1], [0, 0, 1, 1], [], []>} : vector<128x256xbf16>, vector<256x256xbf16>, vector<128x256xf32> -> vector<128x256xf32>
    %c0_20 = arith.constant 0 : index
    %c512_21 = arith.constant 512 : index
    %28 = vector.load %arg3[%c0_20, %c512_21] : memref<256x1024xbf16, #tpu.memory_space<vmem>>, vector<256x256xbf16>
    %cst_22 = arith.constant dense<0.000000e+00> : vector<128x256xf32>
    %29 = tpu.matmul %0, %28, %cst_22 {dimension_numbers = #tpu.dot_dimension_numbers<[1], [0], [0], [1], [0, 0, 1, 1], [], []>} : vector<128x256xbf16>, vector<256x256xbf16>, vector<128x256xf32> -> vector<128x256xf32>
    %30 = arith.mulf %27, %27 : vector<128x256xf32>
    %31 = arith.mulf %29, %29 : vector<128x256xf32>
    %32 = arith.addf %30, %31 : vector<128x256xf32>
    %33 = math.sqrt %32 : vector<128x256xf32>
    %34 = arith.truncf %33 : vector<128x256xf32> to vector<128x256xbf16>
    %c512_23 = arith.constant 512 : index
    %c0_24 = arith.constant 0 : index
    %35 = vector.load %arg4[%c512_23, %c0_24] : memref<1024x128xbf16, #tpu.memory_space<vmem>>, vector<256x128xbf16>
    %cst_25 = arith.constant dense<0.000000e+00> : vector<128x128xf32>
    %36 = tpu.matmul %34, %35, %cst_25 {dimension_numbers = #tpu.dot_dimension_numbers<[1], [0], [0], [1], [0, 0, 1, 1], [], []>} : vector<128x256xbf16>, vector<256x128xbf16>, vector<128x128xf32> -> vector<128x128xf32>
    %37 = arith.addf %25, %36 : vector<128x128xf32>
    %c0_26 = arith.constant 0 : index
    %c768 = arith.constant 768 : index
    %38 = vector.load %arg2[%c0_26, %c768] : memref<256x1024xbf16, #tpu.memory_space<vmem>>, vector<256x256xbf16>
    %cst_27 = arith.constant dense<0.000000e+00> : vector<128x256xf32>
    %39 = tpu.matmul %0, %38, %cst_27 {dimension_numbers = #tpu.dot_dimension_numbers<[1], [0], [0], [1], [0, 0, 1, 1], [], []>} : vector<128x256xbf16>, vector<256x256xbf16>, vector<128x256xf32> -> vector<128x256xf32>
    %c0_28 = arith.constant 0 : index
    %c768_29 = arith.constant 768 : index
    %40 = vector.load %arg3[%c0_28, %c768_29] : memref<256x1024xbf16, #tpu.memory_space<vmem>>, vector<256x256xbf16>
    %cst_30 = arith.constant dense<0.000000e+00> : vector<128x256xf32>
    %41 = tpu.matmul %0, %40, %cst_30 {dimension_numbers = #tpu.dot_dimension_numbers<[1], [0], [0], [1], [0, 0, 1, 1], [], []>} : vector<128x256xbf16>, vector<256x256xbf16>, vector<128x256xf32> -> vector<128x256xf32>
    %42 = arith.mulf %39, %39 : vector<128x256xf32>
    %43 = arith.mulf %41, %41 : vector<128x256xf32>
    %44 = arith.addf %42, %43 : vector<128x256xf32>
    %45 = math.sqrt %44 : vector<128x256xf32>
    %46 = arith.truncf %45 : vector<128x256xf32> to vector<128x256xbf16>
    %c768_31 = arith.constant 768 : index
    %c0_32 = arith.constant 0 : index
    %47 = vector.load %arg4[%c768_31, %c0_32] : memref<1024x128xbf16, #tpu.memory_space<vmem>>, vector<256x128xbf16>
    %cst_33 = arith.constant dense<0.000000e+00> : vector<128x128xf32>
    %48 = tpu.matmul %46, %47, %cst_33 {dimension_numbers = #tpu.dot_dimension_numbers<[1], [0], [0], [1], [0, 0, 1, 1], [], []>} : vector<128x256xbf16>, vector<256x128xbf16>, vector<128x128xf32> -> vector<128x128xf32>
    %49 = arith.addf %37, %48 : vector<128x128xf32>
    %cst_34 = arith.constant 1.000000e+00 : f32
    %50 = vector.broadcast %cst_34 : f32 to vector<128x128xf32>
    %51 = arith.mulf %50, %49 : vector<128x128xf32>
    %52 = math.log1p %51 : vector<128x128xf32>
    %cst_35 = arith.constant 0.434294492 : f32
    %53 = vector.broadcast %cst_35 : f32 to vector<128x128xf32>
    %54 = arith.mulf %52, %53 : vector<128x128xf32>
    %c0_36 = arith.constant 0 : index
    %c0_37 = arith.constant 0 : index
    %55 = vector.load %arg5[%c0_36, %c0_37] : memref<128x128xf32, #tpu.memory_space<vmem>>, vector<128x128xf32>
    tpu.vector_store %arg5[%c0_36, %c0_37], %54 {strides = array<i32>} : memref<128x128xf32, #tpu.memory_space<vmem>>, vector<128x128xf32>,
    return
  }
  func.func @transform_0(%arg0: i32) -> (i32, i32) {
    %c0_i32 = arith.constant 0 : i32
    %c0_i32_0 = arith.constant 0 : i32
    return %arg0, %c0_i32 : i32, i32
  }
  func.func @transform_1(%arg0: i32) -> (i32, i32) {
    %c0_i32 = arith.constant 0 : i32
    %c0_i32_0 = arith.constant 0 : i32
    %c0_i32_1 = arith.constant 0 : i32
    return %c0_i32, %c0_i32_0 : i32, i32
  }
  func.func @transform_2(%arg0: i32) -> (i32, i32) {
    %c0_i32 = arith.constant 0 : i32
    %c0_i32_0 = arith.constant 0 : i32
    %c0_i32_1 = arith.constant 0 : i32
    return %c0_i32, %c0_i32_0 : i32, i32
  }
  func.func @transform_3(%arg0: i32) -> (i32, i32) {
    %c0_i32 = arith.constant 0 : i32
    %c0_i32_0 = arith.constant 0 : i32
    %c0_i32_1 = arith.constant 0 : i32
    return %c0_i32, %c0_i32_0 : i32, i32
  }
  func.func @transform_4(%arg0: i32) -> (i32, i32) {
    %c0_i32 = arith.constant 0 : i32
    %c0_i32_0 = arith.constant 0 : i32
    return %arg0, %c0_i32 : i32, i32
  }
}

</mosaic_0001>

<bundles_post_ra>
// kernel: tpu_custom_call.1
= control target key start
LH: loop header
LB: loop body
LE: loop exit
PB: predicated region body
PF: predicated region fallthrough
CT: control target
= control target key end

     0   :  { %9 = vsyncpa [#allocation3], 0  ;;  %s9362_s0 = inlined_call_operand.hbm [shape: bf16[256,256], index: 0, kind: input, shape index: {}]   ;;  %s9363_s1 = inlined_call_operand.hbm [shape: bf16[256,1024], index: 1, kind: input, shape index: {}]   ;;  %s9364_s2 = inlined_call_operand.hbm [shape: bf16[256,1024], index: 2, kind: input, shape index: {}]   ;;  %s9365_s3 = inlined_call_operand.hbm [shape: bf16[1024,128], index: 3, kind: input, shape index: {}]   ;;  %s9366_s4 = inlined_call_operand.hbm [shape: f32[256,128], index: 4, kind: output, shape index: {}]  }
   0x1   :  { %11 = vsyncpa [#allocation3 + $0x1], 0 }
   0x2   :  { %12 = vsyncpa [#allocation6], 0 }
   0x3   :  { %13 = vsyncpa [#allocation9], 0 }
   0x4   :  { %14 = vsyncpa [#allocation4], 0 }
   0x5   :  { %16 = vsyncpa [#allocation4 + $0x1], 0  ;;  %s6697_s15 = smov 0   ;;  %s6699_s16 = smov 0  }
   0x6   :  { %s6701_s17 = smov 0   ;;  %s6703_s18 = smov 0  }
   0x7 LB: > { %s6718_s19 = sadd.s32 4294967295, %s6657_s18   ;;  %s5368_s20 = sadd.s32 4294967294, %s6657_s18   ;;  %s6657_s18 = sphi %s6703_s18, %s9474_s18   ;;  %s6653_s17 = sphi %s6701_s17, %s9473_s17   ;;  %s6649_s16 = sphi %s6699_s16, %s9472_s16   ;;  %s6645_s15 = sphi %s6697_s15, %s9471_s15  }
   0x8   : > { %p42_p0 = scmp.ne.s32.totalorder %s6649_s16, %s6645_s15  ;;  %p9367_p1 = scmp.eq.s32.totalorder %s6718_s19, 0 }
   0x9   : > { %p135_p3 = scmp.eq.s32.totalorder %s5368_s20, 1  ;;  %p5369_p5 = scmp.ge.s32.totalorder %s6657_s18, 1 }
   0xa   : > { %p6727_p4 = por %p9367_p1, %p42_p0  ;;  %p142_p7 = scmp.lt.s32.totalorder %s6657_s18, 3 }
   0xb   : > { %p6732_p6 = por %p135_p3, %p42_p0  ;;  %s6659_s24 = smov [#allocation5]  }
   0xc   : > { %s9371_s21 = scalar_select %p6727_p4, 1, 0 }
   0xd   : > { %s9372_s22 = scalar_select %p6732_p6, 1, 0 }
   0xe   : > { %p6737_p8 = pnand %p5369_p5, %p142_p7  ;;  %s154_s25 = sshll.u32 %s6659_s24, 4  ;;  %s155_s25 = int_to_ptr.vmem [resolvable:$true] %s154_s25 }
   0xf   : > { %s6660_s27 = smov [#allocation7]   ;;  %s6661_s29 = smov [#allocation8]  }
  0x10   : > { %s9373_s23 = scalar_select %p6737_p8, 1, 0 }
  0x11   : > { %p6000_p9 = pneg %p6737_p8  ;;  %s167_s28 = sshll.u32 %s6660_s27, 4  ;;  %s168_s28 = int_to_ptr.vmem [resolvable:$true] %s167_s28 }
  0x12   : > { %s180_s30 = sshll.u32 %s6661_s29, 4  ;;  %s6490_s5 = scalar_lea.vmem %s155_s25, 16384  ;;  %s181_s30 = int_to_ptr.vmem [resolvable:$true] %s180_s30 }
  0x13   : > { %p6746_p11 = pnand %p6000_p9, %p9367_p1  ;;  %p6491_p13 = scmp.ne.s32.totalorder %s155_s25, %s6490_s5 }
  0x14   : > { %p6498_p5 = scmp.lt.s32.totalorder %s155_s25, %s155_s25  ;;  %p6499_p7 = scmp.lt.s32.totalorder %s6490_s5, %s6490_s5 }
  0x15   : > { %p6481_p12 = pneg %p6746_p11 }
  0x16   : > { %p6500_p9 = por %p6499_p7, %p6498_p5 }
  0x17   : > { %p6493_p0 = pnand %p6491_p13, %p6481_p12 }
  0x19   : > { %p6494_p3 = pneg %p6493_p0 }
  0x1b   : > { %p6501_p10 = pnand %p6500_p9, %p6494_p3 }
  0x1d   : > { %6504 = shalt.err (!%p6501_p10)
}
  0x1e   : > { %s6662_s6 = smov 512   ;;  %s6663_s7 = smov 32  }
  0x1f   : > { %6003 = dma.hbm_to_vmem [thread:$0]  (!%p6746_p11), %s9363_s1, 16384, %s155_s25, [#allocation6], %s6662_s6, %s6662_s6, %s6663_s7  }
  0x20   : > { %s6516_s10 = scalar_lea.vmem %s168_s28, 16384  ;;  %p6524_p2 = scmp.lt.s32.totalorder %s168_s28, %s168_s28 }
  0x21   : > { %p6517_p1 = scmp.ne.s32.totalorder %s168_s28, %s6516_s10  ;;  %p6525_p6 = scmp.lt.s32.totalorder %s6516_s10, %s6516_s10 }
  0x23   : > { %p6519_p13 = pnand %p6517_p1, %p6481_p12  ;;  %p6526_p5 = por %p6525_p6, %p6524_p2 }
  0x25   : > { %p6520_p0 = pneg %p6519_p13 }
  0x27   : > { %p6527_p3 = pnand %p6526_p5, %p6520_p0 }
  0x29   : > { %6530 = shalt.err (!%p6527_p3)
}
  0x2a   : > { %6006 = dma.hbm_to_vmem [thread:$0]  (!%p6746_p11), %s9364_s2, 16384, %s168_s28, [#allocation6], %s6662_s6, %s6662_s6, %s6663_s7  }
  0x2b   : > { %s6542_s13 = scalar_lea.vmem %s181_s30, 8192  ;;  %p6550_p9 = scmp.lt.s32.totalorder %s181_s30, %s181_s30 }
  0x2c   : > { %p6543_p10 = scmp.ne.s32.totalorder %s181_s30, %s6542_s13  ;;  %p6551_p13 = scmp.lt.s32.totalorder %s6542_s13, %s6542_s13 }
  0x2e   : > { %p6545_p7 = pnand %p6543_p10, %p6481_p12  ;;  %p6552_p4 = por %p6551_p13, %p6550_p9 }
  0x30   : > { %p6546_p1 = pneg %p6545_p7 }
  0x32   : > { %p6553_p2 = pnand %p6552_p4, %p6546_p1 }
  0x34   : > { %6556 = shalt.err (!%p6553_p2)
}
  0x35   : > { %s6664_s14 = smov 64   ;;  %s6665_s20 = smov 4  }
  0x36   : > { %6009 = dma.hbm_to_vmem [thread:$0]  (!%p6746_p11), %s9365_s3, 8192, %s181_s30, [#allocation9], %s6664_s14, %s6664_s14, %s6665_s20  }
  0x37   : > { %s6777_s27 = sadd.s32 1, %s6657_s18   ;;  %s29_s29 = sadd.s32 1, %s6653_s17 }
  0x38   : > { %s26_s28 = ssub.s32 %s6657_s18, %s6777_s27  ;;  %p36_p6 = scmp.ne.s32.totalorder %s6653_s17, %s6649_s16 }
  0x39   : > { %p27_p4 = scmp.eq.s32.totalorder %s26_s28, 0  ;;  %p37_p12 = scmp.eq.s32.totalorder %s6657_s18, 0 }
  0x3a   : > { %p6021_p0 = scmp.lt.s32.totalorder %s6657_s18, 2  ;;  %p9375_p3 = scmp.eq.s32.totalorder %s6718_s19, 1 }
  0x3b   : > { %s6787_s5 = scalar_select %p27_p4, %s6653_s17, %s29_s29  }
  0x3c   : > { %p38_p5 = por %p37_p12, %p36_p6  ;;  %p6791_p10 = por %p9375_p3, %p36_p6 }
  0x3d   : > { %s194_s26 = sand.u32 1, %s6653_s17   ;;  %s5726_s7 = sshll.u32 %s6657_s18, 11 }
  0x3e   : > { %s9376_s6 = scalar_select %p6791_p10, 1, 0 }
  0x3f   : > { %s5374_s30 = sshll.u32 %s194_s26, 7  ;;  %s6800_s10 = scalar_lea.hbm %s9362_s0, %s5726_s7 }
  0x40   : > { %s198_s11 = scalar_lea.vmem [#allocation2], %s5374_s30  ;;  %p6802_p11 = pnand %p6021_p0, %p38_p5 }
  0x41   : > { %s206_s12 = sshll.u32 %s198_s11, 4  ;;  %s6808_s14 = scalar_lea.sflag [#allocation3], %s194_s26  ;;  %s6806_s12 = int_to_ptr.vmem [resolvable:$true] %s206_s12 }
  0x42   : > { %s6557_s20 = scalar_lea.hbm %s6800_s10, 2048  ;;  %p6559_p1 = pneg %p6802_p11 }
  0x43   : > { %p6558_p7 = scmp.ne.s32.totalorder %s6800_s10, %s6557_s20  ;;  %s6562_s28 = scalar_lea.hbm %s9362_s0, 4096 }
  0x44   : > { %p6563_p2 = scmp.lt.s32.totalorder %s6800_s10, %s9362_s0  ;;  %p6564_p4 = scmp.lt.s32.totalorder %s6562_s28, %s6557_s20 }
  0x45   : > { %p6560_p9 = pnand %p6559_p1, %p6558_p7 }
  0x46   : > { %p6565_p6 = por %p6564_p4, %p6563_p2 }
  0x47   : > { %p6561_p13 = pneg %p6560_p9 }
  0x49   : > { %p6566_p12 = pnand %p6565_p6, %p6561_p13 }
  0x4b   : > { %6569 = shalt.err (!%p6566_p12)
}
  0x4c   : > { %s6570_s26 = scalar_lea.vmem %s6806_s12, 2048  ;;  %s6666_s30 = smov [#allocation2]  }
  0x4d   : > { %p6571_p0 = scmp.ne.s32.totalorder %s6806_s12, %s6570_s26  ;;  %s6575_s8 = sshll.u32 %s6666_s30, 4  ;;  %s6576_s8 = int_to_ptr.vmem [resolvable:$false] %s6575_s8 }
  0x4e   : > { %s6577_s9 = scalar_lea.vmem %s6576_s8, 4096  ;;  %p6578_p7 = scmp.lt.s32.totalorder %s6806_s12, %s6576_s8 }
  0x4f   : > { %p6573_p5 = pnand %p6571_p0, %p6559_p1  ;;  %p6579_p9 = scmp.lt.s32.totalorder %s6577_s9, %s6570_s26 }
  0x51   : > { %p6574_p3 = pneg %p6573_p5  ;;  %p6580_p10 = por %p6579_p9, %p6578_p7 }
  0x53   : > { %p6581_p8 = pnand %p6580_p10, %p6574_p3 }
  0x55   : > { %6584 = shalt.err (!%p6581_p8)
}
  0x56   : > { %s6667_s11 = smov 128   ;;  %s6668_s20 = smov 8  }
  0x57   : > { %6013 = dma.hbm_to_vmem [thread:$0]  (!%p6802_p11), %s6800_s10, 2048, %s6806_s12, %s6808_s14, %s6667_s11, %s6667_s11, %s6668_s20  }
  0x58   : > { %p9378_p1 = scmp.ne.s32.totalorder %s9373_s23, 0 }
  0x5a   : > { %218 = sbr.rel (%p9378_p1) target bundleno = 1395 (0x573), region = 36 }
  0x5f   : > { %s6832_s24 = sand.u32 1, %s6649_s16   ;;  %p9379_p8 = scmp.ne.s32.totalorder %s9371_s21, 0 }
  0x60   : > { %s5379_s25 = sshll.u32 %s6832_s24, 7  ;;  %s221_s28 = scalar_lea.sflag [#allocation3], %s6832_s24 }
  0x61   : > { %s6838_s29 = scalar_lea.vmem [#allocation2], %s5379_s25 }
  0x62   : > { %6628 = dma.done.wait (%p9379_p8), %s221_s28, 2048  }
  0x63   : > { %6630 = vsyncadd (%p9379_p8), %s221_s28, 4294965248  ;;  %p9380_p10 = scmp.eq.s32.totalorder %s6718_s19, 0 }
  0x65   : > { %6632 = dma.done.wait (%p9380_p10), [#allocation6], 32768   ;;  %p9381_p11 = pmov %p9380_p10 }
  0x66   : > { %p9382_p13 = pmov %p9380_p10 }
  0x67   : > { %6634 = vsyncadd (%p9381_p11), [#allocation6], 4294934528 }
  0x68   : > { %6636 = dma.done.wait (%p9382_p13), [#allocation9], 8192   ;;  %p9383_p2 = pmov %p9380_p10 }
  0x69   : > { %v294_v0 = vld [vmem:[#allocation5 + $0x1c0] sm:$0xff]  ;;  %s9233_s21 = scalar_lea.vmem [#allocation10], %s5379_s25  ;;  %s5727_s23 = sshll.u32 %s6718_s19, 11 }
  0x6a   : > { %6638 = vsyncadd (%p9383_p2), [#allocation9], 4294959104  ;;  %v295_v1 = vld [vmem:[#allocation5 + $0x1e0] sm:$0xff]  ;;  %s5266_s10 = sshll.u32 %s9233_s21, 4  ;;  %s9316_s14 = scalar_lea.hbm %s9366_s4, %s5727_s23  ;;  %s9318_s10 = int_to_ptr.vmem [resolvable:$true] %s5266_s10 }
  0x6b   : > { %v679_v2 = vld [vmem:[#allocation7 + $0x1c0] sm:$0xff]  ;;  %v5415_v3 = vcombine.high %v294_v0, %v295_v1  ;;  %v5414_v5 = vcombine.low %v294_v0, %v295_v1  ;;  %s5253_s7 = scalar_lea.sflag [#allocation4], %s6832_s24  ;;  %s6585_s19 = scalar_lea.vmem %s9318_s10, 2048 }
  0x6c   : > { %v680_v4 = vld [vmem:[#allocation7 + $0x1e0] sm:$0xff]  ;;  %p6586_p4 = scmp.ne.s32.totalorder %s9318_s10, %s6585_s19  ;;  %p9468_p6 = scmp.ne.s32.totalorder %s9376_s6, 0 }
  0x6d   : > { %v292_v6 = vld [vmem:[#allocation5 + $0x180] sm:$0xff]  ;;  %v5447_v8 = vcombine.high %v679_v2, %v680_v4  ;;  %v5446_v9 = vcombine.low %v679_v2, %v680_v4  ;;  %552 = vmatprep.subr.bf16.mxu0 %v5415_v3  ;;  %s6669_s26 = smov [#allocation10]  }
  0x6e   : > { %v293_v7 = vld [vmem:[#allocation5 + $0x1a0] sm:$0xff]  ;;  %553 = vmatpush1.bf16.msra.mxu0 %v5414_v5  ;;  %p6587_p12 = pnand %p6586_p4, %p9468_p6  ;;  %s6589_s30 = sshll.u32 %s6669_s26, 4  ;;  %s6590_s30 = int_to_ptr.vmem [resolvable:$false] %s6589_s30 }
  0x6f   : > { %v5413_v10 = vcombine.high %v292_v6, %v293_v7  ;;  %v677_v11 = vld [vmem:[#allocation7 + $0x180] sm:$0xff]  ;;  %857 = vmatprep.subr.bf16.mxu1 %v5447_v8  ;;  %v5412_v18 = vcombine.low %v292_v6, %v293_v7  ;;  %s6591_s8 = scalar_lea.vmem %s6590_s30, 4096  ;;  %p6592_p5 = scmp.lt.s32.totalorder %s9318_s10, %s6590_s30 }
  0x70   : > { %v678_v12 = vld [vmem:[#allocation7 + $0x1a0] sm:$0xff]  ;;  %858 = vmatpush1.bf16.msra.mxu1 %v5446_v9  ;;  %p6588_p0 = pneg %p6587_p12  ;;  %p6593_p3 = scmp.lt.s32.totalorder %s6591_s8, %s6585_s19 }
  0x71   : > { %v290_v13 = vld [vmem:[#allocation5 + $0x140] sm:$0xff]  ;;  %v5445_v14 = vcombine.high %v677_v11, %v678_v12  ;;  %554 = vmatprep.subr.bf16.mxu0 %v5413_v10  ;;  %v5444_v19 = vcombine.low %v677_v11, %v678_v12 }
  0x72   : > { %v291_v15 = vld [vmem:[#allocation5 + $0x160] sm:$0xff]  ;;  %555 = vmatpush1.bf16.msra.mxu0 %v5412_v18  ;;  %p6594_p7 = por %p6593_p3, %p6592_p5 }
  0x73   : > { %v675_v16 = vld [vmem:[#allocation7 + $0x140] sm:$0xff]  ;;  %v5411_v20 = vcombine.high %v290_v13, %v291_v15  ;;  %859 = vmatprep.subr.bf16.mxu1 %v5445_v14  ;;  %v5410_v26 = vcombine.low %v290_v13, %v291_v15 }
  0x74   : > { %v676_v17 = vld [vmem:[#allocation7 + $0x160] sm:$0xff]  ;;  %860 = vmatpush1.bf16.msra.mxu1 %v5444_v19  ;;  %p6595_p9 = pnand %p6594_p7, %p6588_p0 }
  0x75   : > { %v5443_v21 = vcombine.high %v675_v16, %v676_v17  ;;  %v288_v22 = vld [vmem:[#allocation5 + $0x100] sm:$0xff]  ;;  %556 = vmatprep.subr.bf16.mxu0 %v5411_v20  ;;  %v5442_v27 = vcombine.low %v675_v16, %v676_v17 }
  0x76   : > { %v289_v23 = vld [vmem:[#allocation5 + $0x120] sm:$0xff]  ;;  %557 = vmatpush1.bf16.msra.mxu0 %v5410_v26 }
  0x77   : > { %v673_v24 = vld [vmem:[#allocation7 + $0x100] sm:$0xff]  ;;  %v5409_v28 = vcombine.high %v288_v22, %v289_v23  ;;  %861 = vmatprep.subr.bf16.mxu1 %v5443_v21  ;;  %v5408_v34 = vcombine.low %v288_v22, %v289_v23 }
  0x78   : > { %v674_v25 = vld [vmem:[#allocation7 + $0x120] sm:$0xff]  ;;  %862 = vmatpush1.bf16.msra.mxu1 %v5442_v27 }
  0x79   : > { %v5441_v29 = vcombine.high %v673_v24, %v674_v25  ;;  %v286_v30 = vld [vmem:[#allocation5 + $0xc0] sm:$0xff]  ;;  %558 = vmatprep.subr.bf16.mxu0 %v5409_v28  ;;  %v5440_v35 = vcombine.low %v673_v24, %v674_v25 }
  0x7a   : > { %v287_v31 = vld [vmem:[#allocation5 + $0xe0] sm:$0xff]  ;;  %559 = vmatpush1.bf16.msra.mxu0 %v5408_v34 }
  0x7b   : > { %v671_v32 = vld [vmem:[#allocation7 + $0xc0] sm:$0xff]  ;;  %v5407_v36 = vcombine.high %v286_v30, %v287_v31  ;;  %863 = vmatprep.subr.bf16.mxu1 %v5441_v29  ;;  %v5406_v42 = vcombine.low %v286_v30, %v287_v31 }
  0x7c   : > { %v672_v33 = vld [vmem:[#allocation7 + $0xe0] sm:$0xff]  ;;  %864 = vmatpush1.bf16.msra.mxu1 %v5440_v35 }
  0x7d   : > { %v5439_v37 = vcombine.high %v671_v32, %v672_v33  ;;  %v284_v38 = vld [vmem:[#allocation5 + $0x80] sm:$0xff]  ;;  %560 = vmatprep.subr.bf16.mxu0 %v5407_v36  ;;  %v5438_v43 = vcombine.low %v671_v32, %v672_v33 }
  0x7e   : > { %v285_v39 = vld [vmem:[#allocation5 + $0xa0] sm:$0xff]  ;;  %561 = vmatpush1.bf16.msra.mxu0 %v5406_v42 }
  0x7f   : > { %v669_v40 = vld [vmem:[#allocation7 + $0x80] sm:$0xff]  ;;  %v5405_v44 = vcombine.high %v284_v38, %v285_v39  ;;  %865 = vmatprep.subr.bf16.mxu1 %v5439_v37  ;;  %v5404_v50 = vcombine.low %v284_v38, %v285_v39 }
  0x80   : > { %v670_v41 = vld [vmem:[#allocation7 + $0xa0] sm:$0xff]  ;;  %866 = vmatpush1.bf16.msra.mxu1 %v5438_v43 }
  0x81   : > { %v5437_v45 = vcombine.high %v669_v40, %v670_v41  ;;  %v282_v46 = vld [vmem:[#allocation5 + $0x40] sm:$0xff]  ;;  %562 = vmatprep.subr.bf16.mxu0 %v5405_v44  ;;  %v5436_v51 = vcombine.low %v669_v40, %v670_v41 }
  0x82   : > { %v283_v47 = vld [vmem:[#allocation5 + $0x60] sm:$0xff]  ;;  %563 = vmatpush1.bf16.msra.mxu0 %v5404_v50 }
  0x83   : > { %v667_v48 = vld [vmem:[#allocation7 + $0x40] sm:$0xff]  ;;  %v5403_v52 = vcombine.high %v282_v46, %v283_v47  ;;  %867 = vmatprep.subr.bf16.mxu1 %v5437_v45  ;;  %v5402_v59 = vcombine.low %v282_v46, %v283_v47 }
  0x84   : > { %v668_v49 = vld [vmem:[#allocation7 + $0x60] sm:$0xff]  ;;  %868 = vmatpush1.bf16.msra.mxu1 %v5436_v51 }
  0x85   : > { %v5435_v53 = vcombine.high %v667_v48, %v668_v49  ;;  %v280_v54 = vld [vmem:[#allocation5] sm:$0xff]  ;;  %564 = vmatprep.subr.bf16.mxu0 %v5403_v52  ;;  %v5434_v60 = vcombine.low %v667_v48, %v668_v49 }
  0x86   : > { %v281_v55 = vld [vmem:[#allocation5 + $0x20] sm:$0xff]  ;;  %565 = vmatpush1.bf16.msra.mxu0 %v5402_v59 }
  0x87   : > { %v6853_v56 = vld [vmem:[%s6838_s29 + $0x4] ss:$8 sps:$4 sm:$0xff]   ;;  %v5401_v61 = vcombine.high %v280_v54, %v281_v55  ;;  %869 = vmatprep.subr.bf16.mxu1 %v5435_v53  ;;  %v5400_v3 = vcombine.low %v280_v54, %v281_v55 }
  0x88   : > { %v665_v57 = vld [vmem:[#allocation7] sm:$0xff]  ;;  %584 = vmatprep.mubr.bf16.mxu0 %v6853_v56  ;;  %889 = vmatprep.mubr.bf16.mxu1 %v6853_v56 }
  0x89   : > { %v666_v58 = vld [vmem:[#allocation7 + $0x20] sm:$0xff]  ;;  %870 = vmatpush1.bf16.msra.mxu1 %v5434_v60  ;;  %566 = vmatprep.subr.bf16.mxu0 %v5401_v61  ;;  %v1352_v61 = vld [vmem:[#allocation5 + $0x1c8] sm:$0xff] }
  0x8a   : > { %v5433_v62 = vcombine.high %v665_v57, %v666_v58  ;;  %v310_v63 = vld [vmem:[#allocation5 + $0x3c0] sm:$0xff]  ;;  %v5432_v4 = vcombine.low %v665_v57, %v666_v58  ;;  %567 = vmatpush1.bf16.msra.mxu0 %v5400_v3 }
  0x8b   : > { %v311_v0 = vld [vmem:[#allocation5 + $0x3e0] sm:$0xff] }
  0x8c   : > { %v695_v1 = vld [vmem:[#allocation7 + $0x3c0] sm:$0xff]  ;;  %v5431_v5 = vcombine.high %v310_v63, %v311_v0  ;;  %871 = vmatprep.subr.bf16.mxu1 %v5433_v62  ;;  %v5430_v11 = vcombine.low %v310_v63, %v311_v0  ;;  %v1353_v62 = vld [vmem:[#allocation5 + $0x1e8] sm:$0xff] }
  0x8d   : > { %v696_v2 = vld [vmem:[#allocation7 + $0x3e0] sm:$0xff]  ;;  %872 = vmatpush1.bf16.msra.mxu1 %v5432_v4 }
  0x8e   : > { %v5463_v6 = vcombine.high %v695_v1, %v696_v2  ;;  %v308_v7 = vld [vmem:[#allocation5 + $0x380] sm:$0xff]  ;;  %568 = vmatprep.subr.bf16.mxu0 %v5431_v5  ;;  %v5462_v12 = vcombine.low %v695_v1, %v696_v2  ;;  %v1657_v1 = vld [vmem:[#allocation7 + $0x1c8] sm:$0xff] }
  0x8f   : > { %v309_v8 = vld [vmem:[#allocation5 + $0x3a0] sm:$0xff]  ;;  %569 = vmatpush2.bf16.msra.mxu0 %v5430_v11  ;;  %v1658_v2 = vld [vmem:[#allocation7 + $0x1e8] sm:$0xff] }
  0x90   : > { %v693_v9 = vld [vmem:[#allocation7 + $0x380] sm:$0xff]  ;;  %v5429_v13 = vcombine.high %v308_v7, %v309_v8  ;;  %873 = vmatprep.subr.bf16.mxu1 %v5463_v6  ;;  %v5428_v19 = vcombine.low %v308_v7, %v309_v8  ;;  %v1350_v5 = vld [vmem:[#allocation5 + $0x188] sm:$0xff] }
  0x91   : > { %v694_v10 = vld [vmem:[#allocation7 + $0x3a0] sm:$0xff]  ;;  %874 = vmatpush2.bf16.msra.mxu1 %v5462_v12  ;;  %v1351_v6 = vld [vmem:[#allocation5 + $0x1a8] sm:$0xff]  ;;  %v5511_v12 = vcombine.high %v1657_v1, %v1658_v2 }
  0x92   : > { %v5461_v14 = vcombine.high %v693_v9, %v694_v10  ;;  %v306_v15 = vld [vmem:[#allocation5 + $0x340] sm:$0xff]  ;;  %570 = vmatprep.subr.bf16.mxu0 %v5429_v13  ;;  %v5460_v20 = vcombine.low %v693_v9, %v694_v10  ;;  %v5479_v9 = vcombine.high %v1352_v61, %v1353_v62  ;;  %v1655_v10 = vld [vmem:[#allocation7 + $0x188] sm:$0xff]  ;;  %v5478_v13 = vcombine.low %v1352_v61, %v1353_v62 }
  0x93   : > { %v307_v16 = vld [vmem:[#allocation5 + $0x360] sm:$0xff]  ;;  %571 = vmatpush2.bf16.msra.mxu0 %v5428_v19  ;;  %v1656_v11 = vld [vmem:[#allocation7 + $0x1a8] sm:$0xff] }
  0x94   : > { %v691_v17 = vld [vmem:[#allocation7 + $0x340] sm:$0xff]  ;;  %v5427_v21 = vcombine.high %v306_v15, %v307_v16  ;;  %875 = vmatprep.subr.bf16.mxu1 %v5461_v14  ;;  %v5426_v27 = vcombine.low %v306_v15, %v307_v16  ;;  %v6861_v14 = vld [vmem:[%s6838_s29 + $0x14] ss:$8 sps:$4 sm:$0xff]   ;;  %v1348_v15 = vld [vmem:[#allocation5 + $0x148] sm:$0xff] }
  0x95   : > { %v692_v18 = vld [vmem:[#allocation7 + $0x360] sm:$0xff]  ;;  %876 = vmatpush2.bf16.msra.mxu1 %v5460_v20  ;;  %v1349_v16 = vld [vmem:[#allocation5 + $0x168] sm:$0xff] }
  0x96   : > { %v5459_v22 = vcombine.high %v691_v17, %v692_v18  ;;  %v304_v23 = vld [vmem:[#allocation5 + $0x300] sm:$0xff]  ;;  %572 = vmatprep.subr.bf16.mxu0 %v5427_v21  ;;  %v5458_v28 = vcombine.low %v691_v17, %v692_v18  ;;  %v5510_v17 = vcombine.low %v1657_v1, %v1658_v2  ;;  %v5477_v18 = vcombine.high %v1350_v5, %v1351_v6  ;;  %v1653_v19 = vld [vmem:[#allocation7 + $0x148] sm:$0xff] }
  0x97   : > { %v305_v24 = vld [vmem:[#allocation5 + $0x320] sm:$0xff]  ;;  %573 = vmatpush2.bf16.msra.mxu0 %v5426_v27  ;;  %v1654_v20 = vld [vmem:[#allocation7 + $0x168] sm:$0xff]  ;;  %v5509_v21 = vcombine.high %v1655_v10, %v1656_v11  ;;  %v5475_v27 = vcombine.high %v1348_v15, %v1349_v16 }
  0x98   : > { %v689_v25 = vld [vmem:[#allocation7 + $0x300] sm:$0xff]  ;;  %v5425_v29 = vcombine.high %v304_v23, %v305_v24  ;;  %877 = vmatprep.subr.bf16.mxu1 %v5459_v22  ;;  %v5424_v35 = vcombine.low %v304_v23, %v305_v24  ;;  %v5476_v22 = vcombine.low %v1350_v5, %v1351_v6  ;;  %v1346_v23 = vld [vmem:[#allocation5 + $0x108] sm:$0xff] }
  0x99   : > { %v690_v26 = vld [vmem:[#allocation7 + $0x320] sm:$0xff]  ;;  %878 = vmatpush2.bf16.msra.mxu1 %v5458_v28  ;;  %v1347_v24 = vld [vmem:[#allocation5 + $0x128] sm:$0xff] }
  0x9a   : > { %v5457_v30 = vcombine.high %v689_v25, %v690_v26  ;;  %v302_v31 = vld [vmem:[#allocation5 + $0x2c0] sm:$0xff]  ;;  %574 = vmatprep.subr.bf16.mxu0 %v5425_v29  ;;  %v5456_v36 = vcombine.low %v689_v25, %v690_v26  ;;  %v5508_v25 = vcombine.low %v1655_v10, %v1656_v11  ;;  %v6866_v26 = vld [vmem:[%s6838_s29 + $0x10] ss:$8 sps:$4 sm:$0xff]   ;;  %v1651_v28 = vld [vmem:[#allocation7 + $0x108] sm:$0xff] }
  0x9b   : > { %v303_v32 = vld [vmem:[#allocation5 + $0x2e0] sm:$0xff]  ;;  %575 = vmatpush2.bf16.msra.mxu0 %v5424_v35  ;;  %v1652_v29 = vld [vmem:[#allocation7 + $0x128] sm:$0xff]  ;;  %v5506_v35 = vcombine.low %v1653_v19, %v1654_v20 }
  0x9c   : > { %v687_v33 = vld [vmem:[#allocation7 + $0x2c0] sm:$0xff]  ;;  %v5423_v37 = vcombine.high %v302_v31, %v303_v32  ;;  %879 = vmatprep.subr.bf16.mxu1 %v5457_v30  ;;  %v5422_v43 = vcombine.low %v302_v31, %v303_v32  ;;  %v5507_v30 = vcombine.high %v1653_v19, %v1654_v20  ;;  %v5474_v31 = vcombine.low %v1348_v15, %v1349_v16  ;;  %v1339_v61 = vld [vmem:[#allocation5 + $0x28] sm:$0xff] }
  0x9d   : > { %v688_v34 = vld [vmem:[#allocation7 + $0x2e0] sm:$0xff]  ;;  %880 = vmatpush2.bf16.msra.mxu1 %v5456_v36  ;;  %v5473_v36 = vcombine.high %v1346_v23, %v1347_v24  ;;  %v1643_v1 = vld [vmem:[#allocation7 + $0x8] sm:$0xff] }
  0x9e   : > { %v5455_v38 = vcombine.high %v687_v33, %v688_v34  ;;  %v300_v39 = vld [vmem:[#allocation5 + $0x280] sm:$0xff]  ;;  %576 = vmatprep.subr.bf16.mxu0 %v5423_v37  ;;  %v5454_v44 = vcombine.low %v687_v33, %v688_v34  ;;  %v1344_v33 = vld [vmem:[#allocation5 + $0xc8] sm:$0xff] }
  0x9f   : > { %v301_v40 = vld [vmem:[#allocation5 + $0x2a0] sm:$0xff]  ;;  %577 = vmatpush2.bf16.msra.mxu0 %v5422_v43  ;;  %v1345_v34 = vld [vmem:[#allocation5 + $0xe8] sm:$0xff]  ;;  %v5504_v43 = vcombine.low %v1651_v28, %v1652_v29 }
  0xa0   : > { %v685_v41 = vld [vmem:[#allocation7 + $0x280] sm:$0xff]  ;;  %v5421_v45 = vcombine.high %v300_v39, %v301_v40  ;;  %881 = vmatprep.subr.bf16.mxu1 %v5455_v38  ;;  %v5420_v51 = vcombine.low %v300_v39, %v301_v40  ;;  %v1649_v37 = vld [vmem:[#allocation7 + $0xc8] sm:$0xff]  ;;  %v5505_v39 = vcombine.high %v1651_v28, %v1652_v29  ;;  %v5472_v40 = vcombine.low %v1346_v23, %v1347_v24  ;;  %v6901_v29 = vld [vmem:[%s6838_s29 + $0x54] ss:$8 sps:$4 sm:$0xff]  }
  0xa1   : > { %v686_v42 = vld [vmem:[#allocation7 + $0x2a0] sm:$0xff]  ;;  %882 = vmatpush2.bf16.msra.mxu1 %v5454_v44  ;;  %v1650_v38 = vld [vmem:[#allocation7 + $0xe8] sm:$0xff] }
  0xa2   : > { %v5453_v46 = vcombine.high %v685_v41, %v686_v42  ;;  %v298_v47 = vld [vmem:[#allocation5 + $0x240] sm:$0xff]  ;;  %578 = vmatprep.subr.bf16.mxu0 %v5421_v45  ;;  %v5452_v54 = vcombine.low %v685_v41, %v686_v42  ;;  %v1342_v41 = vld [vmem:[#allocation5 + $0x88] sm:$0xff]  ;;  %v5471_v45 = vcombine.high %v1344_v33, %v1345_v34 }
  0xa3   : > { %v299_v48 = vld [vmem:[#allocation5 + $0x260] sm:$0xff]  ;;  %579 = vmatpush2.bf16.msra.mxu0 %v5420_v51  ;;  %v1343_v42 = vld [vmem:[#allocation5 + $0xa8] sm:$0xff] }
  0xa4   : > { %v683_v49 = vld [vmem:[#allocation7 + $0x240] sm:$0xff]  ;;  %v5419_v55 = vcombine.high %v298_v47, %v299_v48  ;;  %883 = vmatprep.subr.bf16.mxu1 %v5453_v46  ;;  %v5418_v60 = vcombine.low %v298_v47, %v299_v48  ;;  %v1647_v46 = vld [vmem:[#allocation7 + $0x88] sm:$0xff]  ;;  %v5503_v48 = vcombine.high %v1649_v37, %v1650_v38 }
  0xa5   : > { %v684_v50 = vld [vmem:[#allocation7 + $0x260] sm:$0xff]  ;;  %884 = vmatpush2.bf16.msra.mxu1 %v5452_v54  ;;  %v1648_v47 = vld [vmem:[#allocation7 + $0xa8] sm:$0xff]  ;;  %v5469_v54 = vcombine.high %v1342_v41, %v1343_v42 }
  0xa6   : > { %v296_v52 = vld [vmem:[#allocation5 + $0x200] sm:$0xff]  ;;  %v5451_v59 = vcombine.high %v683_v49, %v684_v50  ;;  %580 = vmatprep.subr.bf16.mxu0 %v5419_v55  ;;  %v5450_v63 = vcombine.low %v683_v49, %v684_v50  ;;  %v5470_v49 = vcombine.low %v1344_v33, %v1345_v34  ;;  %v6881_v50 = vld [vmem:[%s6838_s29 + $0x34] ss:$8 sps:$4 sm:$0xff]   ;;  %v1340_v51 = vld [vmem:[#allocation5 + $0x48] sm:$0xff]  ;;  %v5500_v62 = vcombine.low %v1647_v46, %v1648_v47 }
  0xa7   : > { %v297_v53 = vld [vmem:[#allocation5 + $0x220] sm:$0xff]  ;;  %581 = vmatpush2.bf16.msra.mxu0 %v5418_v60  ;;  %v1645_v55 = vld [vmem:[#allocation7 + $0x48] sm:$0xff] }
  0xa8   : > { %v681_v57 = vld [vmem:[#allocation7 + $0x200] sm:$0xff]  ;;  %v5417_v0 = vcombine.high %v296_v52, %v297_v53  ;;  %885 = vmatprep.subr.bf16.mxu1 %v5451_v59  ;;  %v5416_v4 = vcombine.low %v296_v52, %v297_v53  ;;  %v1341_v52 = vld [vmem:[#allocation5 + $0x68] sm:$0xff]  ;;  %v5502_v53 = vcombine.low %v1649_v37, %v1650_v38  ;;  %v5468_v59 = vcombine.low %v1342_v41, %v1343_v42  ;;  %v6908_v41 = vld [vmem:[%s6838_s29 + $0x50] ss:$8 sps:$4 sm:$0xff]  }
  0xa9   : > { %v682_v58 = vld [vmem:[#allocation7 + $0x220] sm:$0xff]  ;;  %886 = vmatpush2.bf16.msra.mxu1 %v5450_v63  ;;  %v1338_v60 = vld [vmem:[#allocation5 + $0x8] sm:$0xff]  ;;  %v6886_v63 = vld [vmem:[%s6838_s29 + $0x30] ss:$8 sps:$4 sm:$0xff]  }
  0xaa   : > { %v5449_v3 = vcombine.high %v681_v57, %v682_v58  ;;  %582 = vmatprep.subr.bf16.mxu0 %v5417_v0  ;;  %v5448_v7 = vcombine.low %v681_v57, %v682_v58  ;;  %v6858_v8 = vld [vmem:[%s6838_s29] ss:$8 sps:$4 sm:$0xff]   ;;  %v6871_v32 = vld [vmem:[%s6838_s29 + $0x24] ss:$8 sps:$4 sm:$0xff]   ;;  %v5501_v58 = vcombine.high %v1647_v46, %v1648_v47  ;;  %v5467_v0 = vcombine.high %v1340_v51, %v1341_v52 }
  0xab   : > { %583 = vmatpush2.bf16.msra.mxu0 %v5416_v4  ;;  %v6876_v44 = vld [vmem:[%s6838_s29 + $0x20] ss:$8 sps:$4 sm:$0xff]   ;;  %v5466_v4 = vcombine.low %v1340_v51, %v1341_v52  ;;  %v6891_v5 = vld [vmem:[%s6838_s29 + $0x44] ss:$8 sps:$4 sm:$0xff]   ;;  %v5465_v10 = vcombine.high %v1338_v60, %v1339_v61  ;;  %v5464_v15 = vcombine.low %v1338_v60, %v1339_v61 }
  0xac   : > { %887 = vmatprep.subr.bf16.mxu1 %v5449_v3  ;;  %1530 = vmatprep.subr.bf16.mxu0 %v5479_v9  ;;  %v1646_v57 = vld [vmem:[#allocation7 + $0x68] sm:$0xff] }
  0xad   : > { %888 = vmatpush2.bf16.msra.mxu1 %v5448_v7  ;;  %v1644_v2 = vld [vmem:[#allocation7 + $0x28] sm:$0xff]  ;;  %v5499_v3 = vcombine.high %v1645_v55, %v1646_v57  ;;  %v5498_v9 = vcombine.low %v1645_v55, %v1646_v57 }
  0xae   : > { %1835 = vmatprep.subr.bf16.mxu1 %v5511_v12  ;;  %585 = vmatmul.mubr.bf16.vlgmr.msra.gmra.mxu0 %v6858_v8  ;;  %v1368_v6 = vld [vmem:[#allocation5 + $0x3c8] sm:$0xff] }
  0xaf   : > { %1531 = vmatpush1.bf16.msra.mxu0 %v5478_v13  ;;  %594 = vmatprep.mubr.bf16.mxu0 %v6861_v14  ;;  %v1369_v7 = vld [vmem:[#allocation5 + $0x3e8] sm:$0xff]  ;;  %v5497_v13 = vcombine.high %v1643_v1, %v1644_v2 }
  0xb0   : > { %890 = vmatmul.mubr.bf16.vlgmr.msra.gmra.mxu1 %v6858_v8  ;;  %1532 = vmatprep.subr.bf16.mxu0 %v5477_v18  ;;  %v1673_v11 = vld [vmem:[#allocation7 + $0x3c8] sm:$0xff]  ;;  %v5496_v18 = vcombine.low %v1643_v1, %v1644_v2  ;;  %v5495_v20 = vcombine.high %v1368_v6, %v1369_v7  ;;  %v5494_v24 = vcombine.low %v1368_v6, %v1369_v7  ;;  %v6921_v7 = vld [vmem:[%s6838_s29 + $0x74] ss:$8 sps:$4 sm:$0xff]  }
  0xb1   : > { %1836 = vmatpush1.bf16.msra.mxu1 %v5510_v17  ;;  %899 = vmatprep.mubr.bf16.mxu1 %v6861_v14  ;;  %v1674_v12 = vld [vmem:[#allocation7 + $0x3e8] sm:$0xff] }
  0xb2   : > { %1837 = vmatprep.subr.bf16.mxu1 %v5509_v21  ;;  %v1366_v16 = vld [vmem:[#allocation5 + $0x388] sm:$0xff]  ;;  %v5527_v23 = vcombine.high %v1673_v11, %v1674_v12 }
  0xb3   : > { %1533 = vmatpush1.bf16.msra.mxu0 %v5476_v22  ;;  %v1367_v17 = vld [vmem:[#allocation5 + $0x3a8] sm:$0xff] }
  0xb4   : > { %1534 = vmatprep.subr.bf16.mxu0 %v5475_v27  ;;  %v6896_v19 = vld [vmem:[%s6838_s29 + $0x40] ss:$8 sps:$4 sm:$0xff]   ;;  %v5493_v27 = vcombine.high %v1366_v16, %v1367_v17 }
  0xb5   : > { %1838 = vmatpush1.bf16.msra.mxu1 %v5508_v25  ;;  %v1671_v21 = vld [vmem:[#allocation7 + $0x388] sm:$0xff]  ;;  %v5526_v25 = vcombine.low %v1673_v11, %v1674_v12 }
  0xb6   : > { %1839 = vmatprep.subr.bf16.mxu1 %v5507_v30  ;;  %595 = vmatmul.mubr.bf16.gmra.mxu0 %v6866_v26  ;;  %v1672_v22 = vld [vmem:[#allocation7 + $0x3a8] sm:$0xff] }
  0xb7   : > { %1535 = vmatpush1.bf16.msra.mxu0 %v5474_v31  ;;  %604 = vmatprep.mubr.bf16.mxu0 %v6871_v32  ;;  %v5525_v28 = vcombine.high %v1671_v21, %v1672_v22  ;;  %v1364_v30 = vld [vmem:[#allocation5 + $0x348] sm:$0xff] }
  0xb8   : > { %900 = vmatmul.mubr.bf16.gmra.mxu1 %v6866_v26  ;;  %1536 = vmatprep.subr.bf16.mxu0 %v5473_v36  ;;  %v1365_v31 = vld [vmem:[#allocation5 + $0x368] sm:$0xff]  ;;  %v5524_v36 = vcombine.low %v1671_v21, %v1672_v22  ;;  %v6928_v21 = vld [vmem:[%s6838_s29 + $0x70] ss:$8 sps:$4 sm:$0xff]  }
  0xb9   : > { %1840 = vmatpush1.bf16.msra.mxu1 %v5506_v35  ;;  %909 = vmatprep.mubr.bf16.mxu1 %v6871_v32  ;;  %v1669_v33 = vld [vmem:[#allocation7 + $0x348] sm:$0xff]  ;;  %v5492_v35 = vcombine.low %v1366_v16, %v1367_v17  ;;  %v5491_v37 = vcombine.high %v1364_v30, %v1365_v31 }
  0xba   : > { %1841 = vmatprep.subr.bf16.mxu1 %v5505_v39  ;;  %v1670_v34 = vld [vmem:[#allocation7 + $0x368] sm:$0xff] }
  0xbb   : > { %1537 = vmatpush1.bf16.msra.mxu0 %v5472_v40  ;;  %v5523_v38 = vcombine.high %v1669_v33, %v1670_v34  ;;  %v1362_v39 = vld [vmem:[#allocation5 + $0x308] sm:$0xff]  ;;  %v5522_v46 = vcombine.low %v1669_v33, %v1670_v34  ;;  %v6093_v33 = vld [vmem:[#allocation8 + $0x78] sm:$0xff]  }
  0xbc   : > { %1538 = vmatprep.subr.bf16.mxu0 %v5471_v45  ;;  %v1363_v40 = vld [vmem:[#allocation5 + $0x328] sm:$0xff]  ;;  %v5490_v45 = vcombine.low %v1364_v30, %v1365_v31  ;;  %v6094_v34 = vld [vmem:[#allocation8 + $0x38] sm:$0xff]  }
  0xbd   : > { %1842 = vmatpush1.bf16.msra.mxu1 %v5504_v43  ;;  %v1667_v42 = vld [vmem:[#allocation7 + $0x308] sm:$0xff]  ;;  %v5489_v47 = vcombine.high %v1362_v39, %v1363_v40  ;;  %v5488_v55 = vcombine.low %v1362_v39, %v1363_v40  ;;  %v6102_v39 = vld [vmem:[#allocation8 + $0x18] sm:$0xff]  }
  0xbe   : > { %1843 = vmatprep.subr.bf16.mxu1 %v5503_v48  ;;  %605 = vmatmul.mubr.bf16.gmra.mxu0 %v6876_v44  ;;  %v1668_v43 = vld [vmem:[#allocation7 + $0x328] sm:$0xff] }
  0xbf   : > { %1539 = vmatpush1.bf16.msra.mxu0 %v5470_v49  ;;  %614 = vmatprep.mubr.bf16.mxu0 %v6881_v50  ;;  %v5521_v48 = vcombine.high %v1667_v42, %v1668_v43  ;;  %v6911_v49 = vld [vmem:[%s6838_s29 + $0x64] ss:$8 sps:$4 sm:$0xff]   ;;  %v5520_v57 = vcombine.low %v1667_v42, %v1668_v43  ;;  %v6109_v43 = vld [vmem:[#allocation8 + $0xf8] sm:$0xff]  }
  0xc0   : > { %910 = vmatmul.mubr.bf16.gmra.mxu1 %v6876_v44  ;;  %1540 = vmatprep.subr.bf16.mxu0 %v5469_v54  ;;  %v1360_v51 = vld [vmem:[#allocation5 + $0x2c8] sm:$0xff] }
  0xc1   : > { %1844 = vmatpush1.bf16.msra.mxu1 %v5502_v53  ;;  %919 = vmatprep.mubr.bf16.mxu1 %v6881_v50  ;;  %v1361_v52 = vld [vmem:[#allocation5 + $0x2e8] sm:$0xff] }
  0xc2   : > { %1845 = vmatprep.subr.bf16.mxu1 %v5501_v58  ;;  %v1665_v53 = vld [vmem:[#allocation7 + $0x2c8] sm:$0xff]  ;;  %v5487_v58 = vcombine.high %v1360_v51, %v1361_v52  ;;  %v5486_v2 = vcombine.low %v1360_v51, %v1361_v52  ;;  %v6120_v51 = vld [vmem:[#allocation8 + $0x90] sm:$0xff]  }
  0xc3   : > { %1541 = vmatpush1.bf16.msra.mxu0 %v5468_v59  ;;  %v1666_v54 = vld [vmem:[#allocation7 + $0x2e8] sm:$0xff] }
  0xc4   : > { %1542 = vmatprep.subr.bf16.mxu0 %v5467_v0  ;;  %v5519_v59 = vcombine.high %v1665_v53, %v1666_v54  ;;  %v1358_v60 = vld [vmem:[#allocation5 + $0x288] sm:$0xff] }
  0xc5   : > { %1846 = vmatpush1.bf16.msra.mxu1 %v5500_v62  ;;  %v1359_v61 = vld [vmem:[#allocation5 + $0x2a8] sm:$0xff] }
  0xc6   : > { %1847 = vmatprep.subr.bf16.mxu1 %v5499_v3  ;;  %615 = vmatmul.mubr.bf16.gmra.mxu0 %v6886_v63  ;;  %v6918_v62 = vld [vmem:[%s6838_s29 + $0x60] ss:$8 sps:$4 sm:$0xff]   ;;  %v5518_v3 = vcombine.low %v1665_v53, %v1666_v54 }
  0xc7   : > { %1543 = vmatpush1.bf16.msra.mxu0 %v5466_v4  ;;  %624 = vmatprep.mubr.bf16.mxu0 %v6891_v5  ;;  %v1663_v0 = vld [vmem:[#allocation7 + $0x288] sm:$0xff]  ;;  %v5485_v4 = vcombine.high %v1358_v60, %v1359_v61  ;;  %v6123_v54 = vld [vmem:[#allocation8 + $0xc0] sm:$0xff]  }
  0xc8   : > { %920 = vmatmul.mubr.bf16.gmra.mxu1 %v6886_v63  ;;  %1544 = vmatprep.subr.bf16.mxu0 %v5465_v10  ;;  %v1664_v1 = vld [vmem:[#allocation7 + $0x2a8] sm:$0xff] }
  0xc9   : > { %1848 = vmatpush1.bf16.msra.mxu1 %v5498_v9  ;;  %929 = vmatprep.mubr.bf16.mxu1 %v6891_v5  ;;  %v5517_v6 = vcombine.high %v1663_v0, %v1664_v1  ;;  %v1356_v9 = vld [vmem:[#allocation5 + $0x248] sm:$0xff] }
  0xca   : > { %1849 = vmatprep.subr.bf16.mxu1 %v5497_v13  ;;  %v1357_v10 = vld [vmem:[#allocation5 + $0x268] sm:$0xff]  ;;  %v5484_v13 = vcombine.low %v1358_v60, %v1359_v61  ;;  %v6970_v60 = vld [vmem:[#allocation5 + $0x1d0] sm:$0xff] }
  0xcb   : > { %1545 = vmatpush1.bf16.msra.mxu0 %v5464_v15  ;;  %v1661_v11 = vld [vmem:[#allocation7 + $0x248] sm:$0xff]  ;;  %v5516_v15 = vcombine.low %v1663_v0, %v1664_v1  ;;  %v5483_v16 = vcombine.high %v1356_v9, %v1357_v10  ;;  %v6972_v61 = vld [vmem:[#allocation5 + $0x1f0] sm:$0xff] }
  0xcc   : > { %1546 = vmatprep.subr.bf16.mxu0 %v5495_v20  ;;  %v1662_v12 = vld [vmem:[#allocation7 + $0x268] sm:$0xff]  ;;  %v5575_v0 = vcombine.high %v6970_v60, %v6972_v61 }
  0xcd   : > { %1850 = vmatpush1.bf16.msra.mxu1 %v5496_v18  ;;  %v5515_v17 = vcombine.high %v1661_v11, %v1662_v12  ;;  %v1354_v18 = vld [vmem:[#allocation5 + $0x208] sm:$0xff] }
  0xce   : > { %1851 = vmatprep.subr.bf16.mxu1 %v5527_v23  ;;  %625 = vmatmul.mubr.bf16.gmra.mxu0 %v6896_v19  ;;  %v1355_v20 = vld [vmem:[#allocation5 + $0x228] sm:$0xff] }
  0xcf   : > { %1547 = vmatpush2.bf16.msra.mxu0 %v5494_v24  ;;  %634 = vmatprep.mubr.bf16.mxu0 %v6901_v29  ;;  %v1659_v22 = vld [vmem:[#allocation7 + $0x208] sm:$0xff]  ;;  %v5482_v24 = vcombine.low %v1356_v9, %v1357_v10  ;;  %v5480_v30 = vcombine.low %v1354_v18, %v1355_v20 }
  0xd0   : > { %930 = vmatmul.mubr.bf16.gmra.mxu1 %v6896_v19  ;;  %1548 = vmatprep.subr.bf16.mxu0 %v5493_v27  ;;  %v1660_v23 = vld [vmem:[#allocation7 + $0x228] sm:$0xff]  ;;  %v5481_v27 = vcombine.high %v1354_v18, %v1355_v20  ;;  %v6984_v18 = vld [vmem:[#allocation7 + $0x150] sm:$0xff] }
  0xd1   : > { %1852 = vmatpush2.bf16.msra.mxu1 %v5526_v25  ;;  %939 = vmatprep.mubr.bf16.mxu1 %v6901_v29  ;;  %v5514_v25 = vcombine.low %v1661_v11, %v1662_v12  ;;  %v5512_v31 = vcombine.low %v1659_v22, %v1660_v23  ;;  %v6105_v40 = vld [vmem:[#allocation8 + $0x48] sm:$0xff]  }
  0xd2   : > { %1853 = vmatprep.subr.bf16.mxu1 %v5525_v28  ;;  %v5513_v28 = vcombine.high %v1659_v22, %v1660_v23  ;;  %v6106_v42 = vld [vmem:[#allocation8 + $0x8] sm:$0xff]   ;;  %v6989_v23 = vld [vmem:[#allocation7 + $0x170] sm:$0xff] }
  0xd3   : > { %1549 = vmatpush2.bf16.msra.mxu0 %v5492_v35  ;;  %v6095_v35 = vld [vmem:[#allocation8 + $0x70] sm:$0xff]   ;;  %v6121_v52 = vld [vmem:[#allocation8 + $0xc8] sm:$0xff]  }
  0xd4   : > { %1550 = vmatprep.subr.bf16.mxu0 %v5491_v37  ;;  %v6097_v37 = vld [vmem:[#allocation8 + $0x68] sm:$0xff]  }
  0xd5   : > { %1854 = vmatpush2.bf16.msra.mxu1 %v5524_v36  ;;  %v6096_v36 = vld [vmem:[#allocation8 + $0x30] sm:$0xff]   ;;  %v6122_v53 = vld [vmem:[#allocation8 + $0x88] sm:$0xff]  }
  0xd6   : > { %1855 = vmatprep.subr.bf16.mxu1 %v5523_v38  ;;  %635 = vmatmul.mubr.bf16.gmra.mxu0 %v6908_v41  ;;  %v6101_v38 = vld [vmem:[#allocation8 + $0x58] sm:$0xff]  }
  0xd7   : > { %1551 = vmatpush2.bf16.msra.mxu0 %v5490_v45  ;;  %644 = vmatprep.mubr.bf16.mxu0 %v6911_v49  ;;  %v6112_v45 = vld [vmem:[#allocation8 + $0xb0] sm:$0xff]  }
  0xd8   : > { %940 = vmatmul.mubr.bf16.gmra.mxu1 %v6908_v41  ;;  %1552 = vmatprep.subr.bf16.mxu0 %v5489_v47  ;;  %v6117_v47 = vld [vmem:[#allocation8 + $0xd8] sm:$0xff]  }
  0xd9   : > { %1856 = vmatpush2.bf16.msra.mxu1 %v5522_v46  ;;  %949 = vmatprep.mubr.bf16.mxu1 %v6911_v49  ;;  %v6116_v46 = vld [vmem:[#allocation8 + $0xa0] sm:$0xff]  }
  0xda   : > { %1857 = vmatprep.subr.bf16.mxu1 %v5521_v48  ;;  %v6118_v48 = vld [vmem:[#allocation8 + $0x98] sm:$0xff]  }
  0xdb   : > { %1553 = vmatpush2.bf16.msra.mxu0 %v5488_v55  ;;  %v6124_v55 = vld [vmem:[#allocation8 + $0x80] sm:$0xff]  }
  0xdc   : > { %1554 = vmatprep.subr.bf16.mxu0 %v5487_v58  ;;  %v6966_v58 = vld [vmem:[#allocation7 + $0x1f0] sm:$0xff] }
  0xdd   : > { %1858 = vmatpush2.bf16.msra.mxu1 %v5520_v57  ;;  %v6964_v57 = vld [vmem:[#allocation7 + $0x1d0] sm:$0xff] }
  0xde   : > { %1859 = vmatprep.subr.bf16.mxu1 %v5519_v59  ;;  %645 = vmatmul.mubr.bf16.gmra.mxu0 %v6918_v62  ;;  %v5607_v59 = vcombine.high %v6964_v57, %v6966_v58 }
  0xdf   : > { %1555 = vmatpush2.bf16.msra.mxu0 %v5486_v2  ;;  %654 = vmatprep.mubr.bf16.mxu0 %v6921_v7 }
  0xe0   : > { %950 = vmatmul.mubr.bf16.gmra.mxu1 %v6918_v62  ;;  %1556 = vmatprep.subr.bf16.mxu0 %v5485_v4 }
  0xe1   : > { %1860 = vmatpush2.bf16.msra.mxu1 %v5518_v3  ;;  %959 = vmatprep.mubr.bf16.mxu1 %v6921_v7 }
  0xe2   : > { %1861 = vmatprep.subr.bf16.mxu1 %v5517_v6 }
  0xe3   : > { %1557 = vmatpush2.bf16.msra.mxu0 %v5484_v13  ;;  %v6980_v13 = vld [vmem:[#allocation7 + $0x190] sm:$0xff] }
  0xe4   : > { %1558 = vmatprep.subr.bf16.mxu0 %v5483_v16 }
  0xe5   : > { %1862 = vmatpush2.bf16.msra.mxu1 %v5516_v15  ;;  %v6982_v15 = vld [vmem:[#allocation7 + $0x1b0] sm:$0xff] }
  0xe6   : > { %1863 = vmatprep.subr.bf16.mxu1 %v5515_v17  ;;  %655 = vmatmul.mubr.bf16.gmra.mxu0 %v6928_v21 }
  0xe7   : > { %1559 = vmatpush2.bf16.msra.mxu0 %v5482_v24  ;;  %1562 = vmatprep.mubr.bf16.mxu0 %v6853_v56  ;;  %v6991_v24 = vld [vmem:[#allocation5 + $0x190] sm:$0xff] }
  0xe8   : > { %960 = vmatmul.mubr.bf16.gmra.mxu1 %v6928_v21  ;;  %1560 = vmatprep.subr.bf16.mxu0 %v5481_v27 }
  0xe9   : > { %1864 = vmatpush2.bf16.msra.mxu1 %v5514_v25  ;;  %1867 = vmatprep.mubr.bf16.mxu1 %v6853_v56  ;;  %v6098_v56 = vld [vmem:[#allocation8 + $0x28] sm:$0xff]   ;;  %v6993_v25 = vld [vmem:[#allocation5 + $0x1b0] sm:$0xff] }
  0xea   : > { %1865 = vmatprep.subr.bf16.mxu1 %v5513_v28 }
  0xeb   : > { %1561 = vmatpush2.bf16.msra.mxu0 %v5480_v30  ;;  %v5606_v30 = vcombine.low %v6964_v57, %v6966_v58 }
  0xec   : > { %5728 = vmatprep.subr.bf16.mxu0 %v6109_v43 }
  0xed   : > { %1866 = vmatpush2.bf16.msra.mxu1 %v5512_v31 }
  0xee   : > { %1563 = vmatmul.mubr.bf16.vlgmr.msra.gmra.mxu0 %v6858_v8  ;;  %5792 = vmatprep.subr.bf16.mxu1 %v6093_v33  ;;  %v6999_v33 = vld [vmem:[#allocation7 + $0x110] sm:$0xff] }
  0xef   : > { %1572 = vmatprep.mubr.bf16.mxu0 %v6861_v14 }
  0xf0   : > { %1868 = vmatmul.mubr.bf16.vlgmr.msra.gmra.mxu1 %v6858_v8  ;;  %v6099_v8 = vld [vmem:[#allocation8 + $0x60] sm:$0xff]  }
  0xf1   : > { %1877 = vmatprep.mubr.bf16.mxu1 %v6861_v14  ;;  %5793 = vmatpush3.bf16.msra.mxu1 %v6094_v34  ;;  %v6100_v14 = vld [vmem:[#allocation8 + $0x20] sm:$0xff]  }
  0xf2   : > { %5794 = vmatprep.subr.bf16.mxu1 %v6095_v35 }
  0xf5   : > { %5795 = vmatpush3.bf16.msra.mxu1 %v6096_v36 }
  0xf6   : > { %1573 = vmatmul.mubr.bf16.gmra.mxu0 %v6866_v26  ;;  %5796 = vmatprep.subr.bf16.mxu1 %v6097_v37  ;;  %v5605_v37 = vcombine.high %v6980_v13, %v6982_v15 }
  0xf7   : > { %1582 = vmatprep.mubr.bf16.mxu0 %v6871_v32 }
  0xf8   : > { %1878 = vmatmul.mubr.bf16.gmra.mxu1 %v6866_v26  ;;  %v6103_v26 = vld [vmem:[#allocation8 + $0x50] sm:$0xff]  }
  0xf9   : > { %1887 = vmatprep.mubr.bf16.mxu1 %v6871_v32  ;;  %5797 = vmatpush3.bf16.msra.mxu1 %v6098_v56  ;;  %v6104_v32 = vld [vmem:[#allocation8 + $0x10] sm:$0xff]  }
  0xfa   : > { %5798 = vmatprep.subr.bf16.mxu1 %v6099_v8  ;;  %v7006_v56 = vld [vmem:[#allocation7 + $0x130] sm:$0xff] }
  0xfb   : > { %v7008_v8 = vld [vmem:[#allocation5 + $0x150] sm:$0xff] }
  0xfd   : > { %5799 = vmatpush3.bf16.msra.mxu1 %v6100_v14  ;;  %v7010_v14 = vld [vmem:[#allocation5 + $0x170] sm:$0xff] }
  0xfe   : > { %1583 = vmatmul.mubr.bf16.gmra.mxu0 %v6876_v44  ;;  %5800 = vmatprep.subr.bf16.mxu1 %v6101_v38 }
  0xff   : > { %1592 = vmatprep.mubr.bf16.mxu0 %v6881_v50 }
 0x100   : > { %1888 = vmatmul.mubr.bf16.gmra.mxu1 %v6876_v44  ;;  %v6107_v44 = vld [vmem:[#allocation8 + $0x40] sm:$0xff]  }
 0x101   : > { %1897 = vmatprep.mubr.bf16.mxu1 %v6881_v50  ;;  %5801 = vmatpush3.bf16.msra.mxu1 %v6102_v39  ;;  %v6108_v50 = vld [vmem:[#allocation8] sm:$0xff]  }
 0x102   : > { %5802 = vmatprep.subr.bf16.mxu1 %v6103_v26 }
 0x105   : > { %5803 = vmatpush3.bf16.msra.mxu1 %v6104_v32 }
 0x106   : > { %1593 = vmatmul.mubr.bf16.gmra.mxu0 %v6886_v63  ;;  %5804 = vmatprep.subr.bf16.mxu1 %v6105_v40 }
 0x107   : > { %1602 = vmatprep.mubr.bf16.mxu0 %v6891_v5 }
 0x108   : > { %1898 = vmatmul.mubr.bf16.gmra.mxu1 %v6886_v63  ;;  %v6110_v63 = vld [vmem:[#allocation8 + $0xb8] sm:$0xff]  }
 0x109   : > { %1907 = vmatprep.mubr.bf16.mxu1 %v6891_v5  ;;  %5805 = vmatpush3.bf16.msra.mxu1 %v6106_v42  ;;  %v6111_v5 = vld [vmem:[#allocation8 + $0xf0] sm:$0xff]  }
 0x10a   : > { %5806 = vmatprep.subr.bf16.mxu1 %v6107_v44  ;;  %5729 = vmatpush3.bf16.msra.mxu0 %v6110_v63  ;;  %v7018_v42 = vld [vmem:[#allocation7 + $0xd0] sm:$0xff] }
 0x10b   : > { %5730 = vmatprep.subr.bf16.mxu0 %v6111_v5  ;;  %v7025_v5 = vld [vmem:[#allocation7 + $0xf0] sm:$0xff] }
 0x10d   : > { %5807 = vmatpush3.bf16.msra.mxu1 %v6108_v50 }
 0x10e   : > { %1603 = vmatmul.mubr.bf16.gmra.mxu0 %v6896_v19  ;;  %3199 = vmatprep.subr.bf16.mxu1 %v5607_v59 }
 0x10f   : > { %1612 = vmatprep.mubr.bf16.mxu0 %v6901_v29  ;;  %5731 = vmatpush3.bf16.msra.mxu0 %v6112_v45  ;;  %v7027_v45 = vld [vmem:[#allocation5 + $0x110] sm:$0xff] }
 0x110   : > { %1908 = vmatmul.mubr.bf16.gmra.mxu1 %v6896_v19  ;;  %v6113_v19 = vld [vmem:[#allocation8 + $0xe8] sm:$0xff]  }
 0x111   : > { %1917 = vmatprep.mubr.bf16.mxu1 %v6901_v29  ;;  %v6114_v29 = vld [vmem:[#allocation8 + $0xa8] sm:$0xff]   ;;  %5732 = vmatprep.subr.bf16.mxu0 %v6113_v19  ;;  %v7029_v19 = vld [vmem:[#allocation5 + $0x130] sm:$0xff] }
 0x113   : > { %5733 = vmatpush3.bf16.msra.mxu0 %v6114_v29 }
 0x116   : > { %1613 = vmatmul.mubr.bf16.gmra.mxu0 %v6908_v41 }
 0x117   : > { %1622 = vmatprep.mubr.bf16.mxu0 %v6911_v49 }
 0x118   : > { %1918 = vmatmul.mubr.bf16.gmra.mxu1 %v6908_v41  ;;  %v6115_v41 = vld [vmem:[#allocation8 + $0xe0] sm:$0xff]  }
 0x119   : > { %1927 = vmatprep.mubr.bf16.mxu1 %v6911_v49  ;;  %5734 = vmatprep.subr.bf16.mxu0 %v6115_v41  ;;  %v6119_v49 = vld [vmem:[#allocation8 + $0xd0] sm:$0xff]  }
 0x11a   : > { %5735 = vmatpush3.bf16.msra.mxu0 %v6116_v46 }
 0x11b   : > { %5736 = vmatprep.subr.bf16.mxu0 %v6117_v47 }
 0x11e   : > { %1623 = vmatmul.mubr.bf16.gmra.mxu0 %v6918_v62 }
 0x11f   : > { %1632 = vmatprep.mubr.bf16.mxu0 %v6921_v7  ;;  %5737 = vmatpush3.bf16.msra.mxu0 %v6118_v48 }
 0x120   : > { %1928 = vmatmul.mubr.bf16.gmra.mxu1 %v6918_v62  ;;  %5738 = vmatprep.subr.bf16.mxu0 %v6119_v49  ;;  %v7107_v62 = vld [vmem:[#allocation5 + $0xb0] sm:$0xff] }
 0x121   : > { %1937 = vmatprep.mubr.bf16.mxu1 %v6921_v7 }
 0x123   : > { %5739 = vmatpush3.bf16.msra.mxu0 %v6120_v51 }
 0x124   : > { %5740 = vmatprep.subr.bf16.mxu0 %v6121_v52 }
 0x126   : > { %1633 = vmatmul.mubr.bf16.gmra.mxu0 %v6928_v21 }
 0x127   : > { %5741 = vmatpush3.bf16.msra.mxu0 %v6122_v53 }
 0x128   : > { %1938 = vmatmul.mubr.bf16.gmra.mxu1 %v6928_v21  ;;  %5742 = vmatprep.subr.bf16.mxu0 %v6123_v54  ;;  %v7042_v54 = vld [vmem:[#allocation7 + $0x90] sm:$0xff] }
 0x12b   : > { %5743 = vmatpush3.bf16.msra.mxu0 %v6124_v55  ;;  %v7044_v55 = vld [vmem:[#allocation7 + $0xb0] sm:$0xff] }
 0x12c   : > { %2894 = vmatprep.subr.bf16.mxu0 %v5575_v0 }
 0x16e   : > { %v586_v1 = vpop.f32.mrf.mxu0 }
 0x16f   : > { %v970_v2 = vmul.f32 %v586_v1, %v586_v1 }
 0x170   : > { %v891_v3 = vpop.f32.mrf.mxu1  ;;  %v588_v6 = vpop.f32.mrf.mxu0 }
 0x171   : > { %v1002_v4 = vmul.f32 %v891_v3, %v891_v3  ;;  %v971_v7 = vmul.f32 %v588_v6, %v588_v6 }
 0x172   : > { %v893_v9 = vpop.f32.mrf.mxu1  ;;  %v590_v12 = vpop.f32.mrf.mxu0 }
 0x173   : > { %v6978_v10 = vadd.f32 %v1002_v4, %v970_v2  ;;  %v1003_v11 = vmul.f32 %v893_v9, %v893_v9  ;;  %v972_v16 = vmul.f32 %v590_v12, %v590_v12 }
 0x174   : > { %v895_v17 = vpop.f32.mrf.mxu1  ;;  %v592_v22 = vpop.f32.mrf.mxu0 }
 0x175   : > { %6157 = vrsqrt.f32 %v6978_v10  ;;  %v6987_v20 = vadd.f32 %v1003_v11, %v971_v7  ;;  %v1004_v21 = vmul.f32 %v895_v17, %v895_v17  ;;  %v973_v27 = vmul.f32 %v592_v22, %v592_v22  ;;  %v7063_v22 = vld [vmem:[#allocation5 + $0xf0] sm:$0xff] }
 0x176   : > { %v897_v28 = vpop.f32.mrf.mxu1  ;;  %v596_v36 = vpop.f32.mrf.mxu0  ;;  %vm1068_vm0 = vcmp.eq.f32.partialorder %v6978_v10, inf  ;;  %vm1070_vm3 = vcmp.eq.f32.partialorder %v6978_v10, 0.0 }
 0x177   : > { %6159 = vrsqrt.f32 %v6987_v20  ;;  %v7002_v34 = vadd.f32 %v1004_v21, %v972_v16  ;;  %v1005_v35 = vmul.f32 %v897_v28, %v897_v28  ;;  %v974_v38 = vmul.f32 %v596_v36, %v596_v36  ;;  %v7061_v21 = vld [vmem:[#allocation5 + $0xd0] sm:$0xff] }
 0x178   : > { %v901_v39 = vpop.f32.mrf.mxu1  ;;  %v598_v43 = vpop.f32.mrf.mxu0  ;;  %v1071_v16 = vand.u32 2147483648, %v6978_v10  ;;  %vm1075_vm1 = vcmp.eq.f32.partialorder %v6987_v20, inf  ;;  %vm1077_vm2 = vcmp.eq.f32.partialorder %v6987_v20, 0.0 }
 0x179   : > { %6161 = vrsqrt.f32 %v7002_v34  ;;  %v7021_v44 = vadd.f32 %v1005_v35, %v973_v27  ;;  %v1006_v50 = vmul.f32 %v901_v39, %v901_v39  ;;  %v975_v29 = vmul.f32 %v598_v43, %v598_v43 }
 0x17a   : > { %v903_v41 = vpop.f32.mrf.mxu1  ;;  %v600_v52 = vpop.f32.mrf.mxu0  ;;  %v1078_v39 = vand.u32 2147483648, %v6987_v20  ;;  %vm1082_vm4 = vcmp.eq.f32.partialorder %v7002_v34, inf  ;;  %vm1084_vm7 = vcmp.eq.f32.partialorder %v7002_v34, 0.0 }
 0x17b   : > { %6163 = vrsqrt.f32 %v7021_v44  ;;  %v7038_v49 = vadd.f32 %v1006_v50, %v974_v38  ;;  %v1007_v51 = vmul.f32 %v903_v41, %v903_v41  ;;  %v976_v59 = vmul.f32 %v600_v52, %v600_v52 }
 0x17c   : > { %v905_v0 = vpop.f32.mrf.mxu1  ;;  %v602_v7 = vpop.f32.mrf.mxu0  ;;  %v1085_v50 = vand.u32 2147483648, %v7002_v34  ;;  %vm1089_vm5 = vcmp.eq.f32.partialorder %v7021_v44, inf  ;;  %vm1091_vm6 = vcmp.eq.f32.partialorder %v7021_v44, 0.0 }
 0x17d   : > { %6165 = vrsqrt.f32 %v7038_v49  ;;  %v7053_v4 = vadd.f32 %v1007_v51, %v975_v29  ;;  %v1008_v6 = vmul.f32 %v905_v0, %v905_v0  ;;  %v977_v11 = vmul.f32 %v602_v7, %v602_v7  ;;  %v7083_v0 = vld [vmem:[#allocation7 + $0x70] sm:$0xff] }
 0x17e   : > { %v907_v12 = vpop.f32.mrf.mxu1  ;;  %v606_v35 = vpop.f32.mrf.mxu0  ;;  %v1099_v40 = vand.u32 2147483648, %v7038_v49  ;;  %vm1096_vm8 = vcmp.eq.f32.partialorder %v7038_v49, inf  ;;  %vm1098_vm10 = vcmp.eq.f32.partialorder %v7038_v49, 0.0 }
 0x17f   : > { %6167 = vrsqrt.f32 %v7053_v4  ;;  %v7066_v27 = vadd.f32 %v1008_v6, %v976_v59  ;;  %v1009_v28 = vmul.f32 %v907_v12, %v907_v12  ;;  %v978_v36 = vmul.f32 %v606_v35, %v606_v35  ;;  %v7081_v59 = vld [vmem:[#allocation7 + $0x50] sm:$0xff] }
 0x180   : > { %v911_v38 = vpop.f32.mrf.mxu1  ;;  %v608_v51 = vpop.f32.mrf.mxu0  ;;  %v1106_v53 = vand.u32 2147483648, %v7053_v4  ;;  %vm1103_vm9 = vcmp.eq.f32.partialorder %v7053_v4, inf  ;;  %vm1105_vm11 = vcmp.eq.f32.partialorder %v7053_v4, 0.0 }
 0x181   : > { %6169 = vrsqrt.f32 %v7066_v27  ;;  %v7074_v29 = vadd.f32 %v1009_v28, %v977_v11  ;;  %v1010_v41 = vmul.f32 %v911_v38, %v911_v38  ;;  %v979_v7 = vmul.f32 %v608_v51, %v608_v51 }
 0x182   : > { %v6158_v6 = vpop.eup %6157  ;;  %v913_v12 = vpop.f32.mrf.mxu1  ;;  %v1092_v11 = vand.u32 2147483648, %v7021_v44  ;;  %vm1110_vm12 = vcmp.eq.f32.partialorder %v7066_v27, inf  ;;  %vm1112_vm13 = vcmp.eq.f32.partialorder %v7066_v27, 0.0 }
 0x183   : > { %6171 = vrsqrt.f32 %v7074_v29  ;;  %v7090_v35 = vadd.f32 %v1010_v41, %v978_v36  ;;  %v1011_v38 = vmul.f32 %v913_v12, %v913_v12  ;;  %v610_v52 = vpop.f32.mrf.mxu0  ;;  %v1067_v3 = vmul.f32 %v6158_v6, %v6978_v10 }
 0x184   : > { %v6160_v51 = vpop.eup %6159  ;;  %v980_v9 = vmul.f32 %v610_v52, %v610_v52  ;;  %v915_v48 = vpop.f32.mrf.mxu1  ;;  %v7105_v52 = vld [vmem:[#allocation5 + $0x90] sm:$0xff]  ;;  %v1120_v47 = vand.u32 2147483648, %v7074_v29  ;;  %vm1117_vm14 = vcmp.eq.f32.partialorder %v7074_v29, inf  ;;  %vm1119_vm15 = vcmp.eq.f32.partialorder %v7074_v29, 0.0 }
 0x185   : > { %v7099_v36 = vadd.f32 %v1011_v38, %v979_v7  ;;  %v1012_v41 = vmul.f32 %v915_v48, %v915_v48  ;;  %v612_v12 = vpop.f32.mrf.mxu0  ;;  %v1074_v63 = vmul.f32 %v6160_v51, %v6987_v20  ;;  %6173 = vrsqrt.f32 %v7090_v35 }
 0x186   : > { %v6162_v17 = vpop.eup %6161  ;;  %v981_v43 = vmul.f32 %v612_v12, %v612_v12  ;;  %v917_v28 = vpop.f32.mrf.mxu1  ;;  %v1069_v48 = vsel %vm1068_vm0, %v6978_v10, %v1067_v3  ;;  %v1113_v7 = vand.u32 2147483648, %v7066_v27 }
 0x187   : > { %6175 = vrsqrt.f32 %v7099_v36  ;;  %v7115_v38 = vadd.f32 %v1012_v41, %v980_v9  ;;  %v1013_v51 = vmul.f32 %v917_v28, %v917_v28  ;;  %v616_v6 = vpop.f32.mrf.mxu0  ;;  %v1076_v1 = vsel %vm1075_vm1, %v6987_v20, %v1074_v63 }
 0x188   : > { %v6164_v12 = vpop.eup %6163  ;;  %v982_v2 = vmul.f32 %v616_v6, %v616_v6  ;;  %v921_v46 = vpop.f32.mrf.mxu1  ;;  %v1081_v3 = vmul.f32 %v6162_v17, %v7002_v34  ;;  %v1079_v9 = vsel %vm1077_vm2, %v1078_v39, %v1076_v1  ;;  %vm1131_vm0 = vcmp.eq.f32.partialorder %v7099_v36, inf }
 0x189   : > { %6177 = vrsqrt.f32 %v7115_v38  ;;  %v7127_v28 = vadd.f32 %v1013_v51, %v981_v43  ;;  %v1014_v41 = vmul.f32 %v921_v46, %v921_v46  ;;  %v618_v63 = vpop.f32.mrf.mxu0  ;;  %v1088_v26 = vmul.f32 %v6164_v12, %v7021_v44 }
 0x18a   : > { %v6166_v6 = vpop.eup %6165  ;;  %v983_v32 = vmul.f32 %v618_v63, %v618_v63  ;;  %v923_v17 = vpop.f32.mrf.mxu1  ;;  %v1072_v46 = vsel %vm1070_vm3, %v1071_v16, %v1069_v48  ;;  %v1083_v43 = vsel %vm1082_vm4, %v7002_v34, %v1081_v3  ;;  %vm1133_vm1 = vcmp.eq.f32.partialorder %v7099_v36, 0.0 }
 0x18b   : > { %6179 = vrsqrt.f32 %v7127_v28  ;;  %v7145_v51 = vadd.f32 %v1014_v41, %v982_v2  ;;  %v1015_v12 = vmul.f32 %v923_v17, %v923_v17  ;;  %v620_v63 = vpop.f32.mrf.mxu0  ;;  %v1090_v20 = vsel %vm1089_vm5, %v7021_v44, %v1088_v26 }
 0x18c   : > { %v6168_v10 = vpop.eup %6167  ;;  %v984_v1 = vmul.f32 %v620_v63, %v620_v63  ;;  %v925_v16 = vpop.f32.mrf.mxu1  ;;  %v1093_v39 = vsel %vm1091_vm6, %v1092_v11, %v1090_v20  ;;  %v1086_v2 = vsel %vm1084_vm7, %v1085_v50, %v1083_v43  ;;  %v1095_v48 = vmul.f32 %v6166_v6, %v7038_v49 }
 0x18d   : > { %6181 = vrsqrt.f32 %v7145_v51  ;;  %v7162_v26 = vadd.f32 %v1015_v12, %v983_v32  ;;  %v1016_v3 = vmul.f32 %v925_v16, %v925_v16  ;;  %v622_v41 = vpop.f32.mrf.mxu0  ;;  %v1291_v17 = vpack.c.bf16 %v1093_v39, %v1079_v9 }
 0x18e   : > { %v6170_v63 = vpop.eup %6169  ;;  %v985_v31 = vmul.f32 %v622_v41, %v622_v41  ;;  %v927_v44 = vpop.f32.mrf.mxu1  ;;  %v1290_v11 = vpack.c.bf16 %v1086_v2, %v1072_v46  ;;  %v1102_v20 = vmul.f32 %v6168_v10, %v7053_v4  ;;  %v1097_v34 = vsel %vm1096_vm8, %v7038_v49, %v1095_v48 }
 0x18f   : > { %6183 = vrsqrt.f32 %v7162_v26  ;;  %v7169_v50 = vadd.f32 %v1016_v3, %v984_v1  ;;  %v1017_v6 = vmul.f32 %v927_v44, %v927_v44  ;;  %2637 = vmatprep.mubr.bf16.mxu1 %v1291_v17  ;;  %v626_v32 = vpop.f32.mrf.mxu0  ;;  %v1100_v10 = vsel %vm1098_vm10, %v1099_v40, %v1097_v34 }
 0x190   : > { %v6172_v9 = vpop.eup %6171  ;;  %v986_v43 = vmul.f32 %v626_v32, %v626_v32  ;;  %v931_v12 = vpop.f32.mrf.mxu1  ;;  %2638 = vmatmul.mubr.bf16.vlgmr.msra.gmra.mxu1 %v1290_v11  ;;  %v1104_v46 = vsel %vm1103_vm9, %v7053_v4, %v1102_v20  ;;  %v1109_v1 = vmul.f32 %v6170_v63, %v7066_v27  ;;  %v1134_v48 = vand.u32 2147483648, %v7099_v36 }
 0x191   : > { %6185 = vrsqrt.f32 %v7169_v50  ;;  %v7182_v16 = vadd.f32 %v1017_v6, %v985_v31  ;;  %v1018_v39 = vmul.f32 %v931_v12, %v931_v12  ;;  %v628_v2 = vpop.f32.mrf.mxu0  ;;  %vm1124_vm2 = vcmp.eq.f32.partialorder %v7090_v35, inf  ;;  %3200 = vmatpush1.bf16.msra.mxu1 %v5606_v30 }
 0x192   : > { %v987_v49 = vmul.f32 %v628_v2, %v628_v2  ;;  %v933_v40 = vpop.f32.mrf.mxu1  ;;  %v1107_v3 = vsel %vm1105_vm11, %v1106_v53, %v1104_v46  ;;  %v1116_v31 = vmul.f32 %v6172_v9, %v7074_v29  ;;  %v1111_v41 = vsel %vm1110_vm12, %v7066_v27, %v1109_v1  ;;  %3201 = vmatprep.subr.bf16.mxu1 %v5605_v37  ;;  %v6174_v57 = vpop.eup %6173 }
 0x193   : > { %vm1126_vm3 = vcmp.eq.f32.partialorder %v7090_v35, 0.0  ;;  %6187 = vrsqrt.f32 %v7182_v16  ;;  %v7202_v58 = vadd.f32 %v1018_v39, %v986_v43  ;;  %v1019_v30 = vmul.f32 %v933_v40, %v933_v40  ;;  %v630_v4 = vpop.f32.mrf.mxu0 }
 0x194   : > { %v1114_v53 = vsel %vm1112_vm13, %v1113_v7, %v1111_v41  ;;  %vm1145_vm4 = vcmp.eq.f32.partialorder %v7127_v28, inf  ;;  %v6176_v17 = vpop.eup %6175  ;;  %v988_v63 = vmul.f32 %v630_v4, %v630_v4  ;;  %v935_v44 = vpop.f32.mrf.mxu1  ;;  %v1118_v37 = vsel %vm1117_vm14, %v7074_v29, %v1116_v31 }
 0x195   : > { %v1292_v11 = vpack.c.bf16 %v1114_v53, %v1100_v10  ;;  %vm1147_vm5 = vcmp.eq.f32.partialorder %v7127_v28, 0.0  ;;  %6189 = vrsqrt.f32 %v7202_v58  ;;  %v7214_v20 = vadd.f32 %v1019_v30, %v987_v49  ;;  %v632_v6 = vpop.f32.mrf.mxu0 }
 0x196   : > { %v1020_v34 = vmul.f32 %v935_v44, %v935_v44  ;;  %v1121_v27 = vsel %vm1119_vm15, %v1120_v47, %v1118_v37  ;;  %v9384_v7 = vcombine.low %v6980_v13, %v6982_v15  ;;  %v6178_v32 = vpop.eup %6177  ;;  %v989_v9 = vmul.f32 %v632_v6, %v632_v6  ;;  %v937_v43 = vpop.f32.mrf.mxu1 }
 0x197   : > { %v1293_v12 = vpack.c.bf16 %v1121_v27, %v1107_v3  ;;  %v1130_v46 = vmul.f32 %v6176_v17, %v7099_v36  ;;  %v1148_v10 = vand.u32 2147483648, %v7127_v28  ;;  %v9385_v1 = vcombine.high %v6984_v18, %v6989_v23  ;;  %v636_v39 = vpop.f32.mrf.mxu0 }
 0x198   : > { %3202 = vmatpush1.bf16.msra.mxu1 %v9384_v7  ;;  %6191 = vrsqrt.f32 %v7214_v20  ;;  %v7229_v29 = vadd.f32 %v1020_v34, %v988_v63  ;;  %v1021_v47 = vmul.f32 %v937_v43, %v937_v43  ;;  %v1123_v13 = vmul.f32 %v6174_v57, %v7090_v35  ;;  %v6180_v15 = vpop.eup %6179  ;;  %v941_v49 = vpop.f32.mrf.mxu1 }
 0x199   : > { %3203 = vmatprep.subr.bf16.mxu1 %v9385_v1  ;;  %2645 = vmatprep.mubr.bf16.mxu1 %v1293_v12  ;;  %v990_v2 = vmul.f32 %v636_v39, %v636_v39  ;;  %v1132_v40 = vsel %vm1131_vm0, %v7099_v36, %v1130_v46  ;;  %v1127_v3 = vand.u32 2147483648, %v7090_v35  ;;  %v1137_v31 = vmul.f32 %v6178_v32, %v7115_v38  ;;  %v638_v4 = vpop.f32.mrf.mxu0 }
 0x19a   : > { %6193 = vrsqrt.f32 %v7229_v29  ;;  %v7238_v41 = vadd.f32 %v1021_v47, %v989_v9  ;;  %v1022_v30 = vmul.f32 %v941_v49, %v941_v49  ;;  %2646 = vmatmul.mubr.bf16.gmra.mxu1 %v1292_v11  ;;  %v1135_v57 = vsel %vm1133_vm1, %v1134_v48, %v1132_v40  ;;  %v7242_v53 = vpop.eup %6181  ;;  %v943_v63 = vpop.f32.mrf.mxu1 }
 0x19b   : > { %v991_v17 = vmul.f32 %v638_v4, %v638_v4  ;;  %v1144_v44 = vmul.f32 %v6180_v15, %v7127_v28  ;;  %v1125_v37 = vsel %vm1124_vm2, %v7090_v35, %v1123_v13  ;;  %vm1138_vm6 = vcmp.eq.f32.partialorder %v7115_v38, inf  ;;  %v640_v11 = vpop.f32.mrf.mxu0 }
 0x19c   : > { %v9386_v34 = vcombine.low %v6984_v18, %v6989_v23  ;;  %6195 = vrsqrt.f32 %v7238_v41  ;;  %v7253_v36 = vadd.f32 %v1022_v30, %v990_v2  ;;  %v1023_v48 = vmul.f32 %v943_v63, %v943_v63  ;;  %v6184_v7 = vpop.eup %6183  ;;  %v945_v9 = vpop.f32.mrf.mxu1 }
 0x19d   : > { %v1128_v6 = vsel %vm1126_vm3, %v1127_v3, %v1125_v37  ;;  %v9387_v27 = vcombine.high %v6999_v33, %v7006_v56  ;;  %v992_v32 = vmul.f32 %v640_v11, %v640_v11  ;;  %v1146_v18 = vsel %vm1145_vm4, %v7127_v28, %v1144_v44  ;;  %v642_v12 = vpop.f32.mrf.mxu0 }
 0x19e   : > { %3204 = vmatpush1.bf16.msra.mxu1 %v9386_v34  ;;  %v1139_v23 = vsel %vm1138_vm6, %v7115_v38, %v1137_v31  ;;  %vm1140_vm7 = vcmp.eq.f32.partialorder %v7115_v38, 0.0  ;;  %6197 = vrsqrt.f32 %v7253_v36  ;;  %v7266_v43 = vadd.f32 %v1023_v48, %v991_v17  ;;  %v7270_v1 = vpop.eup %6185  ;;  %v947_v39 = vpop.f32.mrf.mxu1 }
 0x19f   : > { %3205 = vmatprep.subr.bf16.mxu1 %v9387_v27  ;;  %v1024_v35 = vmul.f32 %v945_v9, %v945_v9  ;;  %v1149_v46 = vsel %vm1147_vm5, %v1148_v10, %v1146_v18  ;;  %v993_v47 = vmul.f32 %v642_v12, %v642_v12  ;;  %v1141_v15 = vand.u32 2147483648, %v7115_v38  ;;  %v646_v28 = vpop.f32.mrf.mxu0 }
 0x1a0   : > { %v1295_v13 = vpack.c.bf16 %v1149_v46, %v1135_v57  ;;  %v1158_v2 = vmul.f32 %v6184_v7, %v7162_v26  ;;  %v9388_v49 = vcombine.low %v6999_v33, %v7006_v56  ;;  %6199 = vrsqrt.f32 %v7266_v43  ;;  %v6188_v31 = vpop.eup %6187  ;;  %v951_v4 = vpop.f32.mrf.mxu1 }
 0x1a1   : > { %v7278_v40 = vadd.f32 %v1024_v35, %v992_v32  ;;  %v1025_v3 = vmul.f32 %v947_v39, %v947_v39  ;;  %vm1159_vm8 = vcmp.eq.f32.partialorder %v7162_v26, inf  ;;  %v9389_v10 = vcombine.high %v7018_v42, %v7025_v5  ;;  %v648_v44 = vpop.f32.mrf.mxu0 }
 0x1a2   : > { %3206 = vmatpush1.bf16.msra.mxu1 %v9388_v49  ;;  %2653 = vmatprep.mubr.bf16.mxu1 %v1295_v13  ;;  %v994_v30 = vmul.f32 %v646_v28, %v646_v28  ;;  %v1142_v33 = vsel %vm1140_vm7, %v1141_v15, %v1139_v23  ;;  %v1160_v56 = vsel %vm1159_vm8, %v7162_v26, %v1158_v2  ;;  %vm1161_vm9 = vcmp.eq.f32.partialorder %v7162_v26, 0.0  ;;  %v7291_v37 = vpop.eup %6189  ;;  %v953_v48 = vpop.f32.mrf.mxu1 }
 0x1a3   : > { %3207 = vmatprep.subr.bf16.mxu1 %v9389_v10  ;;  %6201 = vrsqrt.f32 %v7278_v40  ;;  %v7289_v57 = vadd.f32 %v1025_v3, %v993_v47  ;;  %v1026_v17 = vmul.f32 %v951_v4, %v951_v4  ;;  %v1294_v63 = vpack.c.bf16 %v1142_v33, %v1128_v6  ;;  %v650_v32 = vpop.f32.mrf.mxu0 }
 0x1a4   : > { %v995_v34 = vmul.f32 %v648_v44, %v648_v44  ;;  %v1162_v11 = vand.u32 2147483648, %v7162_v26  ;;  %v1172_v38 = vmul.f32 %v6188_v31, %v7182_v16  ;;  %vm1173_vm10 = vcmp.eq.f32.partialorder %v7182_v16, inf  ;;  %v955_v35 = vpop.f32.mrf.mxu1 }
 0x1a5   : > { %v9390_v27 = vcombine.low %v7018_v42, %v7025_v5  ;;  %6203 = vrsqrt.f32 %v7289_v57  ;;  %v7300_v7 = vadd.f32 %v1026_v17, %v994_v30  ;;  %2654 = vmatmul.mubr.bf16.gmra.mxu1 %v1294_v63  ;;  %v1027_v6 = vmul.f32 %v953_v48, %v953_v48  ;;  %v6192_v18 = vpop.eup %6191  ;;  %v652_v39 = vpop.f32.mrf.mxu0 }
 0x1a6   : > { %vm1175_vm11 = vcmp.eq.f32.partialorder %v7182_v16, 0.0  ;;  %v9391_v9 = vcombine.high %v7042_v54, %v7044_v55  ;;  %v996_v23 = vmul.f32 %v650_v32, %v650_v32  ;;  %v1163_v42 = vsel %vm1161_vm9, %v1162_v11, %v1160_v56  ;;  %v957_v49 = vpop.f32.mrf.mxu1 }
 0x1a7   : > { %3208 = vmatpush1.bf16.msra.mxu1 %v9390_v27  ;;  %v1174_v5 = vsel %vm1173_vm10, %v7182_v16, %v1172_v38  ;;  %v1176_v12 = vand.u32 2147483648, %v7182_v16  ;;  %6205 = vrsqrt.f32 %v7300_v7  ;;  %v7311_v46 = vadd.f32 %v1027_v6, %v995_v34  ;;  %v7315_v15 = vpop.eup %6193  ;;  %v656_v31 = vpop.f32.mrf.mxu0 }
 0x1a8   : > { %3209 = vmatprep.subr.bf16.mxu1 %v9391_v9  ;;  %v1028_v47 = vmul.f32 %v955_v35, %v955_v35  ;;  %v1151_v13 = vmul.f32 %v7242_v53, %v7145_v51  ;;  %v997_v2 = vmul.f32 %v652_v39, %v652_v39  ;;  %vm1152_vm12 = vcmp.eq.f32.partialorder %v7145_v51, inf  ;;  %v961_v33 = vpop.f32.mrf.mxu1 }
 0x1a9   : > { %v1177_v26 = vsel %vm1175_vm11, %v1176_v12, %v1174_v5  ;;  %vm1154_vm13 = vcmp.eq.f32.partialorder %v7145_v51, 0.0  ;;  %v9392_v3 = vcombine.low %v7042_v54, %v7044_v55  ;;  %6207 = vrsqrt.f32 %v7311_v46  ;;  %v6196_v16 = vpop.eup %6195  ;;  %v658_v44 = vpop.f32.mrf.mxu0 }
 0x1aa   : > { %v7325_v28 = vadd.f32 %v1028_v47, %v996_v23  ;;  %v1029_v53 = vmul.f32 %v957_v49, %v957_v49  ;;  %v1297_v10 = vpack.c.bf16 %v1177_v26, %v1163_v42  ;;  %v9393_v30 = vcombine.high %v7081_v59, %v7083_v0  ;;  %v963_v38 = vpop.f32.mrf.mxu1 }
 0x1ab   : > { %3210 = vmatpush1.bf16.msra.mxu1 %v9392_v3  ;;  %v998_v4 = vmul.f32 %v656_v31, %v656_v31  ;;  %v1153_v56 = vsel %vm1152_vm12, %v7145_v51, %v1151_v13  ;;  %v1155_v17 = vand.u32 2147483648, %v7145_v51  ;;  %v1165_v54 = vmul.f32 %v7270_v1, %v7169_v50  ;;  %v7338_v34 = vpop.eup %6197  ;;  %v660_v23 = vpop.f32.mrf.mxu0 }
 0x1ac   : > { %3211 = vmatprep.subr.bf16.mxu1 %v9393_v30  ;;  %6209 = vrsqrt.f32 %v7325_v28  ;;  %v7335_v55 = vadd.f32 %v1029_v53, %v997_v2  ;;  %2661 = vmatprep.mubr.bf16.mxu1 %v1297_v10  ;;  %v1030_v63 = vmul.f32 %v961_v33, %v961_v33  ;;  %vm1166_vm14 = vcmp.eq.f32.partialorder %v7169_v50, inf  ;;  %v965_v5 = vpop.f32.mrf.mxu1 }
 0x1ad   : > { %v1156_v48 = vsel %vm1154_vm13, %v1155_v17, %v1153_v56  ;;  %v1167_v11 = vsel %vm1166_vm14, %v7169_v50, %v1165_v54  ;;  %vm1168_vm15 = vcmp.eq.f32.partialorder %v7169_v50, 0.0  ;;  %v1169_v1 = vand.u32 2147483648, %v7169_v50  ;;  %v7351_v51 = vpop.eup %6199  ;;  %v662_v47 = vpop.f32.mrf.mxu0 }
 0x1ae   : > { %v9394_v27 = vcombine.low %v7081_v59, %v7083_v0  ;;  %6211 = vrsqrt.f32 %v7335_v55  ;;  %v7349_v6 = vadd.f32 %v1030_v63, %v998_v4  ;;  %v999_v32 = vmul.f32 %v658_v44, %v658_v44  ;;  %v967_v2 = vpop.f32.mrf.mxu1 }
 0x1af   : > { %v1031_v9 = vmul.f32 %v963_v38, %v963_v38  ;;  %v1170_v35 = vsel %vm1168_vm15, %v1169_v1, %v1167_v11  ;;  %v1000_v42 = vmul.f32 %v660_v23, %v660_v23  ;;  %v1186_v12 = vmul.f32 %v6192_v18, %v7214_v20  ;;  %v1564_v10 = vpop.f32.mrf.mxu0 }
 0x1b0   : > { %3212 = vmatpush1.bf16.msra.mxu1 %v9394_v27  ;;  %vm1187_vm0 = vcmp.eq.f32.partialorder %v7214_v20, inf  ;;  %6213 = vrsqrt.f32 %v7349_v6  ;;  %v1296_v59 = vpack.c.bf16 %v1170_v35, %v1156_v48  ;;  %v1032_v50 = vmul.f32 %v965_v5, %v965_v5  ;;  %v7358_v39 = vpop.eup %6201  ;;  %v1869_v33 = vpop.f32.mrf.mxu1 }
 0x1b1   : > { %v7356_v0 = vadd.f32 %v1031_v9, %v999_v32  ;;  %v1001_v13 = vmul.f32 %v662_v47, %v662_v47  ;;  %v1188_v49 = vsel %vm1187_vm0, %v7214_v20, %v1186_v12  ;;  %vm1189_vm1 = vcmp.eq.f32.partialorder %v7214_v20, 0.0  ;;  %v1566_v54 = vpop.f32.mrf.mxu0 }
 0x1b2   : > { %v1190_v26 = vand.u32 2147483648, %v7214_v20  ;;  %2662 = vmatmul.mubr.bf16.gmra.mxu1 %v1296_v59  ;;  %v7364_v18 = vadd.f32 %v1032_v50, %v1000_v42  ;;  %v1033_v3 = vmul.f32 %v967_v2, %v967_v2  ;;  %v1200_v53 = vmul.f32 %v6196_v16, %v7238_v41  ;;  %v6204_v31 = vpop.eup %6203  ;;  %v1871_v11 = vpop.f32.mrf.mxu1 }
 0x1b3   : > { %6215 = vrsqrt.f32 %v7356_v0  ;;  %vm1201_vm2 = vcmp.eq.f32.partialorder %v7238_v41, inf  ;;  %vm1203_vm3 = vcmp.eq.f32.partialorder %v7238_v41, 0.0  ;;  %v1204_v4 = vand.u32 2147483648, %v7238_v41 }
 0x1b4   : > { %v1191_v30 = vsel %vm1189_vm1, %v1190_v26, %v1188_v49  ;;  %6217 = vrsqrt.f32 %v7364_v18  ;;  %v7371_v20 = vadd.f32 %v1033_v3, %v1001_v13  ;;  %v1202_v56 = vsel %vm1201_vm2, %v7238_v41, %v1200_v53  ;;  %v7374_v63 = vpop.eup %6205  ;;  %v1568_v41 = vpop.f32.mrf.mxu0 }
 0x1b5   : > { %v1948_v17 = vmul.f32 %v1564_v10, %v1564_v10  ;;  %v1205_v16 = vsel %vm1203_vm3, %v1204_v4, %v1202_v56  ;;  %v1980_v44 = vmul.f32 %v1869_v33, %v1869_v33  ;;  %v1179_v48 = vmul.f32 %v7291_v37, %v7202_v58  ;;  %v1873_v23 = vpop.f32.mrf.mxu1 }
 0x1b6   : > { %vm1180_vm4 = vcmp.eq.f32.partialorder %v7202_v58, inf  ;;  %6219 = vrsqrt.f32 %v7371_v20  ;;  %v1299_v1 = vpack.c.bf16 %v1205_v16, %v1191_v30  ;;  %vm1182_vm5 = vcmp.eq.f32.partialorder %v7202_v58, 0.0  ;;  %v7382_v27 = vpop.eup %6207  ;;  %v1570_v12 = vpop.f32.mrf.mxu0 }
 0x1b7   : > { %v1183_v38 = vand.u32 2147483648, %v7202_v58  ;;  %v7384_v32 = vadd.f32 %v1980_v44, %v1948_v17  ;;  %v1181_v9 = vsel %vm1180_vm4, %v7202_v58, %v1179_v48  ;;  %v1193_v37 = vmul.f32 %v7315_v15, %v7229_v29  ;;  %v1875_v15 = vpop.f32.mrf.mxu1 }
 0x1b8   : > { %vm1194_vm6 = vcmp.eq.f32.partialorder %v7229_v29, inf  ;;  %2669 = vmatprep.mubr.bf16.mxu1 %v1299_v1  ;;  %vm1196_vm7 = vcmp.eq.f32.partialorder %v7229_v29, 0.0  ;;  %v1197_v42 = vand.u32 2147483648, %v7229_v29  ;;  %v1949_v5 = vmul.f32 %v1566_v54, %v1566_v54  ;;  %v1574_v3 = vpop.f32.mrf.mxu0 }
 0x1b9   : > { %v1184_v35 = vsel %vm1182_vm5, %v1183_v38, %v1181_v9  ;;  %v7392_v59 = vpop.eup %6209  ;;  %6221 = vrsqrt.f32 %v7384_v32  ;;  %v1195_v58 = vsel %vm1194_vm6, %v7229_v29, %v1193_v37  ;;  %v1981_v50 = vmul.f32 %v1871_v11, %v1871_v11  ;;  %v1879_v33 = vpop.f32.mrf.mxu1 }
 0x1ba   : > { %v1950_v47 = vmul.f32 %v1568_v41, %v1568_v41  ;;  %v1198_v13 = vsel %vm1196_vm7, %v1197_v42, %v1195_v58  ;;  %v1982_v2 = vmul.f32 %v1873_v23, %v1873_v23  ;;  %v1951_v49 = vmul.f32 %v1570_v12, %v1570_v12  ;;  %v1576_v54 = vpop.f32.mrf.mxu0 }
 0x1bb   : > { %v1983_v26 = vmul.f32 %v1875_v15, %v1875_v15  ;;  %v7396_v53 = vpop.eup %6211  ;;  %v1298_v10 = vpack.c.bf16 %v1198_v13, %v1184_v35  ;;  %v7398_v30 = vadd.f32 %v1981_v50, %v1949_v5  ;;  %v1214_v4 = vmul.f32 %v7351_v51, %v7266_v43  ;;  %v1881_v48 = vpop.f32.mrf.mxu1 }
 0x1bc   : > { %vm1215_vm8 = vcmp.eq.f32.partialorder %v7266_v43, inf  ;;  %v7403_v29 = vadd.f32 %v1982_v2, %v1950_v47  ;;  %vm1217_vm9 = vcmp.eq.f32.partialorder %v7266_v43, 0.0  ;;  %v1218_v17 = vand.u32 2147483648, %v7266_v43  ;;  %v1578_v38 = vpop.f32.mrf.mxu0 }
 0x1bd   : > { %v7405_v56 = vadd.f32 %v1983_v26, %v1951_v49  ;;  %v7409_v16 = vpop.eup %6213  ;;  %2670 = vmatmul.mubr.bf16.gmra.mxu1 %v1298_v10  ;;  %6223 = vrsqrt.f32 %v7398_v30  ;;  %v1216_v44 = vsel %vm1215_vm8, %v7266_v43, %v1214_v4  ;;  %v1228_v51 = vmul.f32 %v6204_v31, %v7289_v57  ;;  %v1883_v31 = vpop.f32.mrf.mxu1 }
 0x1be   : > { %vm1229_vm10 = vcmp.eq.f32.partialorder %v7289_v57, inf  ;;  %6225 = vrsqrt.f32 %v7403_v29  ;;  %v1219_v11 = vsel %vm1217_vm9, %v1218_v17, %v1216_v44  ;;  %vm1231_vm11 = vcmp.eq.f32.partialorder %v7289_v57, 0.0  ;;  %v1580_v42 = vpop.f32.mrf.mxu0 }
 0x1bf   : > { %v1232_v1 = vand.u32 2147483648, %v7289_v57  ;;  %6227 = vrsqrt.f32 %v7405_v56  ;;  %v1230_v9 = vsel %vm1229_vm10, %v7289_v57, %v1228_v51  ;;  %v1952_v43 = vmul.f32 %v1574_v3, %v1574_v3  ;;  %v1885_v47 = vpop.f32.mrf.mxu1 }
 0x1c0   : > { %v7418_v41 = vpop.eup %6215  ;;  %v1984_v37 = vmul.f32 %v1879_v33, %v1879_v33  ;;  %v1207_v35 = vmul.f32 %v7338_v34, %v7253_v36  ;;  %vm1208_vm12 = vcmp.eq.f32.partialorder %v7253_v36, inf  ;;  %vm1210_vm13 = vcmp.eq.f32.partialorder %v7253_v36, 0.0  ;;  %v1584_v13 = vpop.f32.mrf.mxu0 }
 0x1c1   : > { %v1233_v23 = vsel %vm1231_vm11, %v1232_v1, %v1230_v9  ;;  %v7426_v5 = vpop.eup %6217  ;;  %v1211_v50 = vand.u32 2147483648, %v7253_v36  ;;  %v1221_v57 = vmul.f32 %v7358_v39, %v7278_v40  ;;  %vm1222_vm14 = vcmp.eq.f32.partialorder %v7278_v40, inf  ;;  %v1889_v3 = vpop.f32.mrf.mxu1 }
 0x1c2   : > { %v1301_v12 = vpack.c.bf16 %v1233_v23, %v1219_v11  ;;  %v7428_v58 = vadd.f32 %v1984_v37, %v1952_v43  ;;  %v1209_v15 = vsel %vm1208_vm12, %v7253_v36, %v1207_v35  ;;  %vm1224_vm15 = vcmp.eq.f32.partialorder %v7278_v40, 0.0  ;;  %v1586_v44 = vpop.f32.mrf.mxu0 }
 0x1c3   : > { %v1225_v34 = vand.u32 2147483648, %v7278_v40  ;;  %v7437_v2 = vpop.eup %6219  ;;  %v1212_v49 = vsel %vm1210_vm13, %v1211_v50, %v1209_v15  ;;  %v1223_v39 = vsel %vm1222_vm14, %v7278_v40, %v1221_v57  ;;  %v1953_v26 = vmul.f32 %v1576_v54, %v1576_v54  ;;  %v1891_v43 = vpop.f32.mrf.mxu1 }
 0x1c4   : > { %2677 = vmatprep.mubr.bf16.mxu1 %v1301_v12  ;;  %6229 = vrsqrt.f32 %v7428_v58  ;;  %v1985_v4 = vmul.f32 %v1881_v48, %v1881_v48  ;;  %v1954_v33 = vmul.f32 %v1578_v38, %v1578_v38  ;;  %v1986_v17 = vmul.f32 %v1883_v31, %v1883_v31  ;;  %v1588_v40 = vpop.f32.mrf.mxu0 }
 0x1c5   : > { %v1226_v10 = vsel %vm1224_vm15, %v1225_v34, %v1223_v39  ;;  %v1955_v11 = vmul.f32 %v1580_v42, %v1580_v42  ;;  %v1987_v1 = vmul.f32 %v1885_v47, %v1885_v47  ;;  %v1242_v9 = vmul.f32 %v7382_v27, %v7311_v46  ;;  %v1893_v31 = vpop.f32.mrf.mxu1 }
 0x1c6   : > { %v1300_v51 = vpack.c.bf16 %v1226_v10, %v1212_v49  ;;  %v7445_v37 = vpop.eup %6221  ;;  %v7447_v36 = vadd.f32 %v1985_v4, %v1953_v26  ;;  %v7449_v23 = vadd.f32 %v1986_v17, %v1954_v33  ;;  %vm1243_vm0 = vcmp.eq.f32.partialorder %v7311_v46, inf  ;;  %v1590_v42 = vpop.f32.mrf.mxu0 }
 0x1c7   : > { %vm1245_vm1 = vcmp.eq.f32.partialorder %v7311_v46, 0.0  ;;  %v7453_v54 = vadd.f32 %v1987_v1, %v1955_v11  ;;  %v1244_v48 = vsel %vm1243_vm0, %v7311_v46, %v1242_v9  ;;  %v1246_v38 = vand.u32 2147483648, %v7311_v46  ;;  %v1895_v46 = vpop.f32.mrf.mxu1 }
 0x1c8   : > { %2678 = vmatmul.mubr.bf16.gmra.mxu1 %v1300_v51  ;;  %v1256_v27 = vmul.f32 %v7396_v53, %v7335_v55  ;;  %6231 = vrsqrt.f32 %v7447_v36  ;;  %vm1257_vm2 = vcmp.eq.f32.partialorder %v7335_v55, inf  ;;  %vm1259_vm3 = vcmp.eq.f32.partialorder %v7335_v55, 0.0  ;;  %v1594_v49 = vpop.f32.mrf.mxu0 }
 0x1c9   : > { %v1260_v35 = vand.u32 2147483648, %v7335_v55  ;;  %6233 = vrsqrt.f32 %v7449_v23  ;;  %v1247_v12 = vsel %vm1245_vm1, %v1246_v38, %v1244_v48  ;;  %v1956_v57 = vmul.f32 %v1584_v13, %v1584_v13  ;;  %v1899_v13 = vpop.f32.mrf.mxu1 }
 0x1ca   : > { %v1258_v50 = vsel %vm1257_vm2, %v7335_v55, %v1256_v27  ;;  %v7465_v47 = vpop.eup %6223  ;;  %6235 = vrsqrt.f32 %v7453_v54  ;;  %v1988_v15 = vmul.f32 %v1889_v3, %v1889_v3  ;;  %v1235_v34 = vmul.f32 %v7374_v63, %v7300_v7  ;;  %v7483_v33 = vpop.f32.mrf.mxu0 }
 0x1cb   : > { %v1261_v53 = vsel %vm1259_vm3, %v1260_v35, %v1258_v50  ;;  %v7470_v39 = vpop.eup %6225  ;;  %vm1236_vm4 = vcmp.eq.f32.partialorder %v7300_v7, inf  ;;  %vm1238_vm5 = vcmp.eq.f32.partialorder %v7300_v7, 0.0  ;;  %v1239_v55 = vand.u32 2147483648, %v7300_v7  ;;  %v7487_v1 = vpop.f32.mrf.mxu1 }
 0x1cc   : > { %v1303_v26 = vpack.c.bf16 %v1261_v53, %v1247_v12  ;;  %v7475_v10 = vpop.eup %6227  ;;  %v7477_v4 = vadd.f32 %v1988_v15, %v1956_v57  ;;  %v1237_v3 = vsel %vm1236_vm4, %v7300_v7, %v1235_v34  ;;  %v1249_v63 = vmul.f32 %v7392_v59, %v7325_v28  ;;  %v1598_v59 = vpop.f32.mrf.mxu0 }
 0x1cd   : > { %vm1250_vm6 = vcmp.eq.f32.partialorder %v7325_v28, inf  ;;  %v1240_v17 = vsel %vm1238_vm5, %v1239_v55, %v1237_v3  ;;  %vm1252_vm7 = vcmp.eq.f32.partialorder %v7325_v28, 0.0  ;;  %v1253_v51 = vand.u32 2147483648, %v7325_v28  ;;  %v1903_v50 = vpop.f32.mrf.mxu1 }
 0x1ce   : > { %2685 = vmatprep.mubr.bf16.mxu1 %v1303_v26  ;;  %v1957_v11 = vmul.f32 %v1586_v44, %v1586_v44  ;;  %6237 = vrsqrt.f32 %v7477_v4  ;;  %v1251_v7 = vsel %vm1250_vm6, %v7325_v28, %v1249_v63  ;;  %v1989_v9 = vmul.f32 %v1891_v43, %v1891_v43  ;;  %v1600_v34 = vpop.f32.mrf.mxu0 }
 0x1cf   : > { %v1958_v48 = vmul.f32 %v1588_v40, %v1588_v40  ;;  %v1254_v38 = vsel %vm1252_vm7, %v1253_v51, %v1251_v7  ;;  %v1990_v27 = vmul.f32 %v1893_v31, %v1893_v31  ;;  %v1959_v35 = vmul.f32 %v1590_v42, %v1590_v42  ;;  %v1905_v31 = vpop.f32.mrf.mxu1 }
 0x1d0   : > { %v1991_v12 = vmul.f32 %v1895_v46, %v1895_v46  ;;  %v1302_v53 = vpack.c.bf16 %v1254_v38, %v1240_v17  ;;  %v7493_v15 = vadd.f32 %v1989_v9, %v1957_v11  ;;  %v1270_v44 = vmul.f32 %v7418_v41, %v7356_v0  ;;  %v7509_v46 = vpop.f32.mrf.mxu0 }
 0x1d1   : > { %v7491_v57 = vpop.eup %6229  ;;  %vm1271_vm8 = vcmp.eq.f32.partialorder %v7356_v0, inf  ;;  %v7498_v28 = vadd.f32 %v1990_v27, %v1958_v48  ;;  %vm1273_vm9 = vcmp.eq.f32.partialorder %v7356_v0, 0.0  ;;  %v1274_v40 = vand.u32 2147483648, %v7356_v0  ;;  %v7514_v3 = vpop.f32.mrf.mxu1 }
 0x1d2   : > { %v7500_v43 = vadd.f32 %v1991_v12, %v1959_v35  ;;  %2686 = vmatmul.mubr.bf16.gmra.mxu1 %v1302_v53  ;;  %6239 = vrsqrt.f32 %v7493_v15  ;;  %v1272_v42 = vsel %vm1271_vm8, %v7356_v0, %v1270_v44  ;;  %v1284_v41 = vmul.f32 %v7437_v2, %v7371_v20  ;;  %v7518_v2 = vpop.f32.mrf.mxu0 }
 0x1d3   : > { %vm1285_vm10 = vcmp.eq.f32.partialorder %v7371_v20, inf  ;;  %6241 = vrsqrt.f32 %v7498_v28  ;;  %v1275_v26 = vsel %vm1273_vm9, %v1274_v40, %v1272_v42  ;;  %vm1287_vm11 = vcmp.eq.f32.partialorder %v7371_v20, 0.0  ;;  %v7526_v9 = vpop.f32.mrf.mxu1 }
 0x1d4   : > { %v1288_v55 = vand.u32 2147483648, %v7371_v20  ;;  %6243 = vrsqrt.f32 %v7500_v43  ;;  %v1286_v0 = vsel %vm1285_vm10, %v7371_v20, %v1284_v41  ;;  %v1960_v63 = vmul.f32 %v1594_v49, %v1594_v49  ;;  %v7535_v27 = vpop.f32.mrf.mxu0 }
 0x1d5   : > { %v1992_v17 = vmul.f32 %v1899_v13, %v1899_v13  ;;  %v7520_v51 = vpop.eup %6231  ;;  %v1263_v7 = vmul.f32 %v7409_v16, %v7349_v6  ;;  %vm1264_vm12 = vcmp.eq.f32.partialorder %v7349_v6, inf  ;;  %vm1266_vm13 = vcmp.eq.f32.partialorder %v7349_v6, 0.0  ;;  %v7543_v53 = vpop.f32.mrf.mxu1 }
 0x1d6   : > { %v1289_v11 = vsel %vm1287_vm11, %v1288_v55, %v1286_v0  ;;  %v7528_v48 = vpop.eup %6233  ;;  %v1267_v49 = vand.u32 2147483648, %v7349_v6  ;;  %v1277_v13 = vmul.f32 %v7426_v5, %v7364_v18  ;;  %vm1278_vm14 = vcmp.eq.f32.partialorder %v7364_v18, inf  ;;  %v7551_v42 = vpop.f32.mrf.mxu0 }
 0x1d7   : > { %v1305_v38 = vpack.c.bf16 %v1289_v11, %v1275_v26  ;;  %v7530_v20 = vadd.f32 %v1992_v17, %v1960_v63  ;;  %v7537_v35 = vpop.eup %6235  ;;  %v1265_v16 = vsel %vm1264_vm12, %v7349_v6, %v1263_v7  ;;  %vm1280_vm15 = vcmp.eq.f32.partialorder %v7364_v18, 0.0  ;;  %v1915_v63 = vpop.f32.mrf.mxu1 }
 0x1d8   : > { %v1281_v12 = vand.u32 2147483648, %v7364_v18  ;;  %v1268_v5 = vsel %vm1266_vm13, %v1267_v49, %v1265_v16  ;;  %v1279_v44 = vsel %vm1278_vm14, %v7364_v18, %v1277_v13  ;;  %v1961_v40 = vmul.f32 %v7483_v33, %v7483_v33 }
 0x1d9   : > { %2693 = vmatprep.mubr.bf16.mxu1 %v1305_v38  ;;  %6245 = vrsqrt.f32 %v7530_v20  ;;  %v1993_v26 = vmul.f32 %v7487_v1, %v7487_v1  ;;  %v1962_v55 = vmul.f32 %v1598_v59, %v1598_v59  ;;  %v1994_v0 = vmul.f32 %v1903_v50, %v1903_v50  ;;  %v7557_v38 = vpop.f32.mrf.mxu0  ;;  %v7567_v1 = vpop.f32.mrf.mxu1 }
 0x1da   : > { %v1282_v41 = vsel %vm1280_vm15, %v1281_v12, %v1279_v44  ;;  %v1963_v11 = vmul.f32 %v1600_v34, %v1600_v34  ;;  %v1995_v7 = vmul.f32 %v1905_v31, %v1905_v31  ;;  %v2052_v6 = vmul.f32 %v7465_v47, %v7398_v30  ;;  %v7584_v12 = vld [vmem:[%s6838_s29 + $0x4] ss:$8 sps:$4 sm:$0xff]  }
 0x1db   : > { %v1304_v17 = vpack.c.bf16 %v1282_v41, %v1268_v5  ;;  %v7559_v18 = vpop.eup %6237  ;;  %v7561_v33 = vadd.f32 %v1993_v26, %v1961_v40  ;;  %v7563_v49 = vadd.f32 %v1994_v0, %v1962_v55  ;;  %vm2053_vm0 = vcmp.eq.f32.partialorder %v7398_v30, inf  ;;  %v7575_v31 = vpop.f32.mrf.mxu0 }
 0x1dc   : > { %vm2055_vm1 = vcmp.eq.f32.partialorder %v7398_v30, 0.0  ;;  %v7569_v59 = vadd.f32 %v1995_v7, %v1963_v11  ;;  %v2054_v47 = vsel %vm2053_vm0, %v7398_v30, %v2052_v6  ;;  %v2056_v50 = vand.u32 2147483648, %v7398_v30  ;;  %v7581_v16 = vpop.f32.mrf.mxu1 }
 0x1dd   : > { %2694 = vmatmul.mubr.bf16.gmra.mxu1 %v1304_v17  ;;  %v2066_v34 = vmul.f32 %v7475_v10, %v7405_v56  ;;  %6247 = vrsqrt.f32 %v7561_v33  ;;  %vm2067_vm2 = vcmp.eq.f32.partialorder %v7405_v56, inf  ;;  %vm2069_vm3 = vcmp.eq.f32.partialorder %v7405_v56, 0.0  ;;  %v7600_v0 = vpop.f32.mrf.mxu0 }
 0x1de   : > { %v2070_v13 = vand.u32 2147483648, %v7405_v56  ;;  %3231 = vmatprep.mubr.bf16.mxu1 %v7584_v12  ;;  %6249 = vrsqrt.f32 %v7563_v49  ;;  %v2057_v10 = vsel %vm2055_vm1, %v2056_v50, %v2054_v47  ;;  %v1964_v44 = vmul.f32 %v7509_v46, %v7509_v46  ;;  %v7607_v46 = vpop.f32.mrf.mxu1 }
 0x1df   : > { %v2068_v5 = vsel %vm2067_vm2, %v7405_v56, %v2066_v34  ;;  %v7593_v40 = vpop.eup %6239  ;;  %6251 = vrsqrt.f32 %v7569_v59  ;;  %v1996_v26 = vmul.f32 %v7514_v3, %v7514_v3  ;;  %v2045_v55 = vmul.f32 %v7445_v37, %v7384_v32 }
 0x1e0   : > { %v2071_v41 = vsel %vm2069_vm3, %v2070_v13, %v2068_v5  ;;  %v7602_v30 = vpop.eup %6241  ;;  %vm2046_vm4 = vcmp.eq.f32.partialorder %v7384_v32, inf  ;;  %vm2048_vm5 = vcmp.eq.f32.partialorder %v7384_v32, 0.0  ;;  %v2049_v56 = vand.u32 2147483648, %v7384_v32  ;;  %v1620_v13 = vpop.f32.mrf.mxu0 }
 0x1e1   : > { %v2269_v17 = vpack.c.bf16 %v2071_v41, %v2057_v10  ;;  %v7609_v11 = vpop.eup %6243  ;;  %v7611_v7 = vadd.f32 %v1996_v26, %v1964_v44  ;;  %v2047_v3 = vsel %vm2046_vm4, %v7384_v32, %v2045_v55  ;;  %v2059_v37 = vmul.f32 %v7470_v39, %v7403_v29 }
 0x1e2   : > { %vm2060_vm6 = vcmp.eq.f32.partialorder %v7403_v29, inf  ;;  %v2050_v6 = vsel %vm2048_vm5, %v2049_v56, %v2047_v3  ;;  %vm2062_vm7 = vcmp.eq.f32.partialorder %v7403_v29, 0.0  ;;  %v2063_v47 = vand.u32 2147483648, %v7403_v29 }
 0x1e3   : > { %2444 = vmatprep.mubr.bf16.mxu0 %v2269_v17  ;;  %v1965_v50 = vmul.f32 %v7518_v2, %v7518_v2  ;;  %6253 = vrsqrt.f32 %v7611_v7  ;;  %v2061_v34 = vsel %vm2060_vm6, %v7403_v29, %v2059_v37  ;;  %v1997_v32 = vmul.f32 %v7526_v9, %v7526_v9  ;;  %v1925_v2 = vpop.f32.mrf.mxu1 }
 0x1e4   : > { %v1966_v39 = vmul.f32 %v7535_v27, %v7535_v27  ;;  %v2064_v10 = vsel %vm2062_vm7, %v2063_v47, %v2061_v34  ;;  %v1998_v5 = vmul.f32 %v7543_v53, %v7543_v53  ;;  %v1967_v44 = vmul.f32 %v7551_v42, %v7551_v42 }
 0x1e5   : > { %v1999_v41 = vmul.f32 %v1915_v63, %v1915_v63  ;;  %v2268_v55 = vpack.c.bf16 %v2064_v10, %v2050_v6  ;;  %v7633_v29 = vadd.f32 %v1997_v32, %v1965_v50  ;;  %v2080_v9 = vmul.f32 %v7520_v51, %v7447_v36  ;;  %v7649_v51 = vpop.f32.mrf.mxu0  ;;  %v7657_v6 = vpop.f32.mrf.mxu1 }
 0x1e6   : > { %v7631_v26 = vpop.eup %6245  ;;  %vm2081_vm8 = vcmp.eq.f32.partialorder %v7447_v36, inf  ;;  %v7638_v27 = vadd.f32 %v1998_v5, %v1966_v39  ;;  %vm2083_vm9 = vcmp.eq.f32.partialorder %v7447_v36, 0.0  ;;  %v2084_v53 = vand.u32 2147483648, %v7447_v36 }
 0x1e7   : > { %v7640_v17 = vadd.f32 %v1999_v41, %v1967_v44  ;;  %2445 = vmatmul.mubr.bf16.vlgmr.msra.gmra.mxu0 %v2268_v55  ;;  %6255 = vrsqrt.f32 %v7633_v29  ;;  %v2082_v42 = vsel %vm2081_vm8, %v7447_v36, %v2080_v9  ;;  %v2094_v63 = vmul.f32 %v7537_v35, %v7453_v54  ;;  %v7681_v10 = vpop.f32.mrf.mxu0  ;;  %v7692_v55 = vpop.f32.mrf.mxu1 }
 0x1e8   : > { %vm2095_vm10 = vcmp.eq.f32.partialorder %v7453_v54, inf  ;;  %v9395_v56 = vcombine.low %v6970_v60, %v6972_v61  ;;  %6257 = vrsqrt.f32 %v7638_v27  ;;  %v2085_v3 = vsel %vm2083_vm9, %v2084_v53, %v2082_v42 }
 0x1e9   : > { %vm2097_vm11 = vcmp.eq.f32.partialorder %v7453_v54, 0.0  ;;  %v2098_v37 = vand.u32 2147483648, %v7453_v54  ;;  %v9396_v36 = vcombine.high %v6991_v24, %v6993_v25  ;;  %6259 = vrsqrt.f32 %v7640_v17 }
 0x1ea   : > { %2895 = vmatpush1.bf16.msra.mxu0 %v9395_v56  ;;  %v2096_v35 = vsel %vm2095_vm10, %v7453_v54, %v2094_v63  ;;  %v1968_v60 = vmul.f32 %v7557_v38, %v7557_v38  ;;  %v2000_v61 = vmul.f32 %v7567_v1, %v7567_v1  ;;  %v7668_v47 = vpop.eup %6247  ;;  %v2073_v34 = vmul.f32 %v7491_v57, %v7428_v58 }
 0x1eb   : > { %2896 = vmatprep.subr.bf16.mxu0 %v9396_v36  ;;  %v2099_v50 = vsel %vm2097_vm11, %v2098_v37, %v2096_v35  ;;  %vm2074_vm12 = vcmp.eq.f32.partialorder %v7428_v58, inf  ;;  %vm2076_vm13 = vcmp.eq.f32.partialorder %v7428_v58, 0.0  ;;  %v7674_v32 = vpop.eup %6249  ;;  %v2077_v38 = vand.u32 2147483648, %v7428_v58  ;;  %v1628_v36 = vpop.f32.mrf.mxu0 }
 0x1ec   : > { %v2271_v39 = vpack.c.bf16 %v2099_v50, %v2085_v3  ;;  %v7676_v54 = vadd.f32 %v2000_v61, %v1968_v60  ;;  %v2087_v1 = vmul.f32 %v7528_v48, %v7449_v23  ;;  %v7683_v5 = vpop.eup %6251  ;;  %v9397_v57 = vcombine.low %v6991_v24, %v6993_v25 }
 0x1ed   : > { %v2075_v44 = vsel %vm2074_vm12, %v7428_v58, %v2073_v34  ;;  %vm2088_vm14 = vcmp.eq.f32.partialorder %v7449_v23, inf  ;;  %vm2090_vm15 = vcmp.eq.f32.partialorder %v7449_v23, 0.0  ;;  %v2091_v41 = vand.u32 2147483648, %v7449_v23 }
 0x1ee   : > { %2897 = vmatpush1.bf16.msra.mxu0 %v9397_v57  ;;  %2452 = vmatprep.mubr.bf16.mxu0 %v2271_v39  ;;  %6261 = vrsqrt.f32 %v7676_v54  ;;  %v2078_v48 = vsel %vm2076_vm13, %v2077_v38, %v2075_v44  ;;  %v2089_v9 = vsel %vm2088_vm14, %v7449_v23, %v2087_v1  ;;  %v9398_v24 = vcombine.high %v7008_v8, %v7010_v14 }
 0x1ef   : > { %v1969_v25 = vmul.f32 %v7575_v31, %v7575_v31  ;;  %v2092_v53 = vsel %vm2090_vm15, %v2091_v41, %v2089_v9  ;;  %v2001_v42 = vmul.f32 %v7581_v16, %v7581_v16  ;;  %v1970_v63 = vmul.f32 %v7600_v0, %v7600_v0  ;;  %v1933_v0 = vpop.f32.mrf.mxu1 }
 0x1f0   : > { %2898 = vmatprep.subr.bf16.mxu0 %v9398_v24  ;;  %v2002_v58 = vmul.f32 %v7607_v46, %v7607_v46  ;;  %v2270_v56 = vpack.c.bf16 %v2092_v53, %v2078_v48  ;;  %v1971_v3 = vmul.f32 %v1620_v13, %v1620_v13  ;;  %v2003_v23 = vmul.f32 %v1925_v2, %v1925_v2  ;;  %v7711_v35 = vpop.eup %6253 }
 0x1f1   : > { %v2108_v37 = vmul.f32 %v7593_v40, %v7493_v15  ;;  %v9399_v31 = vcombine.low %v7008_v8, %v7010_v14  ;;  %v7716_v16 = vadd.f32 %v2001_v42, %v1969_v25  ;;  %vm2109_vm0 = vcmp.eq.f32.partialorder %v7493_v15, inf }
 0x1f2   : > { %v7718_v60 = vadd.f32 %v2002_v58, %v1970_v63  ;;  %vm2111_vm1 = vcmp.eq.f32.partialorder %v7493_v15, 0.0  ;;  %2453 = vmatmul.mubr.bf16.gmra.mxu0 %v2270_v56  ;;  %v9400_v40 = vcombine.high %v7027_v45, %v7029_v19  ;;  %v7725_v46 = vadd.f32 %v2003_v23, %v1971_v3  ;;  %v6446_v23 = vld [vmem:[#allocation5 + $0x90] sm:$0xff] }
 0x1f3   : > { %2899 = vmatpush1.bf16.msra.mxu0 %v9399_v31  ;;  %v2110_v13 = vsel %vm2109_vm0, %v7493_v15, %v2108_v37  ;;  %v2112_v8 = vand.u32 2147483648, %v7493_v15  ;;  %v2122_v14 = vmul.f32 %v7609_v11, %v7500_v43  ;;  %6263 = vrsqrt.f32 %v7716_v16  ;;  %v1630_v15 = vpop.f32.mrf.mxu0  ;;  %v6447_v37 = vld [vmem:[#allocation5 + $0xb0] sm:$0xff] }
 0x1f4   : > { %2900 = vmatprep.subr.bf16.mxu0 %v9400_v40  ;;  %vm2123_vm2 = vcmp.eq.f32.partialorder %v7500_v43, inf  ;;  %vm2125_vm3 = vcmp.eq.f32.partialorder %v7500_v43, 0.0  ;;  %v2126_v2 = vand.u32 2147483648, %v7500_v43  ;;  %6265 = vrsqrt.f32 %v7718_v60  ;;  %v7739_v39 = vpop.eup %6255 }
 0x1f5   : > { %v2113_v61 = vsel %vm2111_vm1, %v2112_v8, %v2110_v13  ;;  %v2124_v50 = vsel %vm2123_vm2, %v7500_v43, %v2122_v14  ;;  %v1972_v34 = vmul.f32 %v7649_v51, %v7649_v51  ;;  %v9401_v11 = vcombine.low %v7027_v45, %v7029_v19  ;;  %v1935_v43 = vpop.f32.mrf.mxu1  ;;  %v7749_v44 = vpop.eup %6257 }
 0x1f6   : > { %6267 = vrsqrt.f32 %v7725_v46  ;;  %v2127_v38 = vsel %vm2125_vm3, %v2126_v2, %v2124_v50  ;;  %v2004_v1 = vmul.f32 %v7657_v6, %v7657_v6  ;;  %v2101_v57 = vmul.f32 %v7559_v18, %v7477_v4  ;;  %v7757_v41 = vpop.eup %6259  ;;  %v1634_v53 = vpop.f32.mrf.mxu0 }
 0x1f7   : > { %2901 = vmatpush1.bf16.msra.mxu0 %v9401_v11  ;;  %v2273_v51 = vpack.c.bf16 %v2127_v38, %v2113_v61  ;;  %vm2102_vm4 = vcmp.eq.f32.partialorder %v7477_v4, inf  ;;  %vm2104_vm5 = vcmp.eq.f32.partialorder %v7477_v4, 0.0  ;;  %v2105_v45 = vand.u32 2147483648, %v7477_v4  ;;  %v1939_v58 = vpop.f32.mrf.mxu1 }
 0x1f8   : > { %v9402_v19 = vcombine.high %v7061_v21, %v7063_v22  ;;  %v7759_v6 = vadd.f32 %v2004_v1, %v1972_v34  ;;  %v2103_v18 = vsel %vm2102_vm4, %v7477_v4, %v2101_v57  ;;  %v2115_v48 = vmul.f32 %v7602_v30, %v7498_v28  ;;  %v1636_v14 = vpop.f32.mrf.mxu0 }
 0x1f9   : > { %vm2116_vm6 = vcmp.eq.f32.partialorder %v7498_v28, inf  ;;  %2460 = vmatprep.mubr.bf16.mxu0 %v2273_v51  ;;  %v2106_v9 = vsel %vm2104_vm5, %v2105_v45, %v2103_v18  ;;  %vm2118_vm7 = vcmp.eq.f32.partialorder %v7498_v28, 0.0  ;;  %v2119_v24 = vand.u32 2147483648, %v7498_v28  ;;  %v1941_v50 = vpop.f32.mrf.mxu1  ;;  %v2705_v18 = vld [vmem:[#allocation5 + $0x70] sm:$0xff] }
 0x1fa   : > { %2902 = vmatprep.subr.bf16.mxu0 %v9402_v19  ;;  %v1973_v25 = vmul.f32 %v7681_v10, %v7681_v10  ;;  %6269 = vrsqrt.f32 %v7759_v6  ;;  %v2117_v42 = vsel %vm2116_vm6, %v7498_v28, %v2115_v48  ;;  %v9403_v4 = vcombine.low %v7061_v21, %v7063_v22 }
 0x1fb   : > { %v2005_v30 = vmul.f32 %v7692_v55, %v7692_v55  ;;  %v1974_v63 = vmul.f32 %v1628_v36, %v1628_v36  ;;  %v2120_v56 = vsel %vm2118_vm7, %v2119_v24, %v2117_v42  ;;  %v2006_v3 = vmul.f32 %v1933_v0, %v1933_v0  ;;  %v7776_v40 = vpop.eup %6261  ;;  %v3007_v36 = vld [vmem:[#allocation7 + $0x10] sm:$0xff]  ;;  %v1943_v48 = vpop.f32.mrf.mxu1 }
 0x1fc   : > { %2903 = vmatpush1.bf16.msra.mxu0 %v9403_v4  ;;  %v5565_v31 = vcombine.high %v6446_v23, %v6447_v37  ;;  %v1975_v10 = vmul.f32 %v1630_v15, %v1630_v15  ;;  %v2272_v13 = vpack.c.bf16 %v2120_v56, %v2106_v9  ;;  %v2007_v28 = vmul.f32 %v1935_v43, %v1935_v43  ;;  %v3008_v0 = vld [vmem:[#allocation7 + $0x30] sm:$0xff] }
 0x1fd   : > { %v7778_v8 = vadd.f32 %v2005_v30, %v1973_v25  ;;  %v2136_v21 = vmul.f32 %v7668_v47, %v7561_v33  ;;  %v7782_v22 = vadd.f32 %v2006_v3, %v1974_v63  ;;  %vm2137_vm8 = vcmp.eq.f32.partialorder %v7561_v33, inf  ;;  %v3038_v42 = vld [vmem:[#allocation7 + $0x3f0] sm:$0xff] }
 0x1fe   : > { %2904 = vmatprep.subr.bf16.mxu0 %v5565_v31  ;;  %vm2139_vm9 = vcmp.eq.f32.partialorder %v7561_v33, 0.0  ;;  %v2140_v55 = vand.u32 2147483648, %v7561_v33  ;;  %2461 = vmatmul.mubr.bf16.gmra.mxu0 %v2272_v13  ;;  %v7788_v2 = vadd.f32 %v2007_v28, %v1975_v10  ;;  %v2150_v47 = vmul.f32 %v7683_v5, %v7569_v59  ;;  %v2702_v3 = vld [vmem:[#allocation5 + $0x10] sm:$0xff]  ;;  %v1945_v28 = vpop.f32.mrf.mxu1 }
 0x1ff   : > { %6271 = vrsqrt.f32 %v7778_v8  ;;  %v2138_v61 = vsel %vm2137_vm8, %v7561_v33, %v2136_v21  ;;  %v9404_v34 = vcombine.low %v7105_v52, %v7107_v62  ;;  %vm2151_vm10 = vcmp.eq.f32.partialorder %v7569_v59, inf  ;;  %v1638_v62 = vpop.f32.mrf.mxu0  ;;  %v2703_v23 = vld [vmem:[#allocation5 + $0x30] sm:$0xff] }
 0x200   : > { %6273 = vrsqrt.f32 %v7782_v22  ;;  %v2141_v15 = vsel %vm2139_vm9, %v2140_v55, %v2138_v61  ;;  %v2152_v11 = vsel %vm2151_vm10, %v7569_v59, %v2150_v47  ;;  %vm2153_vm11 = vcmp.eq.f32.partialorder %v7569_v59, 0.0  ;;  %v7801_v1 = vpop.eup %6263 }
 0x201   : > { %2905 = vmatpush1.bf16.msra.mxu0 %v9404_v34  ;;  %v2154_v38 = vand.u32 2147483648, %v7569_v59  ;;  %v5592_v33 = vcombine.low %v3007_v36, %v3008_v0  ;;  %v5593_v5 = vcombine.high %v3007_v36, %v3008_v0  ;;  %v1976_v57 = vmul.f32 %v1634_v53, %v1634_v53  ;;  %v7805_v52 = vpop.eup %6265  ;;  %v2704_v59 = vld [vmem:[#allocation5 + $0x50] sm:$0xff] }
 0x202   : > { %v2008_v43 = vmul.f32 %v1939_v58, %v1939_v58  ;;  %v2129_v51 = vmul.f32 %v7631_v26, %v7530_v20  ;;  %6275 = vrsqrt.f32 %v7788_v2  ;;  %vm2130_vm12 = vcmp.eq.f32.partialorder %v7530_v20, inf  ;;  %v3037_v53 = vld [vmem:[#allocation7 + $0x3d0] sm:$0xff] }
 0x203   : > { %v2155_v45 = vsel %vm2153_vm11, %v2154_v38, %v2152_v11  ;;  %v2133_v19 = vand.u32 2147483648, %v7530_v20  ;;  %v7810_v9 = vpop.eup %6267  ;;  %3213 = vmatprep.subr.bf16.mxu1 %v5593_v5  ;;  %vm2132_vm13 = vcmp.eq.f32.partialorder %v7530_v20, 0.0  ;;  %v2143_v26 = vmul.f32 %v7674_v32, %v7563_v49  ;;  %v1640_v32 = vpop.f32.mrf.mxu0  ;;  %v3035_v5 = vld [vmem:[#allocation7 + $0x390] sm:$0xff] }
 0x204   : > { %v2275_v24 = vpack.c.bf16 %v2155_v45, %v2141_v15  ;;  %v2131_v25 = vsel %vm2130_vm12, %v7530_v20, %v2129_v51  ;;  %v7816_v4 = vadd.f32 %v2008_v43, %v1976_v57  ;;  %vm2144_vm14 = vcmp.eq.f32.partialorder %v7563_v49, inf  ;;  %3214 = vmatpush1.bf16.msra.mxu1 %v5592_v33  ;;  %v3036_v57 = vld [vmem:[#allocation7 + $0x3b0] sm:$0xff] }
 0x205   : > { %v2134_v30 = vsel %vm2132_vm13, %v2133_v19, %v2131_v25  ;;  %v2147_v63 = vand.u32 2147483648, %v7563_v49  ;;  %v2145_v58 = vsel %vm2144_vm14, %v7563_v49, %v2143_v26  ;;  %vm2146_vm15 = vcmp.eq.f32.partialorder %v7563_v49, 0.0  ;;  %v3033_v26 = vld [vmem:[#allocation7 + $0x350] sm:$0xff] }
 0x206   : > { %2468 = vmatprep.mubr.bf16.mxu0 %v2275_v24  ;;  %v5562_v56 = vcombine.low %v2704_v59, %v2705_v18  ;;  %v5563_v20 = vcombine.high %v2704_v59, %v2705_v18  ;;  %v1977_v31 = vmul.f32 %v1636_v14, %v1636_v14  ;;  %v2009_v10 = vmul.f32 %v1941_v50, %v1941_v50  ;;  %v2733_v24 = vld [vmem:[#allocation5 + $0x3f0] sm:$0xff] }
 0x207   : > { %v2148_v37 = vsel %vm2146_vm15, %v2147_v63, %v2145_v58  ;;  %v5622_v13 = vcombine.low %v3037_v53, %v3038_v42  ;;  %v7822_v21 = vpop.eup %6269  ;;  %v5623_v36 = vcombine.high %v3037_v53, %v3038_v42  ;;  %v1978_v0 = vmul.f32 %v1638_v62, %v1638_v62  ;;  %v3034_v53 = vld [vmem:[#allocation7 + $0x370] sm:$0xff] }
 0x208   : > { %v2274_v55 = vpack.c.bf16 %v2148_v37, %v2134_v30  ;;  %2906 = vmatprep.subr.bf16.mxu0 %v5563_v20  ;;  %v2010_v61 = vmul.f32 %v1943_v48, %v1943_v48  ;;  %v7824_v47 = vadd.f32 %v2009_v10, %v1977_v31  ;;  %v5560_v49 = vcombine.low %v2702_v3, %v2703_v23  ;;  %v2730_v58 = vld [vmem:[#allocation5 + $0x390] sm:$0xff] }
 0x209   : > { %2907 = vmatpush1.bf16.msra.mxu0 %v5562_v56  ;;  %v5561_v34 = vcombine.high %v2702_v3, %v2703_v23  ;;  %v1979_v15 = vmul.f32 %v1640_v32, %v1640_v32  ;;  %6277 = vrsqrt.f32 %v7816_v4  ;;  %3215 = vmatprep.subr.bf16.mxu1 %v5623_v36  ;;  %v2011_v50 = vmul.f32 %v1945_v28, %v1945_v28  ;;  %v2731_v56 = vld [vmem:[#allocation5 + $0x3b0] sm:$0xff] }
 0x20a   : > { %2469 = vmatmul.mubr.bf16.gmra.mxu0 %v2274_v55  ;;  %v7827_v14 = vadd.f32 %v2010_v61, %v1978_v0  ;;  %v2164_v11 = vmul.f32 %v7739_v39, %v7633_v29  ;;  %6279 = vrsqrt.f32 %v7824_v47  ;;  %3216 = vmatpush2.bf16.msra.mxu1 %v5622_v13  ;;  %vm2165_vm0 = vcmp.eq.f32.partialorder %v7633_v29, inf  ;;  %v3031_v55 = vld [vmem:[#allocation7 + $0x310] sm:$0xff] }
 0x20b   : > { %2908 = vmatprep.subr.bf16.mxu0 %v5561_v34  ;;  %v2168_v38 = vand.u32 2147483648, %v7633_v29  ;;  %v2178_v33 = vmul.f32 %v7757_v41, %v7640_v17  ;;  %v7838_v51 = vadd.f32 %v2011_v50, %v1979_v15  ;;  %vm2167_vm1 = vcmp.eq.f32.partialorder %v7633_v29, 0.0  ;;  %v3032_v36 = vld [vmem:[#allocation7 + $0x330] sm:$0xff] }
 0x20c   : > { %v7836_v43 = vpop.eup %6271  ;;  %v2166_v62 = vsel %vm2165_vm0, %v7633_v29, %v2164_v11  ;;  %vm2179_vm2 = vcmp.eq.f32.partialorder %v7640_v17, inf  ;;  %6281 = vrsqrt.f32 %v7827_v14  ;;  %v2182_v19 = vand.u32 2147483648, %v7640_v17  ;;  %v2732_v29 = vld [vmem:[#allocation5 + $0x3d0] sm:$0xff] }
 0x20d   : > { %v7843_v39 = vpop.eup %6273  ;;  %2909 = vmatpush1.bf16.msra.mxu0 %v5560_v49  ;;  %v2169_v45 = vsel %vm2167_vm1, %v2168_v38, %v2166_v62  ;;  %v2180_v41 = vsel %vm2179_vm2, %v7640_v17, %v2178_v33  ;;  %vm2181_vm3 = vcmp.eq.f32.partialorder %v7640_v17, 0.0  ;;  %v5620_v59 = vcombine.low %v3035_v5, %v3036_v57  ;;  %v2729_v33 = vld [vmem:[#allocation5 + $0x370] sm:$0xff] }
 0x20e   : > { %v5621_v18 = vcombine.high %v3035_v5, %v3036_v57  ;;  %v2157_v48 = vmul.f32 %v7711_v35, %v7611_v7  ;;  %6283 = vrsqrt.f32 %v7838_v51  ;;  %v2183_v25 = vsel %vm2181_vm3, %v2182_v19, %v2180_v41  ;;  %v3029_v41 = vld [vmem:[#allocation7 + $0x2d0] sm:$0xff] }
 0x20f   : > { %vm2158_vm4 = vcmp.eq.f32.partialorder %v7611_v7, inf  ;;  %vm2160_vm5 = vcmp.eq.f32.partialorder %v7611_v7, 0.0  ;;  %v7854_v42 = vpop.eup %6275  ;;  %v2277_v30 = vpack.c.bf16 %v2183_v25, %v2169_v45  ;;  %v2161_v63 = vand.u32 2147483648, %v7611_v7 }
 0x210   : > { %3217 = vmatprep.subr.bf16.mxu1 %v5621_v18  ;;  %v2159_v17 = vsel %vm2158_vm4, %v7611_v7, %v2157_v48  ;;  %v2171_v35 = vmul.f32 %v7749_v44, %v7638_v27  ;;  %vm2172_vm6 = vcmp.eq.f32.partialorder %v7638_v27, inf  ;;  %vm2174_vm7 = vcmp.eq.f32.partialorder %v7638_v27, 0.0  ;;  %v2726_v18 = vld [vmem:[#allocation5 + $0x310] sm:$0xff] }
 0x211   : > { %v2175_v20 = vand.u32 2147483648, %v7638_v27  ;;  %v5590_v3 = vcombine.low %v2732_v29, %v2733_v24  ;;  %3218 = vmatpush2.bf16.msra.mxu1 %v5620_v59  ;;  %2476 = vmatprep.mubr.bf16.mxu0 %v2277_v30  ;;  %v5591_v32 = vcombine.high %v2732_v29, %v2733_v24  ;;  %v5618_v37 = vcombine.low %v3033_v26, %v3034_v53  ;;  %v2727_v48 = vld [vmem:[#allocation5 + $0x330] sm:$0xff] }
 0x212   : > { %v2173_v23 = vsel %vm2172_vm6, %v7638_v27, %v2171_v35  ;;  %v5619_v31 = vcombine.high %v3033_v26, %v3034_v53  ;;  %v2162_v10 = vsel %vm2160_vm5, %v2161_v63, %v2159_v17  ;;  %v5589_v13 = vcombine.high %v2730_v58, %v2731_v56 }
 0x213   : > { %v2176_v44 = vsel %vm2174_vm7, %v2175_v20, %v2173_v23  ;;  %v2192_v28 = vmul.f32 %v7801_v1, %v7716_v16  ;;  %2910 = vmatprep.subr.bf16.mxu0 %v5591_v32  ;;  %v5588_v61 = vcombine.low %v2730_v58, %v2731_v56  ;;  %vm2193_vm8 = vcmp.eq.f32.partialorder %v7716_v16, inf }
 0x214   : > { %v2276_v0 = vpack.c.bf16 %v2176_v44, %v2162_v10  ;;  %3219 = vmatprep.subr.bf16.mxu1 %v5619_v31  ;;  %vm2195_vm9 = vcmp.eq.f32.partialorder %v7716_v16, 0.0  ;;  %2911 = vmatpush2.bf16.msra.mxu0 %v5590_v3  ;;  %v2196_v27 = vand.u32 2147483648, %v7716_v16  ;;  %v2206_v49 = vmul.f32 %v7810_v9, %v7725_v46  ;;  %v2728_v9 = vld [vmem:[#allocation5 + $0x350] sm:$0xff] }
 0x215   : > { %3220 = vmatpush2.bf16.msra.mxu1 %v5618_v37  ;;  %v2194_v7 = vsel %vm2193_vm8, %v7716_v16, %v2192_v28  ;;  %vm2207_vm10 = vcmp.eq.f32.partialorder %v7725_v46, inf  ;;  %2912 = vmatprep.subr.bf16.mxu0 %v5589_v13  ;;  %vm2209_vm11 = vcmp.eq.f32.partialorder %v7725_v46, 0.0  ;;  %v2210_v1 = vand.u32 2147483648, %v7725_v46  ;;  %v3027_v3 = vld [vmem:[#allocation7 + $0x290] sm:$0xff] }
 0x216   : > { %2477 = vmatmul.mubr.bf16.gmra.mxu0 %v2276_v0  ;;  %v5616_v34 = vcombine.low %v3031_v55, %v3032_v36  ;;  %v5617_v15 = vcombine.high %v3031_v55, %v3032_v36  ;;  %v7877_v50 = vpop.eup %6277  ;;  %v2197_v11 = vsel %vm2195_vm9, %v2196_v27, %v2194_v7  ;;  %v2208_v38 = vsel %vm2207_vm10, %v7725_v46, %v2206_v49  ;;  %v3030_v46 = vld [vmem:[#allocation7 + $0x2f0] sm:$0xff] }
 0x217   : > { %v2185_v16 = vmul.f32 %v7776_v40, %v7676_v54  ;;  %vm2186_vm12 = vcmp.eq.f32.partialorder %v7676_v54, inf  ;;  %v7883_v5 = vpop.eup %6279  ;;  %v2211_v57 = vsel %vm2209_vm11, %v2210_v1, %v2208_v38  ;;  %vm2188_vm13 = vcmp.eq.f32.partialorder %v7676_v54, 0.0  ;;  %v2724_v13 = vld [vmem:[#allocation5 + $0x2d0] sm:$0xff] }
 0x218   : > { %3221 = vmatprep.subr.bf16.mxu1 %v5617_v15  ;;  %v2189_v62 = vand.u32 2147483648, %v7676_v54  ;;  %v2199_v45 = vmul.f32 %v7805_v52, %v7718_v60  ;;  %2913 = vmatpush2.bf16.msra.mxu0 %v5588_v61  ;;  %v2279_v19 = vpack.c.bf16 %v2211_v57, %v2197_v11  ;;  %vm2200_vm14 = vcmp.eq.f32.partialorder %v7718_v60, inf  ;;  %v3025_v0 = vld [vmem:[#allocation7 + $0x250] sm:$0xff] }
 0x219   : > { %v2187_v40 = vsel %vm2186_vm12, %v7676_v54, %v2185_v16  ;;  %v2203_v59 = vand.u32 2147483648, %v7718_v60  ;;  %3222 = vmatpush2.bf16.msra.mxu1 %v5616_v34  ;;  %v7892_v29 = vpop.eup %6281  ;;  %vm2202_vm15 = vcmp.eq.f32.partialorder %v7718_v60, 0.0  ;;  %v5586_v52 = vcombine.low %v2728_v9, %v2729_v33  ;;  %v3026_v61 = vld [vmem:[#allocation7 + $0x270] sm:$0xff] }
 0x21a   : > { %v2201_v24 = vsel %vm2200_vm14, %v7718_v60, %v2199_v45  ;;  %v5587_v25 = vcombine.high %v2728_v9, %v2729_v33  ;;  %2484 = vmatprep.mubr.bf16.mxu0 %v2279_v19  ;;  %v2190_v26 = vsel %vm2188_vm13, %v2189_v62, %v2187_v40  ;;  %v5614_v30 = vcombine.low %v3029_v41, %v3030_v46  ;;  %v3028_v60 = vld [vmem:[#allocation7 + $0x2b0] sm:$0xff] }
 0x21b   : > { %v2204_v53 = vsel %vm2202_vm15, %v2203_v59, %v2201_v24  ;;  %v5615_v17 = vcombine.high %v3029_v41, %v3030_v46  ;;  %v7898_v63 = vpop.eup %6283  ;;  %v5584_v58 = vcombine.low %v2726_v18, %v2727_v48  ;;  %v5585_v56 = vcombine.high %v2726_v18, %v2727_v48  ;;  %v2722_v27 = vld [vmem:[#allocation5 + $0x290] sm:$0xff] }
 0x21c   : > { %v2278_v35 = vpack.c.bf16 %v2204_v53, %v2190_v26  ;;  %2914 = vmatprep.subr.bf16.mxu0 %v5587_v25  ;;  %v2220_v20 = vmul.f32 %v7836_v43, %v7778_v8  ;;  %vm2221_vm0 = vcmp.eq.f32.partialorder %v7778_v8, inf  ;;  %vm2223_vm1 = vcmp.eq.f32.partialorder %v7778_v8, 0.0  ;;  %v3024_v33 = vld [vmem:[#allocation7 + $0x230] sm:$0xff] }
 0x21d   : > { %2915 = vmatpush2.bf16.msra.mxu0 %v5586_v52  ;;  %3223 = vmatprep.subr.bf16.mxu1 %v5615_v17  ;;  %v2224_v54 = vand.u32 2147483648, %v7778_v8  ;;  %v2234_v23 = vmul.f32 %v7854_v42, %v7788_v2  ;;  %vm2235_vm2 = vcmp.eq.f32.partialorder %v7788_v2, inf  ;;  %vm2237_vm3 = vcmp.eq.f32.partialorder %v7788_v2, 0.0  ;;  %v2725_v42 = vld [vmem:[#allocation5 + $0x2f0] sm:$0xff] }
 0x21e   : > { %2485 = vmatmul.mubr.bf16.gmra.mxu0 %v2278_v35  ;;  %2916 = vmatprep.subr.bf16.mxu0 %v5585_v56  ;;  %v2222_v32 = vsel %vm2221_vm0, %v7778_v8, %v2220_v20  ;;  %v2238_v43 = vand.u32 2147483648, %v7788_v2  ;;  %v5612_v31 = vcombine.low %v3027_v3, %v3028_v60  ;;  %v5613_v10 = vcombine.high %v3027_v3, %v3028_v60  ;;  %v2723_v8 = vld [vmem:[#allocation5 + $0x2b0] sm:$0xff]  ;;  %v7953_v60 = vld [vmem:[%s6838_s29] ss:$8 sps:$4 sm:$0xff]  }
 0x21f   : > { %3224 = vmatpush2.bf16.msra.mxu1 %v5614_v30  ;;  %v2236_v37 = vsel %vm2235_vm2, %v7788_v2, %v2234_v23  ;;  %v2213_v44 = vmul.f32 %v7822_v21, %v7759_v6  ;;  %v2225_v28 = vsel %vm2223_vm1, %v2224_v54, %v2222_v32  ;;  %vm2214_vm4 = vcmp.eq.f32.partialorder %v7759_v6, inf  ;;  %v2720_v24 = vld [vmem:[#allocation5 + $0x250] sm:$0xff]  ;;  %v7968_v23 = vld [vmem:[%s6838_s29 + $0x24] ss:$8 sps:$4 sm:$0xff]   ;;  %v7973_v32 = vld [vmem:[%s6838_s29 + $0x20] ss:$8 sps:$4 sm:$0xff]  }
 0x220   : > { %v2239_v55 = vsel %vm2237_vm3, %v2238_v43, %v2236_v37  ;;  %v2217_v36 = vand.u32 2147483648, %v7759_v6  ;;  %3225 = vmatprep.subr.bf16.mxu1 %v5613_v10  ;;  %vm2216_vm5 = vcmp.eq.f32.partialorder %v7759_v6, 0.0  ;;  %v2227_v21 = vmul.f32 %v7843_v39, %v7782_v22  ;;  %v3023_v39 = vld [vmem:[#allocation7 + $0x210] sm:$0xff]  ;;  %v7993_v10 = vld [vmem:[%s6838_s29 + $0x40] ss:$8 sps:$4 sm:$0xff]  }
 0x221   : > { %2917 = vmatpush2.bf16.msra.mxu0 %v5584_v58  ;;  %v2281_v7 = vpack.c.bf16 %v2239_v55, %v2225_v28  ;;  %v2215_v2 = vsel %vm2214_vm4, %v7759_v6, %v2213_v44  ;;  %vm2228_vm6 = vcmp.eq.f32.partialorder %v7782_v22, inf  ;;  %v2231_v1 = vand.u32 2147483648, %v7782_v22  ;;  %v2721_v52 = vld [vmem:[#allocation5 + $0x270] sm:$0xff]  ;;  %v6126_v28 = vld [vmem:[#allocation8 + $0x138] sm:$0xff]  }
 0x222   : > { %v2218_v49 = vsel %vm2216_vm5, %v2217_v36, %v2215_v2  ;;  %v5582_v34 = vcombine.low %v2724_v13, %v2725_v42  ;;  %v2229_v15 = vsel %vm2228_vm6, %v7782_v22, %v2227_v21  ;;  %vm2230_vm7 = vcmp.eq.f32.partialorder %v7782_v22, 0.0  ;;  %v2718_v53 = vld [vmem:[#allocation5 + $0x210] sm:$0xff]  ;;  %v8008_v36 = vld [vmem:[%s6838_s29 + $0x64] ss:$8 sps:$4 sm:$0xff]   ;;  %v8019_v21 = vld [vmem:[%s6838_s29 + $0x60] ss:$8 sps:$4 sm:$0xff]  }
 0x223   : > { %2492 = vmatprep.mubr.bf16.mxu0 %v2281_v7  ;;  %v5583_v11 = vcombine.high %v2724_v13, %v2725_v42  ;;  %3226 = vmatpush2.bf16.msra.mxu1 %v5612_v31  ;;  %v5610_v38 = vcombine.low %v3025_v0, %v3026_v61  ;;  %v2232_v6 = vsel %vm2230_vm7, %v2231_v1, %v2229_v15  ;;  %vm2249_vm8 = vcmp.eq.f32.partialorder %v7824_v47, inf  ;;  %v2719_v30 = vld [vmem:[#allocation5 + $0x230] sm:$0xff]  ;;  %v7988_v31 = vld [vmem:[%s6838_s29 + $0x44] ss:$8 sps:$4 sm:$0xff]   ;;  %v6125_v42 = vld [vmem:[#allocation8 + $0x178] sm:$0xff]  }
 0x224   : > { %v5611_v16 = vcombine.high %v3025_v0, %v3026_v61  ;;  %v5581_v9 = vcombine.high %v2722_v27, %v2723_v8  ;;  %v2280_v57 = vpack.c.bf16 %v2232_v6, %v2218_v49  ;;  %v5580_v62 = vcombine.low %v2722_v27, %v2723_v8  ;;  %v7963_v54 = vld [vmem:[%s6838_s29 + $0x10] ss:$8 sps:$4 sm:$0xff]   ;;  %v7978_v43 = vld [vmem:[%s6838_s29 + $0x34] ss:$8 sps:$4 sm:$0xff]  }
 0x225   : > { %2918 = vmatprep.subr.bf16.mxu0 %v5583_v11  ;;  %v2248_v45 = vmul.f32 %v7883_v5, %v7824_v47  ;;  %vm2251_vm9 = vcmp.eq.f32.partialorder %v7824_v47, 0.0  ;;  %v2252_v22 = vand.u32 2147483648, %v7824_v47  ;;  %v2262_v41 = vmul.f32 %v7898_v63, %v7838_v51  ;;  %v7983_v37 = vld [vmem:[%s6838_s29 + $0x30] ss:$8 sps:$4 sm:$0xff]   ;;  %v7998_v44 = vld [vmem:[%s6838_s29 + $0x54] ss:$8 sps:$4 sm:$0xff]  }
 0x226   : > { %2919 = vmatpush2.bf16.msra.mxu0 %v5582_v34  ;;  %3227 = vmatprep.subr.bf16.mxu1 %v5611_v16  ;;  %vm2263_vm10 = vcmp.eq.f32.partialorder %v7838_v51, inf  ;;  %vm2265_vm11 = vcmp.eq.f32.partialorder %v7838_v51, 0.0  ;;  %v2266_v5 = vand.u32 2147483648, %v7838_v51  ;;  %v5608_v19 = vcombine.low %v3023_v39, %v3024_v33  ;;  %v8003_v55 = vld [vmem:[%s6838_s29 + $0x50] ss:$8 sps:$4 sm:$0xff]   ;;  %v6129_v16 = vld [vmem:[#allocation8 + $0x168] sm:$0xff]  }
 0x227   : > { %2493 = vmatmul.mubr.bf16.gmra.mxu0 %v2280_v57  ;;  %2920 = vmatprep.subr.bf16.mxu0 %v5581_v9  ;;  %v2250_v46 = vsel %vm2249_vm8, %v7824_v47, %v2248_v45  ;;  %v5609_v40 = vcombine.high %v3023_v39, %v3024_v33  ;;  %v2264_v18 = vsel %vm2263_vm10, %v7838_v51, %v2262_v41  ;;  %vm2242_vm12 = vcmp.eq.f32.partialorder %v7816_v4, inf  ;;  %v6127_v8 = vld [vmem:[#allocation8 + $0x170] sm:$0xff]   ;;  %v6130_v9 = vld [vmem:[#allocation8 + $0x128] sm:$0xff]   ;;  %v6131_v45 = vld [vmem:[#allocation8 + $0x160] sm:$0xff]  }
 0x228   : > { %3228 = vmatpush2.bf16.msra.mxu1 %v5610_v38  ;;  %v2253_v59 = vsel %vm2251_vm9, %v2252_v22, %v2250_v46  ;;  %v2241_v48 = vmul.f32 %v7877_v50, %v7816_v4  ;;  %v2267_v25 = vsel %vm2265_vm11, %v2266_v5, %v2264_v18  ;;  %vm2244_vm13 = vcmp.eq.f32.partialorder %v7816_v4, 0.0  ;;  %v6128_v49 = vld [vmem:[#allocation8 + $0x130] sm:$0xff]   ;;  %v6132_v22 = vld [vmem:[#allocation8 + $0x120] sm:$0xff]  }
 0x229   : > { %3229 = vmatprep.subr.bf16.mxu1 %v5609_v40  ;;  %v2245_v47 = vand.u32 2147483648, %v7816_v4  ;;  %v2255_v26 = vmul.f32 %v7892_v29, %v7827_v14  ;;  %v2283_v51 = vpack.c.bf16 %v2267_v25, %v2253_v59  ;;  %vm2256_vm14 = vcmp.eq.f32.partialorder %v7827_v14, inf  ;;  %v8024_v1 = vld [vmem:[%s6838_s29 + $0x74] ss:$8 sps:$4 sm:$0xff]   ;;  %v8035_v6 = vld [vmem:[%s6838_s29 + $0x70] ss:$8 sps:$4 sm:$0xff]  }
 0x22a   : > { %2921 = vmatpush2.bf16.msra.mxu0 %v5580_v62  ;;  %v2243_v17 = vsel %vm2242_vm12, %v7816_v4, %v2241_v48  ;;  %v2259_v50 = vand.u32 2147483648, %v7827_v14  ;;  %vm2258_vm15 = vcmp.eq.f32.partialorder %v7827_v14, 0.0  ;;  %v5578_v35 = vcombine.low %v2720_v24, %v2721_v52 }
 0x22b   : > { %v2257_v63 = vsel %vm2256_vm14, %v7827_v14, %v2255_v26  ;;  %v5579_v58 = vcombine.high %v2720_v24, %v2721_v52  ;;  %2500 = vmatprep.mubr.bf16.mxu0 %v2283_v51  ;;  %v2246_v29 = vsel %vm2244_vm13, %v2245_v47, %v2243_v17  ;;  %v5577_v20 = vcombine.high %v2718_v53, %v2719_v30  ;;  %v7958_v14 = vld [vmem:[%s6838_s29 + $0x14] ss:$8 sps:$4 sm:$0xff]  }
 0x22c   : > { %v2260_v56 = vsel %vm2258_vm15, %v2259_v50, %v2257_v63  ;;  %3230 = vmatpush2.bf16.msra.mxu1 %v5608_v19  ;;  %v5576_v4 = vcombine.low %v2718_v53, %v2719_v30  ;;  %v6133_v53 = vld [vmem:[#allocation8 + $0x158] sm:$0xff]  }
 0x22d   : > { %v2282_v3 = vpack.c.bf16 %v2260_v56, %v2246_v29  ;;  %2922 = vmatprep.subr.bf16.mxu0 %v5579_v58  ;;  %v6134_v30 = vld [vmem:[#allocation8 + $0x118] sm:$0xff]   ;;  %v6136_v58 = vld [vmem:[#allocation8 + $0x110] sm:$0xff]   ;;  %v6137_v29 = vld [vmem:[#allocation8 + $0x148] sm:$0xff]  }
 0x22e   : > { %2923 = vmatpush2.bf16.msra.mxu0 %v5578_v35  ;;  %v6135_v35 = vld [vmem:[#allocation8 + $0x150] sm:$0xff]   ;;  %v6138_v56 = vld [vmem:[#allocation8 + $0x108] sm:$0xff]  }
 0x22f   : > { %2501 = vmatmul.mubr.bf16.gmra.mxu0 %v2282_v3  ;;  %3232 = vmatmul.mubr.bf16.vlgmr.msra.gmra.mxu1 %v7953_v60  ;;  %v6139_v3 = vld [vmem:[#allocation8 + $0x140] sm:$0xff]  }
 0x230   : > { %2924 = vmatprep.subr.bf16.mxu0 %v5577_v20  ;;  %2926 = vmatprep.mubr.bf16.mxu0 %v7584_v12 }
 0x231   : > { %3241 = vmatprep.mubr.bf16.mxu1 %v7958_v14 }
 0x232   : > { %2925 = vmatpush2.bf16.msra.mxu0 %v5576_v4  ;;  %v3903_v4 = vld [vmem:[#allocation5 + $0x1d8] sm:$0xff] }
 0x233   : > { %5856 = vmatprep.subr.bf16.mxu0 %v6125_v42 }
 0x237   : > { %2927 = vmatmul.mubr.bf16.vlgmr.msra.gmra.mxu0 %v7953_v60  ;;  %3242 = vmatmul.mubr.bf16.gmra.mxu1 %v7963_v54 }
 0x238   : > { %2936 = vmatprep.mubr.bf16.mxu0 %v7958_v14  ;;  %3251 = vmatprep.mubr.bf16.mxu1 %v7968_v23 }
 0x239   : > { %5857 = vmatpush3.bf16.msra.mxu0 %v6126_v28 }
 0x23a   : > { %5858 = vmatprep.subr.bf16.mxu0 %v6127_v8  ;;  %v6140_v8 = vld [vmem:[#allocation8 + $0x100] sm:$0xff]  }
 0x23d   : > { %5859 = vmatpush3.bf16.msra.mxu0 %v6128_v49 }
 0x23e   : > { %5860 = vmatprep.subr.bf16.mxu0 %v6129_v16  ;;  %v3902_v16 = vld [vmem:[#allocation5 + $0x1b8] sm:$0xff] }
 0x23f   : > { %2937 = vmatmul.mubr.bf16.gmra.mxu0 %v7963_v54  ;;  %3252 = vmatmul.mubr.bf16.gmra.mxu1 %v7973_v32 }
 0x240   : > { %2946 = vmatprep.mubr.bf16.mxu0 %v7968_v23  ;;  %3261 = vmatprep.mubr.bf16.mxu1 %v7978_v43 }
 0x241   : > { %5861 = vmatpush3.bf16.msra.mxu0 %v6130_v9 }
 0x242   : > { %5862 = vmatprep.subr.bf16.mxu0 %v6131_v45 }
 0x245   : > { %5863 = vmatpush3.bf16.msra.mxu0 %v6132_v22  ;;  %v8065_v22 = vld [vmem:[#allocation7 + $0x1d8] sm:$0xff] }
 0x246   : > { %5864 = vmatprep.subr.bf16.mxu0 %v6133_v53 }
 0x247   : > { %2947 = vmatmul.mubr.bf16.gmra.mxu0 %v7973_v32  ;;  %3262 = vmatmul.mubr.bf16.gmra.mxu1 %v7983_v37 }
 0x248   : > { %2956 = vmatprep.mubr.bf16.mxu0 %v7978_v43  ;;  %3271 = vmatprep.mubr.bf16.mxu1 %v7988_v31 }
 0x249   : > { %5865 = vmatpush3.bf16.msra.mxu0 %v6134_v30 }
 0x24a   : > { %5866 = vmatprep.subr.bf16.mxu0 %v6135_v35 }
 0x24d   : > { %5867 = vmatpush3.bf16.msra.mxu0 %v6136_v58 }
 0x24e   : > { %5868 = vmatprep.subr.bf16.mxu0 %v6137_v29  ;;  %v3895_v29 = vld [vmem:[#allocation5 + $0xd8] sm:$0xff] }
 0x24f   : > { %2957 = vmatmul.mubr.bf16.gmra.mxu0 %v7983_v37  ;;  %3272 = vmatmul.mubr.bf16.gmra.mxu1 %v7993_v10 }
 0x250   : > { %2966 = vmatprep.mubr.bf16.mxu0 %v7988_v31  ;;  %3281 = vmatprep.mubr.bf16.mxu1 %v7998_v44  ;;  %v5808_v13 = vpop.f32.mrf.mxu1 }
 0x251   : > { %5869 = vmatpush3.bf16.msra.mxu0 %v6138_v56  ;;  %v3896_v56 = vld [vmem:[#allocation5 + $0xf8] sm:$0xff] }
 0x252   : > { %v5809_v0 = vpop.f32.mrf.mxu1  ;;  %5870 = vmatprep.subr.bf16.mxu0 %v6139_v3  ;;  %v5647_v3 = vcombine.high %v3895_v29, %v3896_v56 }
 0x253   : > { %v8011_v61 = vadd.f32 %v5809_v0, %v5808_v13  ;;  %v3904_v13 = vld [vmem:[#allocation5 + $0x1f8] sm:$0xff] }
 0x254   : > { %v8013_v7 = vpop.f32.mrf.mxu1  ;;  %v5654_v28 = vcombine.low %v3903_v4, %v3904_v13  ;;  %v5655_v0 = vcombine.high %v3903_v4, %v3904_v13  ;;  %v3893_v13 = vld [vmem:[#allocation5 + $0x98] sm:$0xff] }
 0x255   : > { %5871 = vmatpush3.bf16.msra.mxu0 %v6140_v8 }
 0x256   : > { %v8015_v2 = vpop.f32.mrf.mxu1  ;;  %4081 = vmatprep.subr.bf16.mxu1 %v5655_v0 }
 0x257   : > { %2967 = vmatmul.mubr.bf16.gmra.mxu0 %v7993_v10  ;;  %3282 = vmatmul.mubr.bf16.gmra.mxu1 %v8003_v55 }
 0x258   : > { %2976 = vmatprep.mubr.bf16.mxu0 %v7998_v44  ;;  %3291 = vmatprep.mubr.bf16.mxu1 %v8008_v36 }
 0x259   : > { %4082 = vmatpush1.bf16.msra.mxu1 %v5654_v28 }
 0x25a   : > { %v5814_v27 = vpop.f32.mrf.mxu1 }
 0x25c   : > { %v5815_v34 = vpop.f32.mrf.mxu1 }
 0x25d   : > { %v8027_v15 = vadd.f32 %v5815_v34, %v5814_v27  ;;  %v3901_v34 = vld [vmem:[#allocation5 + $0x198] sm:$0xff] }
 0x25e   : > { %v8029_v11 = vpop.f32.mrf.mxu1 }
 0x25f   : > { %2977 = vmatmul.mubr.bf16.gmra.mxu0 %v8003_v55  ;;  %3292 = vmatmul.mubr.bf16.gmra.mxu1 %v8019_v21 }
 0x260   : > { %2986 = vmatprep.mubr.bf16.mxu0 %v8008_v36  ;;  %3301 = vmatprep.mubr.bf16.mxu1 %v8024_v1  ;;  %v8031_v38 = vpop.f32.mrf.mxu1 }
 0x265   : > { %v5820_v39 = vpop.f32.mrf.mxu1 }
 0x267   : > { %2987 = vmatmul.mubr.bf16.gmra.mxu0 %v8019_v21  ;;  %3302 = vmatmul.mubr.bf16.gmra.mxu1 %v8035_v6  ;;  %v5821_v33 = vpop.f32.mrf.mxu1 }
 0x268   : > { %2996 = vmatprep.mubr.bf16.mxu0 %v8024_v1  ;;  %4113 = vmatprep.mubr.bf16.mxu1 %v7584_v12  ;;  %v8040_v57 = vadd.f32 %v5821_v33, %v5820_v39  ;;  %v5652_v39 = vcombine.low %v3901_v34, %v3902_v16  ;;  %v5653_v33 = vcombine.high %v3901_v34, %v3902_v16  ;;  %v3891_v16 = vld [vmem:[#allocation5 + $0x58] sm:$0xff] }
 0x269   : > { %v8042_v62 = vpop.f32.mrf.mxu1 }
 0x26a   : > { %4083 = vmatprep.subr.bf16.mxu1 %v5653_v33 }
 0x26b   : > { %v8045_v41 = vpop.f32.mrf.mxu1  ;;  %4084 = vmatpush1.bf16.msra.mxu1 %v5652_v39 }
 0x26f   : > { %2997 = vmatmul.mubr.bf16.gmra.mxu0 %v8035_v6 }
 0x272   : > { %v5826_v46 = vpop.f32.mrf.mxu1 }
 0x274   : > { %v5827_v5 = vpop.f32.mrf.mxu1 }
 0x275   : > { %v8047_v19 = vadd.f32 %v5827_v5, %v5826_v46  ;;  %v8067_v46 = vld [vmem:[#allocation7 + $0x1f8] sm:$0xff] }
 0x276   : > { %v8049_v12 = vpop.f32.mrf.mxu1  ;;  %v8227_v5 = vld [vmem:[#allocation7 + $0x318] sm:$0xff] }
 0x278   : > { %v8051_v40 = vpop.f32.mrf.mxu1 }
 0x27d   : > { %v5832_v59 = vpop.f32.mrf.mxu1 }
 0x27f   : > { %v5833_v18 = vpop.f32.mrf.mxu1 }
 0x280   : > { %v8053_v48 = vadd.f32 %v5833_v18, %v5832_v59  ;;  %v5687_v59 = vcombine.high %v8065_v22, %v8067_v46  ;;  %v3899_v18 = vld [vmem:[#allocation5 + $0x158] sm:$0xff] }
 0x281   : > { %v5835_v24 = vpop.f32.mrf.mxu1 }
 0x282   : > { %4386 = vmatprep.subr.bf16.mxu0 %v5687_v59 }
 0x283   : > { %v5836_v52 = vpop.f32.mrf.mxu1 }
 0x284   : > { %v8055_v25 = vadd.f32 %v5836_v52, %v5835_v24  ;;  %v3900_v24 = vld [vmem:[#allocation5 + $0x178] sm:$0xff] }
 0x288   : > { %v5838_v47 = vpop.f32.mrf.mxu1 }
 0x28a   : > { %v5839_v26 = vpop.f32.mrf.mxu1 }
 0x28b   : > { %v8057_v51 = vadd.f32 %v5839_v26, %v5838_v47  ;;  %v5650_v47 = vcombine.low %v3899_v18, %v3900_v24  ;;  %v5651_v26 = vcombine.high %v3899_v18, %v3900_v24  ;;  %v5813_v24 = vadd.f32 %v8015_v2, %v8013_v7 }
 0x28c   : > { %v5841_v17 = vpop.f32.mrf.mxu1 }
 0x28d   : > { %4085 = vmatprep.subr.bf16.mxu1 %v5651_v26  ;;  %v3890_v26 = vld [vmem:[#allocation5 + $0x38] sm:$0xff] }
 0x28e   : > { %v5842_v50 = vpop.f32.mrf.mxu1  ;;  %4086 = vmatpush1.bf16.msra.mxu1 %v5650_v47  ;;  %v3889_v47 = vld [vmem:[#allocation5 + $0x18] sm:$0xff] }
 0x28f   : > { %v8059_v63 = vadd.f32 %v5842_v50, %v5841_v17  ;;  %v3897_v17 = vld [vmem:[#allocation5 + $0x118] sm:$0xff] }
 0x290   : > { %v3898_v50 = vld [vmem:[#allocation5 + $0x138] sm:$0xff] }
 0x291   : > { %v5648_v35 = vcombine.low %v3897_v17, %v3898_v50  ;;  %v5649_v58 = vcombine.high %v3897_v17, %v3898_v50  ;;  %v5640_v17 = vcombine.low %v3889_v47, %v3890_v26  ;;  %v5641_v50 = vcombine.high %v3889_v47, %v3890_v26  ;;  %v3914_v47 = vld [vmem:[#allocation5 + $0x338] sm:$0xff] }
 0x292   : > { %v5844_v20 = vpop.f32.mrf.mxu1 }
 0x293   : > { %4087 = vmatprep.subr.bf16.mxu1 %v5649_v58 }
 0x294   : > { %v5845_v42 = vpop.f32.mrf.mxu1  ;;  %4088 = vmatpush1.bf16.msra.mxu1 %v5648_v35 }
 0x295   : > { %v8061_v27 = vadd.f32 %v5845_v42, %v5844_v20  ;;  %v5646_v20 = vcombine.low %v3895_v29, %v3896_v56  ;;  %4089 = vmatprep.subr.bf16.mxu1 %v5647_v3  ;;  %v3894_v42 = vld [vmem:[#allocation5 + $0xb8] sm:$0xff] }
 0x296   : > { %v5847_v49 = vpop.f32.mrf.mxu1  ;;  %v5644_v28 = vcombine.low %v3893_v13, %v3894_v42  ;;  %v5645_v0 = vcombine.high %v3893_v13, %v3894_v42  ;;  %v3920_v56 = vld [vmem:[#allocation5 + $0x3f8] sm:$0xff]  ;;  %v5819_v13 = vadd.f32 %v8031_v38, %v8029_v11 }
 0x298   : > { %v5848_v9 = vpop.f32.mrf.mxu1  ;;  %4090 = vmatpush1.bf16.msra.mxu1 %v5646_v20 }
 0x299   : > { %v8063_v45 = vadd.f32 %v5848_v9, %v5847_v49  ;;  %4091 = vmatprep.subr.bf16.mxu1 %v5645_v0  ;;  %v3892_v9 = vld [vmem:[#allocation5 + $0x78] sm:$0xff] }
 0x29a   : > { %v5642_v33 = vcombine.low %v3891_v16, %v3892_v9  ;;  %v5643_v59 = vcombine.high %v3891_v16, %v3892_v9  ;;  %v3918_v0 = vld [vmem:[#allocation5 + $0x3b8] sm:$0xff] }
 0x29b   : > { %v3915_v9 = vld [vmem:[#allocation5 + $0x358] sm:$0xff] }
 0x29c   : > { %4092 = vmatpush1.bf16.msra.mxu1 %v5644_v28  ;;  %v3917_v28 = vld [vmem:[#allocation5 + $0x398] sm:$0xff] }
 0x29d   : > { %v5850_v52 = vpop.f32.mrf.mxu1  ;;  %4093 = vmatprep.subr.bf16.mxu1 %v5643_v59 }
 0x29f   : > { %v5851_v53 = vpop.f32.mrf.mxu1 }
 0x2a0   : > { %v8073_v30 = vadd.f32 %v5851_v53, %v5850_v52  ;;  %4094 = vmatpush1.bf16.msra.mxu1 %v5642_v33 }
 0x2a1   : > { %4095 = vmatprep.subr.bf16.mxu1 %v5641_v50 }
 0x2a4   : > { %4096 = vmatpush1.bf16.msra.mxu1 %v5640_v17 }
 0x2a7   : > { %v5744_v4 = vpop.f32.mrf.mxu0 }
 0x2a9   : > { %v5745_v8 = vpop.f32.mrf.mxu0 }
 0x2aa   : > { %v5746_v49 = vadd.f32 %v5745_v8, %v5744_v4 }
 0x2ab   : > { %v5747_v34 = vpop.f32.mrf.mxu0 }
 0x2ac   : > { %v8076_v39 = vadd.f32 %v8011_v61, %v5746_v49  ;;  %v3919_v61 = vld [vmem:[#allocation5 + $0x3d8] sm:$0xff]  ;;  %v5668_v49 = vcombine.low %v3917_v28, %v3918_v0 }
 0x2ad   : > { %v5748_v18 = vpop.f32.mrf.mxu0  ;;  %v5670_v3 = vcombine.low %v3919_v61, %v3920_v56  ;;  %v5671_v4 = vcombine.high %v3919_v61, %v3920_v56  ;;  %v3912_v56 = vld [vmem:[#allocation5 + $0x2f8] sm:$0xff] }
 0x2ae   : > { %v5749_v52 = vadd.f32 %v5748_v18, %v5747_v34  ;;  %v5669_v34 = vcombine.high %v3917_v28, %v3918_v0 }
 0x2af   : > { %4097 = vmatprep.subr.bf16.mxu1 %v5671_v4 }
 0x2b0   : > { %v8080_v53 = vadd.f32 %v5813_v24, %v5749_v52  ;;  %4098 = vmatpush2.bf16.msra.mxu1 %v5670_v3  ;;  %v3913_v52 = vld [vmem:[#allocation5 + $0x318] sm:$0xff] }
 0x2b1   : > { %4099 = vmatprep.subr.bf16.mxu1 %v5669_v34  ;;  %v5665_v38 = vcombine.high %v3913_v52, %v3914_v47  ;;  %v5664_v50 = vcombine.low %v3913_v52, %v3914_v47  ;;  %v3907_v34 = vld [vmem:[#allocation5 + $0x258] sm:$0xff] }
 0x2b2   : > { %v5750_v35 = vpop.f32.mrf.mxu0 }
 0x2b4   : > { %v5751_v58 = vpop.f32.mrf.mxu0  ;;  %4100 = vmatpush2.bf16.msra.mxu1 %v5668_v49 }
 0x2b5   : > { %v5752_v29 = vadd.f32 %v5751_v58, %v5750_v35  ;;  %v5825_v35 = vadd.f32 %v8045_v41, %v8042_v62 }
 0x2b6   : > { %v5753_v20 = vpop.f32.mrf.mxu0 }
 0x2b7   : > { %v8083_v7 = vadd.f32 %v8027_v15, %v5752_v29  ;;  %v3916_v15 = vld [vmem:[#allocation5 + $0x378] sm:$0xff] }
 0x2b8   : > { %v5754_v2 = vpop.f32.mrf.mxu0  ;;  %v5666_v18 = vcombine.low %v3915_v9, %v3916_v15  ;;  %v5667_v24 = vcombine.high %v3915_v9, %v3916_v15  ;;  %v3911_v29 = vld [vmem:[#allocation5 + $0x2d8] sm:$0xff] }
 0x2b9   : > { %v5755_v42 = vadd.f32 %v5754_v2, %v5753_v20  ;;  %v5662_v3 = vcombine.low %v3911_v29, %v3912_v56  ;;  %v5663_v4 = vcombine.high %v3911_v29, %v3912_v56  ;;  %v3909_v2 = vld [vmem:[#allocation5 + $0x298] sm:$0xff] }
 0x2ba   : > { %4101 = vmatprep.subr.bf16.mxu1 %v5667_v24  ;;  %v3906_v24 = vld [vmem:[#allocation5 + $0x238] sm:$0xff] }
 0x2bb   : > { %v8087_v8 = vadd.f32 %v5819_v13, %v5755_v42  ;;  %4102 = vmatpush2.bf16.msra.mxu1 %v5666_v18  ;;  %v3905_v18 = vld [vmem:[#allocation5 + $0x218] sm:$0xff] }
 0x2bc   : > { %4103 = vmatprep.subr.bf16.mxu1 %v5665_v38  ;;  %v5657_v47 = vcombine.high %v3905_v18, %v3906_v24 }
 0x2bd   : > { %9405 = vst [vmem:[#allocation15_spill] sm:$0xff] %v8087_v8 }
 0x2be   : > { %v5756_v16 = vpop.f32.mrf.mxu0 }
 0x2bf   : > { %4104 = vmatpush2.bf16.msra.mxu1 %v5664_v50 }
 0x2c0   : > { %v5757_v33 = vpop.f32.mrf.mxu0  ;;  %4105 = vmatprep.subr.bf16.mxu1 %v5663_v4 }
 0x2c1   : > { %v5758_v59 = vadd.f32 %v5757_v33, %v5756_v16  ;;  %v5831_v16 = vadd.f32 %v8051_v40, %v8049_v12  ;;  %v3908_v33 = vld [vmem:[#allocation5 + $0x278] sm:$0xff] }
 0x2c2   : > { %v5759_v11 = vpop.f32.mrf.mxu0  ;;  %v5658_v15 = vcombine.low %v3907_v34, %v3908_v33 }
 0x2c3   : > { %v8090_v26 = vadd.f32 %v8040_v57, %v5758_v59  ;;  %v3910_v57 = vld [vmem:[#allocation5 + $0x2b8] sm:$0xff]  ;;  %4106 = vmatpush2.bf16.msra.mxu1 %v5662_v3  ;;  %v5659_v59 = vcombine.high %v3907_v34, %v3908_v33 }
 0x2c4   : > { %v5760_v17 = vpop.f32.mrf.mxu0  ;;  %v5661_v13 = vcombine.high %v3909_v2, %v3910_v57  ;;  %v5660_v0 = vcombine.low %v3909_v2, %v3910_v57  ;;  %v5853_v57 = vpop.f32.mrf.mxu1 }
 0x2c5   : > { %9406 = vst [vmem:[#allocation16_spill] sm:$0xff] %v8090_v26  ;;  %v5761_v58 = vadd.f32 %v5760_v17, %v5759_v11  ;;  %v5656_v11 = vcombine.low %v3905_v18, %v3906_v24 }
 0x2c6   : > { %4107 = vmatprep.subr.bf16.mxu1 %v5661_v13 }
 0x2c7   : > { %v8094_v61 = vadd.f32 %v5825_v35, %v5761_v58  ;;  %4108 = vmatpush2.bf16.msra.mxu1 %v5660_v0 }
 0x2c8   : > { %4109 = vmatprep.subr.bf16.mxu1 %v5659_v59 }
 0x2c9   : > { %9407 = vst [vmem:[#allocation17_spill] sm:$0xff] %v8094_v61 }
 0x2ca   : > { %v5762_v20 = vpop.f32.mrf.mxu0 }
 0x2cb   : > { %4110 = vmatpush2.bf16.msra.mxu1 %v5658_v15 }
 0x2cc   : > { %v5763_v42 = vpop.f32.mrf.mxu0  ;;  %4111 = vmatprep.subr.bf16.mxu1 %v5657_v47 }
 0x2cd   : > { %v5764_v28 = vadd.f32 %v5763_v42, %v5762_v20 }
 0x2ce   : > { %v5765_v49 = vpop.f32.mrf.mxu0 }
 0x2cf   : > { %v8097_v62 = vadd.f32 %v8047_v19, %v5764_v28  ;;  %4112 = vmatpush2.bf16.msra.mxu1 %v5656_v11 }
 0x2d0   : > { %v5766_v41 = vpop.f32.mrf.mxu0 }
 0x2d1   : > { %9408 = vst [vmem:[#allocation18_spill] sm:$0xff] %v8097_v62  ;;  %v5767_v9 = vadd.f32 %v5766_v41, %v5765_v49 }
 0x2d2   : > { %4114 = vmatmul.mubr.bf16.vlgmr.msra.gmra.mxu1 %v7953_v60 }
 0x2d3   : > { %v8101_v52 = vadd.f32 %v5831_v16, %v5767_v9  ;;  %4123 = vmatprep.mubr.bf16.mxu1 %v7958_v14 }
 0x2d5   : > { %9409 = vst [vmem:[#allocation19_spill] sm:$0xff] %v8101_v52 }
 0x2d6   : > { %v5768_v19 = vpop.f32.mrf.mxu0 }
 0x2d8   : > { %v5769_v38 = vpop.f32.mrf.mxu0 }
 0x2d9   : > { %v5770_v17 = vadd.f32 %v5769_v38, %v5768_v19  ;;  %v8134_v19 = vld [vmem:[#allocation7 + $0x198] sm:$0xff] }
 0x2da   : > { %v5771_v50 = vpop.f32.mrf.mxu0  ;;  %4124 = vmatmul.mubr.bf16.gmra.mxu1 %v7963_v54  ;;  %v8136_v38 = vld [vmem:[#allocation7 + $0x1b8] sm:$0xff] }
 0x2db   : > { %v8104_v12 = vadd.f32 %v8053_v48, %v5770_v17  ;;  %4133 = vmatprep.mubr.bf16.mxu1 %v7968_v23 }
 0x2dc   : > { %v5772_v40 = vpop.f32.mrf.mxu0 }
 0x2dd   : > { %9410 = vst [vmem:[#allocation20_spill] sm:$0xff] %v8104_v12  ;;  %v5773_v35 = vadd.f32 %v5772_v40, %v5771_v50  ;;  %v8138_v50 = vld [vmem:[#allocation7 + $0x158] sm:$0xff] }
 0x2de   : > { %v5774_v58 = vpop.f32.mrf.mxu0 }
 0x2df   : > { %v8109_v29 = vadd.f32 %v8055_v25, %v5773_v35  ;;  %v8144_v35 = vld [vmem:[#allocation7 + $0x118] sm:$0xff] }
 0x2e0   : > { %v5775_v56 = vpop.f32.mrf.mxu0 }
 0x2e1   : > { %9411 = vst [vmem:[#allocation21_spill] sm:$0xff] %v8109_v29  ;;  %v5776_v20 = vadd.f32 %v5775_v56, %v5774_v58  ;;  %v8146_v58 = vld [vmem:[#allocation7 + $0x138] sm:$0xff] }
 0x2e2   : > { %v5777_v3 = vpop.f32.mrf.mxu0  ;;  %4134 = vmatmul.mubr.bf16.gmra.mxu1 %v7973_v32 }
 0x2e3   : > { %v8112_v4 = vadd.f32 %v8057_v51, %v5776_v20  ;;  %v5854_v51 = vpop.f32.mrf.mxu1  ;;  %4143 = vmatprep.mubr.bf16.mxu1 %v7978_v43 }
 0x2e4   : > { %v5778_v2 = vpop.f32.mrf.mxu0  ;;  %v5855_v43 = vadd.f32 %v5854_v51, %v5853_v57  ;;  %v8214_v57 = vld [vmem:[#allocation7 + $0x378] sm:$0xff] }
 0x2e5   : > { %9412 = vst [vmem:[#allocation22_spill] sm:$0xff] %v8112_v4  ;;  %v5779_v48 = vadd.f32 %v5778_v2, %v5777_v3 }
 0x2e7   : > { %v8117_v60 = vadd.f32 %v8059_v63, %v5779_v48  ;;  %v5780_v14 = vpop.f32.mrf.mxu0 }
 0x2e9   : > { %9413 = vst [vmem:[#allocation23_spill] sm:$0xff] %v8117_v60  ;;  %v5781_v13 = vpop.f32.mrf.mxu0 }
 0x2ea   : > { %v5782_v25 = vadd.f32 %v5781_v13, %v5780_v14  ;;  %4144 = vmatmul.mubr.bf16.gmra.mxu1 %v7983_v37  ;;  %v8140_v37 = vld [vmem:[#allocation7 + $0x178] sm:$0xff] }
 0x2eb   : > { %v5783_v42 = vpop.f32.mrf.mxu0  ;;  %4153 = vmatprep.mubr.bf16.mxu1 %v7988_v31  ;;  %v8157_v13 = vld [vmem:[#allocation7 + $0xd8] sm:$0xff] }
 0x2ec   : > { %v8120_v28 = vadd.f32 %v8061_v27, %v5782_v25  ;;  %v8159_v25 = vld [vmem:[#allocation7 + $0xf8] sm:$0xff] }
 0x2ed   : > { %v5784_v0 = vpop.f32.mrf.mxu0  ;;  %v8212_v14 = vld [vmem:[#allocation7 + $0x358] sm:$0xff] }
 0x2ee   : > { %9414 = vst [vmem:[#allocation24_spill] sm:$0xff] %v8120_v28  ;;  %v5785_v54 = vadd.f32 %v5784_v0, %v5783_v42 }
 0x2ef   : > { %v5786_v49 = vpop.f32.mrf.mxu0  ;;  %v3233_v23 = vpop.f32.mrf.mxu1 }
 0x2f0   : > { %v8125_v63 = vadd.f32 %v8063_v45, %v5785_v54  ;;  %v3344_v59 = vmul.f32 %v3233_v23, %v3233_v23  ;;  %v8200_v23 = vld [vmem:[#allocation7 + $0x3b8] sm:$0xff] }
 0x2f1   : > { %v5787_v41 = vpop.f32.mrf.mxu0  ;;  %v3235_v34 = vpop.f32.mrf.mxu1 }
 0x2f2   : > { %9415 = vst [vmem:[#allocation25_spill] sm:$0xff] %v8125_v63  ;;  %v5788_v16 = vadd.f32 %v5787_v41, %v5786_v49  ;;  %v3345_v56 = vmul.f32 %v3235_v34, %v3235_v34  ;;  %4154 = vmatmul.mubr.bf16.gmra.mxu1 %v7993_v10  ;;  %v8166_v41 = vld [vmem:[#allocation7 + $0x98] sm:$0xff] }
 0x2f3   : > { %v5789_v9 = vpop.f32.mrf.mxu0  ;;  %v3237_v33 = vpop.f32.mrf.mxu1  ;;  %v8168_v34 = vld [vmem:[#allocation7 + $0xb8] sm:$0xff]  ;;  %4163 = vmatprep.mubr.bf16.mxu1 %v7998_v44 }
 0x2f4   : > { %v8128_v27 = vadd.f32 %v8073_v30, %v5788_v16  ;;  %v3346_v42 = vmul.f32 %v3237_v33, %v3237_v33  ;;  %v8170_v16 = vld [vmem:[#allocation7 + $0x58] sm:$0xff] }
 0x2f5   : > { %v5790_v32 = vpop.f32.mrf.mxu0  ;;  %v3239_v15 = vpop.f32.mrf.mxu1 }
 0x2f6   : > { %9416 = vst [vmem:[#allocation26_spill] sm:$0xff] %v8128_v27  ;;  %v5791_v18 = vadd.f32 %v5790_v32, %v5789_v9  ;;  %v3347_v9 = vmul.f32 %v3239_v15, %v3239_v15 }
 0x2f7   : > { %v2928_v24 = vpop.f32.mrf.mxu0  ;;  %v3243_v45 = vpop.f32.mrf.mxu1 }
 0x2f8   : > { %v8132_v47 = vadd.f32 %v5855_v43, %v5791_v18  ;;  %v3312_v11 = vmul.f32 %v2928_v24, %v2928_v24  ;;  %v3348_v32 = vmul.f32 %v3243_v45, %v3243_v45  ;;  %v8175_v43 = vld [vmem:[#allocation7 + $0x78] sm:$0xff] }
 0x2f9   : > { %v2930_v30 = vpop.f32.mrf.mxu0  ;;  %v3245_v17 = vpop.f32.mrf.mxu1  ;;  %v8179_v18 = vld [vmem:[#allocation7 + $0x38] sm:$0xff] }
 0x2fa   : > { %9417 = vst [vmem:[#allocation27_spill] sm:$0xff] %v8132_v47  ;;  %v8142_v40 = vadd.f32 %v3344_v59, %v3312_v11  ;;  %v3313_v31 = vmul.f32 %v2930_v30, %v2930_v30  ;;  %v8177_v59 = vld [vmem:[#allocation7 + $0x18] sm:$0xff]  ;;  %4164 = vmatmul.mubr.bf16.gmra.mxu1 %v8003_v55 }
 0x2fb   : > { %v2932_v20 = vpop.f32.mrf.mxu0  ;;  %v3247_v3 = vpop.f32.mrf.mxu1  ;;  %v8188_v45 = vld [vmem:[#allocation7 + $0x3d8] sm:$0xff]  ;;  %4173 = vmatprep.mubr.bf16.mxu1 %v8008_v36 }
 0x2fc   : > { %6285 = vrsqrt.f32 %v8142_v40  ;;  %v8162_v51 = vadd.f32 %v3345_v56, %v3313_v31  ;;  %v3314_v0 = vmul.f32 %v2932_v20, %v2932_v20  ;;  %v3349_v20 = vmul.f32 %v3245_v17, %v3245_v17  ;;  %v8229_v47 = vld [vmem:[#allocation7 + $0x338] sm:$0xff] }
 0x2fd   : > { %v2934_v54 = vpop.f32.mrf.mxu0  ;;  %v3249_v49 = vpop.f32.mrf.mxu1  ;;  %vm3410_vm0 = vcmp.eq.f32.partialorder %v8142_v40, inf  ;;  %vm3412_vm1 = vcmp.eq.f32.partialorder %v8142_v40, 0.0 }
 0x2fe   : > { %v3315_v10 = vmul.f32 %v2934_v54, %v2934_v54  ;;  %6287 = vrsqrt.f32 %v8162_v51  ;;  %v8182_v24 = vadd.f32 %v3346_v42, %v3314_v0  ;;  %v8196_v0 = vld [vmem:[#allocation7 + $0x3f8] sm:$0xff]  ;;  %vm3417_vm2 = vcmp.eq.f32.partialorder %v8162_v51, inf }
 0x2ff   : > { %v2938_v11 = vpop.f32.mrf.mxu0  ;;  %v3253_v30 = vpop.f32.mrf.mxu1  ;;  %v8198_v54 = vld [vmem:[#allocation7 + $0x398] sm:$0xff]  ;;  %vm3419_vm4 = vcmp.eq.f32.partialorder %v8162_v51, 0.0 }
 0x300   : > { %v8190_v31 = vadd.f32 %v3347_v9, %v3315_v10  ;;  %v3316_v56 = vmul.f32 %v2938_v11, %v2938_v11  ;;  %6289 = vrsqrt.f32 %v8182_v24  ;;  %v3351_v9 = vmul.f32 %v3249_v49, %v3249_v49 }
 0x301   : > { %v2940_v44 = vpop.f32.mrf.mxu0  ;;  %v3255_v15 = vpop.f32.mrf.mxu1  ;;  %v3413_v49 = vand.u32 2147483648, %v8142_v40  ;;  %vm3424_vm3 = vcmp.eq.f32.partialorder %v8182_v24, inf  ;;  %vm3426_vm5 = vcmp.eq.f32.partialorder %v8182_v24, 0.0  ;;  %v9419_v26 = vand.u32 2147483648, %v8182_v24 }
 0x302   : > { %6291 = vrsqrt.f32 %v8190_v31  ;;  %v8210_v42 = vadd.f32 %v3348_v32, %v3316_v56  ;;  %v3317_v33 = vmul.f32 %v2940_v44, %v2940_v44  ;;  %v3350_v56 = vmul.f32 %v3247_v3, %v3247_v3  ;;  %4174 = vmatmul.mubr.bf16.gmra.mxu1 %v8019_v21 }
 0x303   : > { %v2942_v2 = vpop.f32.mrf.mxu0  ;;  %v3257_v48 = vpop.f32.mrf.mxu1  ;;  %vm3431_vm6 = vcmp.eq.f32.partialorder %v8190_v31, inf  ;;  %vm3433_vm7 = vcmp.eq.f32.partialorder %v8190_v31, 0.0  ;;  %4183 = vmatprep.mubr.bf16.mxu1 %v8024_v1 }
 0x304   : > { %6293 = vrsqrt.f32 %v8210_v42  ;;  %v8225_v44 = vadd.f32 %v3349_v20, %v3317_v33  ;;  %v3318_v11 = vmul.f32 %v2942_v2, %v2942_v2  ;;  %v3352_v2 = vmul.f32 %v3253_v30, %v3253_v30 }
 0x305   : > { %v2944_v10 = vpop.f32.mrf.mxu0  ;;  %v3259_v27 = vpop.f32.mrf.mxu1  ;;  %vm3438_vm8 = vcmp.eq.f32.partialorder %v8210_v42, inf  ;;  %vm3440_vm10 = vcmp.eq.f32.partialorder %v8210_v42, 0.0 }
 0x306   : > { %6295 = vrsqrt.f32 %v8225_v44  ;;  %v8240_v20 = vadd.f32 %v3350_v56, %v3318_v11  ;;  %v3319_v55 = vmul.f32 %v2944_v10, %v2944_v10  ;;  %v3353_v11 = vmul.f32 %v3255_v15, %v3255_v15 }
 0x307   : > { %v2948_v32 = vpop.f32.mrf.mxu0  ;;  %v3263_v17 = vpop.f32.mrf.mxu1  ;;  %vm3445_vm9 = vcmp.eq.f32.partialorder %v8225_v44, inf  ;;  %vm3447_vm12 = vcmp.eq.f32.partialorder %v8225_v44, 0.0 }
 0x308   : > { %6297 = vrsqrt.f32 %v8240_v20  ;;  %v8248_v36 = vadd.f32 %v3351_v9, %v3319_v55  ;;  %v3320_v33 = vmul.f32 %v2948_v32, %v2948_v32  ;;  %v3354_v32 = vmul.f32 %v3257_v48, %v3257_v48 }
 0x309   : > { %v6286_v30 = vpop.eup %6285  ;;  %v2950_v56 = vpop.f32.mrf.mxu0  ;;  %vm3452_vm11 = vcmp.eq.f32.partialorder %v8240_v20, inf  ;;  %vm3454_vm14 = vcmp.eq.f32.partialorder %v8240_v20, 0.0 }
 0x30a   : > { %v3265_v63 = vpop.f32.mrf.mxu1  ;;  %v3409_v60 = vmul.f32 %v6286_v30, %v8142_v40  ;;  %6299 = vrsqrt.f32 %v8248_v36  ;;  %v8256_v3 = vadd.f32 %v3352_v2, %v3320_v33  ;;  %v3321_v9 = vmul.f32 %v2950_v56, %v2950_v56  ;;  %4184 = vmatmul.mubr.bf16.gmra.mxu1 %v8035_v6 }
 0x30b   : > { %v2952_v55 = vpop.f32.mrf.mxu0  ;;  %v6288_v28 = vpop.eup %6287  ;;  %v3355_v30 = vmul.f32 %v3259_v27, %v3259_v27  ;;  %v3356_v56 = vmul.f32 %v3263_v17, %v3263_v17  ;;  %v3357_v12 = vmul.f32 %v3265_v63, %v3265_v63  ;;  %vm3459_vm13 = vcmp.eq.f32.partialorder %v8248_v36, inf }
 0x30c   : > { %v3267_v4 = vpop.f32.mrf.mxu1  ;;  %6301 = vrsqrt.f32 %v8256_v3  ;;  %v8264_v33 = vadd.f32 %v3353_v11, %v3321_v9  ;;  %v3322_v2 = vmul.f32 %v2952_v55, %v2952_v55  ;;  %v3411_v48 = vsel %vm3410_vm0, %v8142_v40, %v3409_v60 }
 0x30d   : > { %v2954_v15 = vpop.f32.mrf.mxu0  ;;  %v3416_v29 = vmul.f32 %v6288_v28, %v8162_v51  ;;  %v6290_v11 = vpop.eup %6289  ;;  %v3358_v52 = vmul.f32 %v3267_v4, %v3267_v4  ;;  %vm3461_vm15 = vcmp.eq.f32.partialorder %v8248_v36, 0.0  ;;  %vm3466_vm0 = vcmp.eq.f32.partialorder %v8256_v3, inf }
 0x30e   : > { %v3269_v10 = vpop.f32.mrf.mxu1  ;;  %6303 = vrsqrt.f32 %v8264_v33  ;;  %v8276_v9 = vadd.f32 %v3354_v32, %v3322_v2  ;;  %v3323_v55 = vmul.f32 %v2954_v15, %v2954_v15  ;;  %v3423_v17 = vmul.f32 %v6290_v11, %v8182_v24 }
 0x30f   : > { %v6292_v60 = vpop.eup %6291  ;;  %v2958_v28 = vpop.f32.mrf.mxu0  ;;  %v3418_v15 = vsel %vm3417_vm2, %v8162_v51, %v3416_v29  ;;  %v3414_v2 = vsel %vm3412_vm1, %v3413_v49, %v3411_v48  ;;  %v3359_v11 = vmul.f32 %v3269_v10, %v3269_v10  ;;  %v9418_v10 = vand.u32 2147483648, %v8162_v51 }
 0x310   : > { %v3273_v62 = vpop.f32.mrf.mxu1  ;;  %v8283_v1 = vadd.f32 %v3355_v30, %v3323_v55  ;;  %v3324_v32 = vmul.f32 %v2958_v28, %v2958_v28  ;;  %v3425_v4 = vsel %vm3424_vm3, %v8182_v24, %v3423_v17  ;;  %6305 = vrsqrt.f32 %v8276_v9 }
 0x311   : > { %v6294_v63 = vpop.eup %6293  ;;  %v2960_v30 = vpop.f32.mrf.mxu0  ;;  %v3430_v28 = vmul.f32 %v6292_v60, %v8190_v31  ;;  %v3360_v49 = vmul.f32 %v3273_v62, %v3273_v62  ;;  %v3421_v60 = vsel %vm3419_vm4, %v9418_v10, %v3418_v15  ;;  %v3476_v62 = vand.u32 2147483648, %v8264_v33 }
 0x312   : > { %v3275_v55 = vpop.f32.mrf.mxu1  ;;  %6307 = vrsqrt.f32 %v8283_v1  ;;  %v8298_v29 = vadd.f32 %v3356_v56, %v3324_v32  ;;  %v3325_v40 = vmul.f32 %v2960_v30, %v2960_v30  ;;  %v3437_v56 = vmul.f32 %v6294_v63, %v8210_v42 }
 0x313   : > { %v6296_v48 = vpop.eup %6295  ;;  %v2962_v17 = vpop.f32.mrf.mxu0  ;;  %v3432_v21 = vsel %vm3431_vm6, %v8190_v31, %v3430_v28  ;;  %v3361_v61 = vmul.f32 %v3275_v55, %v3275_v55  ;;  %v3428_v8 = vsel %vm3426_vm5, %v9419_v26, %v3425_v4  ;;  %v9420_v63 = vand.u32 2147483648, %v8190_v31 }
 0x314   : > { %v3277_v27 = vpop.f32.mrf.mxu1  ;;  %v8311_v32 = vadd.f32 %v3357_v12, %v3325_v40  ;;  %v3326_v30 = vmul.f32 %v2962_v17, %v2962_v17  ;;  %6309 = vrsqrt.f32 %v8298_v29  ;;  %v3444_v55 = vmul.f32 %v6296_v48, %v8225_v44 }
 0x315   : > { %v6298_v51 = vpop.eup %6297  ;;  %v2964_v15 = vpop.f32.mrf.mxu0  ;;  %v3435_v12 = vsel %vm3433_vm7, %v9420_v63, %v3432_v21  ;;  %v3439_v26 = vsel %vm3438_vm8, %v8210_v42, %v3437_v56  ;;  %vm3473_vm1 = vcmp.eq.f32.partialorder %v8264_v33, inf  ;;  %v3362_v31 = vmul.f32 %v3277_v27, %v3277_v27 }
 0x316   : > { %v3279_v28 = vpop.f32.mrf.mxu1  ;;  %6311 = vrsqrt.f32 %v8311_v32  ;;  %v8330_v6 = vadd.f32 %v3358_v52, %v3326_v30  ;;  %v3327_v24 = vmul.f32 %v2964_v15, %v2964_v15  ;;  %v3633_v4 = vpack.c.bf16 %v3435_v12, %v3421_v60 }
 0x317   : > { %v6300_v40 = vpop.eup %6299  ;;  %v2968_v21 = vpop.f32.mrf.mxu0  ;;  %v3632_v17 = vpack.c.bf16 %v3428_v8, %v3414_v2  ;;  %v3446_v48 = vsel %vm3445_vm9, %v8225_v44, %v3444_v55  ;;  %v3451_v56 = vmul.f32 %v6298_v51, %v8240_v20  ;;  %v3363_v30 = vmul.f32 %v3279_v28, %v3279_v28 }
 0x318   : > { %v3283_v10 = vpop.f32.mrf.mxu1  ;;  %v8337_v63 = vadd.f32 %v3359_v11, %v3327_v24  ;;  %3808 = vmatprep.mubr.bf16.mxu0 %v3633_v4  ;;  %v3328_v52 = vmul.f32 %v2968_v21, %v2968_v21  ;;  %v9421_v60 = vand.u32 2147483648, %v8210_v42  ;;  %vm3475_vm2 = vcmp.eq.f32.partialorder %v8264_v33, 0.0 }
 0x319   : > { %v6302_v8 = vpop.eup %6301  ;;  %6313 = vrsqrt.f32 %v8330_v6  ;;  %3809 = vmatmul.mubr.bf16.vlgmr.msra.gmra.mxu0 %v3632_v17  ;;  %v2970_v27 = vpop.f32.mrf.mxu0  ;;  %v3364_v2 = vmul.f32 %v3283_v10, %v3283_v10  ;;  %v3458_v11 = vmul.f32 %v6300_v40, %v8248_v36  ;;  %v3453_v51 = vsel %vm3452_vm11, %v8240_v20, %v3451_v56 }
 0x31a   : > { %v3442_v15 = vsel %vm3440_vm10, %v9421_v60, %v3439_v26  ;;  %v3285_v12 = vpop.f32.mrf.mxu1  ;;  %6315 = vrsqrt.f32 %v8337_v63  ;;  %v8350_v28 = vadd.f32 %v3360_v49, %v3328_v52  ;;  %v9422_v42 = vcombine.low %v8065_v22, %v8067_v46 }
 0x31b   : > { %v3329_v55 = vmul.f32 %v2970_v27, %v2970_v27  ;;  %v9423_v26 = vand.u32 2147483648, %v8225_v44  ;;  %vm3487_vm3 = vcmp.eq.f32.partialorder %v8283_v1, inf  ;;  %v6304_v4 = vpop.eup %6303  ;;  %v2972_v40 = vpop.f32.mrf.mxu0  ;;  %v9424_v21 = vcombine.high %v8134_v19, %v8136_v38 }
 0x31c   : > { %4387 = vmatpush1.bf16.msra.mxu0 %v9422_v42  ;;  %v3365_v49 = vmul.f32 %v3285_v12, %v3285_v12  ;;  %v3287_v17 = vpop.f32.mrf.mxu1  ;;  %v3460_v22 = vsel %vm3459_vm13, %v8248_v36, %v3458_v11  ;;  %v9425_v46 = vand.u32 2147483648, %v8240_v20  ;;  %v3465_v10 = vmul.f32 %v6302_v8, %v8256_v3 }
 0x31d   : > { %v3449_v24 = vsel %vm3447_vm12, %v9423_v26, %v3446_v48  ;;  %4388 = vmatprep.subr.bf16.mxu0 %v9424_v21  ;;  %6317 = vrsqrt.f32 %v8350_v28  ;;  %v8372_v48 = vadd.f32 %v3361_v61, %v3329_v55  ;;  %v3330_v56 = vmul.f32 %v2972_v40, %v2972_v40  ;;  %v2974_v60 = vpop.f32.mrf.mxu0  ;;  %v6306_v42 = vpop.eup %6305 }
 0x31e   : > { %v3456_v44 = vsel %vm3454_vm14, %v9425_v46, %v3453_v51  ;;  %vm3489_vm4 = vcmp.eq.f32.partialorder %v8283_v1, 0.0  ;;  %v3490_v52 = vand.u32 2147483648, %v8283_v1  ;;  %v3366_v27 = vmul.f32 %v3287_v17, %v3287_v17  ;;  %v3289_v51 = vpop.f32.mrf.mxu1 }
 0x31f   : > { %v9426_v12 = vand.u32 2147483648, %v8248_v36  ;;  %v3634_v20 = vpack.c.bf16 %v3456_v44, %v3442_v15  ;;  %v3472_v8 = vmul.f32 %v6304_v4, %v8264_v33  ;;  %v8381_v26 = vadd.f32 %v3362_v31, %v3330_v56  ;;  %v6308_v17 = vpop.eup %6307  ;;  %v2978_v36 = vpop.f32.mrf.mxu0 }
 0x320   : > { %v9427_v61 = vcombine.low %v8134_v19, %v8136_v38  ;;  %v3331_v55 = vmul.f32 %v2974_v60, %v2974_v60  ;;  %v3467_v21 = vsel %vm3466_vm0, %v8256_v3, %v3465_v10  ;;  %6319 = vrsqrt.f32 %v8372_v48  ;;  %v3293_v4 = vpop.f32.mrf.mxu1 }
 0x321   : > { %v3463_v11 = vsel %vm3461_vm15, %v9426_v12, %v3460_v22  ;;  %v9428_v15 = vcombine.high %v8138_v50, %v8140_v37  ;;  %v3367_v31 = vmul.f32 %v3289_v51, %v3289_v51  ;;  %v3474_v19 = vsel %vm3473_vm1, %v8264_v33, %v3472_v8  ;;  %v2980_v46 = vpop.f32.mrf.mxu0 }
 0x322   : > { %4389 = vmatpush1.bf16.msra.mxu0 %v9427_v61  ;;  %v3635_v40 = vpack.c.bf16 %v3463_v11, %v3449_v24  ;;  %vm3468_vm5 = vcmp.eq.f32.partialorder %v8256_v3, 0.0  ;;  %6321 = vrsqrt.f32 %v8381_v26  ;;  %v8398_v38 = vadd.f32 %v3363_v30, %v3331_v55  ;;  %v3295_v10 = vpop.f32.mrf.mxu1  ;;  %v8407_v11 = vpop.eup %6309 }
 0x323   : > { %4390 = vmatprep.subr.bf16.mxu0 %v9428_v15  ;;  %v3332_v24 = vmul.f32 %v2978_v36, %v2978_v36  ;;  %v3469_v22 = vand.u32 2147483648, %v8256_v3  ;;  %v3368_v44 = vmul.f32 %v3293_v4, %v3293_v4  ;;  %v3477_v56 = vsel %vm3475_vm2, %v3476_v62, %v3474_v19  ;;  %v6312_v33 = vpop.eup %6311  ;;  %v2982_v62 = vpop.f32.mrf.mxu0 }
 0x324   : > { %3816 = vmatprep.mubr.bf16.mxu0 %v3635_v40  ;;  %v3486_v60 = vmul.f32 %v6308_v17, %v8283_v1  ;;  %v3479_v12 = vmul.f32 %v6306_v42, %v8276_v9  ;;  %6323 = vrsqrt.f32 %v8398_v38  ;;  %v3333_v51 = vmul.f32 %v2980_v46, %v2980_v46  ;;  %v3297_v55 = vpop.f32.mrf.mxu1 }
 0x325   : > { %3817 = vmatmul.mubr.bf16.gmra.mxu0 %v3634_v20  ;;  %v8410_v30 = vadd.f32 %v3364_v2, %v3332_v24  ;;  %v9429_v20 = vcombine.low %v8138_v50, %v8140_v37  ;;  %v3470_v8 = vsel %vm3468_vm5, %v3469_v22, %v3467_v21  ;;  %v9430_v61 = vcombine.high %v8144_v35, %v8146_v58  ;;  %v2984_v40 = vpop.f32.mrf.mxu0 }
 0x326   : > { %v3369_v42 = vmul.f32 %v3295_v10, %v3295_v10  ;;  %v3488_v2 = vsel %vm3487_vm3, %v8283_v1, %v3486_v60  ;;  %vm3480_vm6 = vcmp.eq.f32.partialorder %v8276_v9, inf  ;;  %vm3482_vm7 = vcmp.eq.f32.partialorder %v8276_v9, 0.0  ;;  %v3299_v15 = vpop.f32.mrf.mxu1  ;;  %v6314_v19 = vpop.eup %6313 }
 0x327   : > { %4391 = vmatpush1.bf16.msra.mxu0 %v9429_v20  ;;  %6325 = vrsqrt.f32 %v8410_v30  ;;  %v8426_v50 = vadd.f32 %v3365_v49, %v3333_v51  ;;  %v3334_v37 = vmul.f32 %v2982_v62, %v2982_v62  ;;  %v3483_v3 = vand.u32 2147483648, %v8276_v9  ;;  %v6316_v10 = vpop.eup %6315  ;;  %v2988_v1 = vpop.f32.mrf.mxu0 }
 0x328   : > { %4392 = vmatprep.subr.bf16.mxu0 %v9430_v61  ;;  %v3370_v21 = vmul.f32 %v3297_v55, %v3297_v55  ;;  %v3491_v17 = vsel %vm3489_vm4, %v3490_v52, %v3488_v2  ;;  %v3481_v36 = vsel %vm3480_vm6, %v8276_v9, %v3479_v12  ;;  %v3500_v4 = vmul.f32 %v6312_v33, %v8311_v32  ;;  %v3303_v12 = vpop.f32.mrf.mxu1 }
 0x329   : > { %v8433_v24 = vadd.f32 %v3366_v27, %v3334_v37  ;;  %v9431_v49 = vcombine.low %v8144_v35, %v8146_v58  ;;  %v3335_v22 = vmul.f32 %v2984_v40, %v2984_v40  ;;  %v3637_v46 = vpack.c.bf16 %v3491_v17, %v3477_v56  ;;  %v2990_v9 = vpop.f32.mrf.mxu0 }
 0x32a   : > { %vm3501_vm8 = vcmp.eq.f32.partialorder %v8311_v32, inf  ;;  %6327 = vrsqrt.f32 %v8426_v50  ;;  %v3484_v52 = vsel %vm3482_vm7, %v3483_v3, %v3481_v36  ;;  %v9432_v60 = vcombine.high %v8157_v13, %v8159_v25  ;;  %v8449_v51 = vpop.eup %6317  ;;  %v3305_v62 = vpop.f32.mrf.mxu1 }
 0x32b   : > { %4393 = vmatpush1.bf16.msra.mxu0 %v9431_v49  ;;  %v3371_v27 = vmul.f32 %v3299_v15, %v3299_v15  ;;  %v3502_v35 = vsel %vm3501_vm8, %v8311_v32, %v3500_v4  ;;  %v8446_v58 = vadd.f32 %v3367_v31, %v3335_v22  ;;  %3824 = vmatprep.mubr.bf16.mxu0 %v3637_v46  ;;  %vm3503_vm9 = vcmp.eq.f32.partialorder %v8311_v32, 0.0  ;;  %v2992_v37 = vpop.f32.mrf.mxu0 }
 0x32c   : > { %4394 = vmatprep.subr.bf16.mxu0 %v9432_v60  ;;  %v3336_v56 = vmul.f32 %v2988_v1, %v2988_v1  ;;  %v3636_v20 = vpack.c.bf16 %v3484_v52, %v3470_v8  ;;  %6329 = vrsqrt.f32 %v8433_v24  ;;  %v3372_v33 = vmul.f32 %v3303_v12, %v3303_v12  ;;  %v3307_v40 = vpop.f32.mrf.mxu1 }
 0x32d   : > { %v3504_v61 = vand.u32 2147483648, %v8311_v32  ;;  %v3514_v55 = vmul.f32 %v6316_v10, %v8337_v63  ;;  %6331 = vrsqrt.f32 %v8446_v58  ;;  %v3337_v2 = vmul.f32 %v2990_v9, %v2990_v9  ;;  %v2994_v32 = vpop.f32.mrf.mxu0 }
 0x32e   : > { %v8455_v31 = vadd.f32 %v3368_v44, %v3336_v56  ;;  %3825 = vmatmul.mubr.bf16.gmra.mxu0 %v3636_v20  ;;  %vm3515_vm10 = vcmp.eq.f32.partialorder %v8337_v63, inf  ;;  %v9433_v8 = vcombine.low %v8157_v13, %v8159_v25  ;;  %v3373_v3 = vmul.f32 %v3305_v62, %v3305_v62  ;;  %v6320_v44 = vpop.eup %6319 }
 0x32f   : > { %v3505_v17 = vsel %vm3503_vm9, %v3504_v61, %v3502_v35  ;;  %v3516_v36 = vsel %vm3515_vm10, %v8337_v63, %v3514_v55  ;;  %v3518_v15 = vand.u32 2147483648, %v8337_v63  ;;  %v8466_v4 = vadd.f32 %v3369_v42, %v3337_v2  ;;  %v8472_v25 = vpop.eup %6321  ;;  %v2998_v12 = vpop.f32.mrf.mxu0 }
 0x330   : > { %4395 = vmatpush1.bf16.msra.mxu0 %v9433_v8  ;;  %6333 = vrsqrt.f32 %v8455_v31  ;;  %v3338_v49 = vmul.f32 %v2992_v37, %v2992_v37  ;;  %v9434_v13 = vcombine.high %v8166_v41, %v8168_v34  ;;  %vm3517_vm11 = vcmp.eq.f32.partialorder %v8337_v63, 0.0 }
 0x331   : > { %v3374_v22 = vmul.f32 %v3307_v40, %v3307_v40  ;;  %v3519_v46 = vsel %vm3517_vm11, %v3518_v15, %v3516_v36  ;;  %v3493_v10 = vmul.f32 %v8407_v11, %v8298_v29  ;;  %vm3494_vm12 = vcmp.eq.f32.partialorder %v8298_v29, inf  ;;  %v6324_v60 = vpop.eup %6323  ;;  %v3000_v61 = vpop.f32.mrf.mxu0 }
 0x332   : > { %4396 = vmatprep.subr.bf16.mxu0 %v9434_v13  ;;  %v8477_v1 = vadd.f32 %v3370_v21, %v3338_v49  ;;  %v3339_v42 = vmul.f32 %v2994_v32, %v2994_v32  ;;  %v3639_v52 = vpack.c.bf16 %v3519_v46, %v3505_v17  ;;  %vm3496_vm13 = vcmp.eq.f32.partialorder %v8298_v29, 0.0  ;;  %v3309_v21 = vpop.f32.mrf.mxu1 }
 0x333   : > { %6335 = vrsqrt.f32 %v8466_v4  ;;  %v9435_v63 = vcombine.low %v8166_v41, %v8168_v34  ;;  %v3495_v35 = vsel %vm3494_vm12, %v8298_v29, %v3493_v10  ;;  %v3497_v11 = vand.u32 2147483648, %v8298_v29  ;;  %v3002_v17 = vpop.f32.mrf.mxu0 }
 0x334   : > { %v3507_v56 = vmul.f32 %v6314_v19, %v8330_v6  ;;  %6337 = vrsqrt.f32 %v8477_v1  ;;  %v8488_v20 = vadd.f32 %v3371_v27, %v3339_v42  ;;  %3832 = vmatprep.mubr.bf16.mxu0 %v3639_v52  ;;  %v3340_v9 = vmul.f32 %v2998_v12, %v2998_v12  ;;  %v8494_v34 = vpop.eup %6325 }
 0x335   : > { %4397 = vmatpush1.bf16.msra.mxu0 %v9435_v63  ;;  %vm3508_vm14 = vcmp.eq.f32.partialorder %v8330_v6, inf  ;;  %v9436_v41 = vcombine.high %v8170_v16, %v8175_v43  ;;  %v3498_v62 = vsel %vm3496_vm13, %v3497_v11, %v3495_v35  ;;  %vm3510_vm15 = vcmp.eq.f32.partialorder %v8330_v6, 0.0 }
 0x336   : > { %v3509_v19 = vsel %vm3508_vm14, %v8330_v6, %v3507_v56  ;;  %v3511_v27 = vand.u32 2147483648, %v8330_v6  ;;  %v8501_v55 = vadd.f32 %v3372_v33, %v3340_v9  ;;  %v3375_v2 = vmul.f32 %v3309_v21, %v3309_v21 }
 0x337   : > { %4398 = vmatprep.subr.bf16.mxu0 %v9436_v41  ;;  %v3341_v8 = vmul.f32 %v3000_v61, %v3000_v61  ;;  %v3528_v37 = vmul.f32 %v6320_v44, %v8372_v48  ;;  %6339 = vrsqrt.f32 %v8488_v20  ;;  %v9437_v29 = vcombine.low %v8170_v16, %v8175_v43  ;;  %v6328_v6 = vpop.eup %6327  ;;  %v3004_v16 = vpop.f32.mrf.mxu0 }
 0x338   : > { %v3512_v40 = vsel %vm3510_vm15, %v3511_v27, %v3509_v19  ;;  %vm3529_vm0 = vcmp.eq.f32.partialorder %v8372_v48, inf  ;;  %vm3531_vm1 = vcmp.eq.f32.partialorder %v8372_v48, 0.0  ;;  %v3342_v15 = vmul.f32 %v3002_v17, %v3002_v17  ;;  %v8563_v27 = vld [vmem:[#allocation7 + $0x2d8] sm:$0xff] }
 0x339   : > { %4399 = vmatpush1.bf16.msra.mxu0 %v9437_v29  ;;  %v3638_v36 = vpack.c.bf16 %v3512_v40, %v3498_v62  ;;  %v8510_v33 = vadd.f32 %v3373_v3, %v3341_v8  ;;  %v9438_v44 = vcombine.high %v8177_v59, %v8179_v18  ;;  %v3532_v49 = vand.u32 2147483648, %v8372_v48  ;;  %v6330_v32 = vpop.eup %6329 }
 0x33a   : > { %6341 = vrsqrt.f32 %v8501_v55  ;;  %v3530_v43 = vsel %vm3529_vm0, %v8372_v48, %v3528_v37  ;;  %v3542_v13 = vmul.f32 %v6324_v60, %v8398_v38  ;;  %vm3543_vm2 = vcmp.eq.f32.partialorder %v8398_v38, inf  ;;  %v6332_v10 = vpop.eup %6331 }
 0x33b   : > { %4400 = vmatprep.subr.bf16.mxu0 %v9438_v44  ;;  %3833 = vmatmul.mubr.bf16.gmra.mxu0 %v3638_v36  ;;  %6343 = vrsqrt.f32 %v8510_v33  ;;  %v8521_v3 = vadd.f32 %v3374_v22, %v3342_v15  ;;  %v3343_v46 = vmul.f32 %v3004_v16, %v3004_v16  ;;  %vm3545_vm3 = vcmp.eq.f32.partialorder %v8398_v38, 0.0 }
 0x33c   : > { %v9439_v42 = vcombine.low %v8177_v59, %v8179_v18  ;;  %v3533_v52 = vsel %vm3531_vm1, %v3532_v49, %v3530_v43  ;;  %v3544_v60 = vsel %vm3543_vm2, %v8398_v38, %v3542_v13  ;;  %v3546_v63 = vand.u32 2147483648, %v8398_v38 }
 0x33d   : > { %v3521_v12 = vmul.f32 %v8449_v51, %v8350_v28  ;;  %6345 = vrsqrt.f32 %v8521_v3  ;;  %v8534_v22 = vadd.f32 %v3375_v2, %v3343_v46  ;;  %vm3522_vm4 = vcmp.eq.f32.partialorder %v8350_v28, inf  ;;  %v8541_v18 = vpop.eup %6333 }
 0x33e   : > { %4401 = vmatpush1.bf16.msra.mxu0 %v9439_v42  ;;  %v3525_v35 = vand.u32 2147483648, %v8350_v28  ;;  %v9440_v59 = vcombine.high %v8188_v45, %v8196_v0  ;;  %v3547_v48 = vsel %vm3545_vm3, %v3546_v63, %v3544_v60  ;;  %vm3524_vm5 = vcmp.eq.f32.partialorder %v8350_v28, 0.0 }
 0x33f   : > { %v3523_v38 = vsel %vm3522_vm4, %v8350_v28, %v3521_v12  ;;  %v3535_v51 = vmul.f32 %v8472_v25, %v8381_v26  ;;  %6347 = vrsqrt.f32 %v8534_v22  ;;  %v3641_v11 = vpack.c.bf16 %v3547_v48, %v3533_v52  ;;  %v4215_v48 = vld [vmem:[#allocation7 + $0x2b8] sm:$0xff] }
 0x340   : > { %4402 = vmatprep.subr.bf16.mxu0 %v9440_v59  ;;  %v3526_v56 = vsel %vm3524_vm5, %v3525_v35, %v3523_v38  ;;  %vm3536_vm6 = vcmp.eq.f32.partialorder %v8381_v26, inf  ;;  %vm3538_vm7 = vcmp.eq.f32.partialorder %v8381_v26, 0.0  ;;  %v3539_v9 = vand.u32 2147483648, %v8381_v26  ;;  %v6336_v62 = vpop.eup %6335  ;;  %v4214_v59 = vld [vmem:[#allocation7 + $0x298] sm:$0xff] }
 0x341   : > { %v3537_v21 = vsel %vm3536_vm6, %v8381_v26, %v3535_v51  ;;  %v9441_v41 = vcombine.low %v8188_v45, %v8196_v0  ;;  %v3556_v28 = vmul.f32 %v6328_v6, %v8426_v50  ;;  %3840 = vmatprep.mubr.bf16.mxu0 %v3641_v11  ;;  %v9442_v25 = vcombine.high %v8198_v54, %v8200_v23  ;;  %v8565_v45 = vld [vmem:[#allocation7 + $0x2f8] sm:$0xff]  ;;  %v6338_v0 = vpop.eup %6337 }
 0x342   : > { %vm3557_vm8 = vcmp.eq.f32.partialorder %v8426_v50, inf  ;;  %vm3559_vm9 = vcmp.eq.f32.partialorder %v8426_v50, 0.0  ;;  %v3560_v19 = vand.u32 2147483648, %v8426_v50  ;;  %v3570_v26 = vmul.f32 %v6332_v10, %v8446_v58  ;;  %v4213_v51 = vld [vmem:[#allocation7 + $0x278] sm:$0xff] }
 0x343   : > { %4403 = vmatpush2.bf16.msra.mxu0 %v9441_v41  ;;  %v3540_v61 = vsel %vm3538_vm7, %v3539_v9, %v3537_v21  ;;  %v3558_v2 = vsel %vm3557_vm8, %v8426_v50, %v3556_v28  ;;  %vm3571_vm10 = vcmp.eq.f32.partialorder %v8446_v58, inf  ;;  %v3574_v8 = vand.u32 2147483648, %v8446_v58 }
 0x344   : > { %4404 = vmatprep.subr.bf16.mxu0 %v9442_v25  ;;  %v3640_v37 = vpack.c.bf16 %v3540_v61, %v3526_v56  ;;  %v3572_v40 = vsel %vm3571_vm10, %v8446_v58, %v3570_v26  ;;  %vm3573_vm11 = vcmp.eq.f32.partialorder %v8446_v58, 0.0  ;;  %v3549_v29 = vmul.f32 %v8494_v34, %v8410_v30  ;;  %v6340_v44 = vpop.eup %6339 }
 0x345   : > { %v9443_v17 = vcombine.low %v8198_v54, %v8200_v23  ;;  %v3561_v6 = vsel %vm3559_vm9, %v3560_v19, %v3558_v2  ;;  %v3575_v36 = vsel %vm3573_vm11, %v3574_v8, %v3572_v40  ;;  %v5697_v50 = vcombine.high %v8227_v5, %v8229_v47 }
 0x346   : > { %v5694_v15 = vcombine.low %v8563_v27, %v8565_v45  ;;  %3841 = vmatmul.mubr.bf16.gmra.mxu0 %v3640_v37  ;;  %v3643_v49 = vpack.c.bf16 %v3575_v36, %v3561_v6  ;;  %vm3550_vm12 = vcmp.eq.f32.partialorder %v8410_v30, inf  ;;  %v3563_v58 = vmul.f32 %v6330_v32, %v8433_v24 }
 0x347   : > { %4405 = vmatpush2.bf16.msra.mxu0 %v9443_v17  ;;  %v9444_v34 = vcombine.high %v8212_v14, %v8214_v57  ;;  %v5695_v23 = vcombine.high %v8563_v27, %v8565_v45  ;;  %v3551_v54 = vsel %vm3550_vm12, %v8410_v30, %v3549_v29  ;;  %vm3564_vm13 = vcmp.eq.f32.partialorder %v8433_v24, inf  ;;  %v8592_v13 = vpop.eup %6341  ;;  %v4210_v27 = vld [vmem:[#allocation7 + $0x218] sm:$0xff] }
 0x348   : > { %v3567_v16 = vand.u32 2147483648, %v8433_v24  ;;  %v3584_v43 = vmul.f32 %v6336_v62, %v8466_v4  ;;  %3848 = vmatprep.mubr.bf16.mxu0 %v3643_v49  ;;  %v3553_v32 = vand.u32 2147483648, %v8410_v30  ;;  %v3565_v46 = vsel %vm3564_vm13, %v8433_v24, %v3563_v58  ;;  %v6344_v10 = vpop.eup %6343  ;;  %v4211_v45 = vld [vmem:[#allocation7 + $0x238] sm:$0xff] }
 0x349   : > { %4406 = vmatprep.subr.bf16.mxu0 %v9444_v34  ;;  %vm3566_vm14 = vcmp.eq.f32.partialorder %v8433_v24, 0.0  ;;  %vm3585_vm15 = vcmp.eq.f32.partialorder %v8466_v4, inf  ;;  %vm3552_vm0 = vcmp.eq.f32.partialorder %v8410_v30, 0.0  ;;  %v9445_v52 = vcombine.low %v8212_v14, %v8214_v57  ;;  %v4212_v57 = vld [vmem:[#allocation7 + $0x258] sm:$0xff] }
 0x34a   : > { %v3568_v42 = vsel %vm3566_vm14, %v3567_v16, %v3565_v46  ;;  %v3586_v60 = vsel %vm3585_vm15, %v8466_v4, %v3584_v43  ;;  %v3598_v63 = vmul.f32 %v6340_v44, %v8488_v20  ;;  %v3554_v12 = vsel %vm3552_vm0, %v3553_v32, %v3551_v54  ;;  %v6346_v30 = vpop.eup %6345  ;;  %v6463_v43 = vld [vmem:[%s6838_s29 + $0x4] ss:$8 sps:$4 sm:$0xff]   ;;  %v6466_v32 = vld [vmem:[%s6838_s29 + $0x10] ss:$8 sps:$4 sm:$0xff]   ;;  %v6468_v46 = vld [vmem:[%s6838_s29 + $0x20] ss:$8 sps:$4 sm:$0xff]  }
 0x34b   : > { %4407 = vmatpush2.bf16.msra.mxu0 %v9445_v52  ;;  %v3588_v35 = vand.u32 2147483648, %v8466_v4  ;;  %vm3599_vm1 = vcmp.eq.f32.partialorder %v8488_v20, inf  ;;  %v3602_v24 = vand.u32 2147483648, %v8488_v20  ;;  %v3642_v38 = vpack.c.bf16 %v3568_v42, %v3554_v12  ;;  %v6470_v42 = vld [vmem:[%s6838_s29 + $0x30] ss:$8 sps:$4 sm:$0xff]  }
 0x34c   : > { %4408 = vmatprep.subr.bf16.mxu0 %v5697_v50  ;;  %vm3587_vm2 = vcmp.eq.f32.partialorder %v8466_v4, 0.0  ;;  %v3600_v14 = vsel %vm3599_vm1, %v8488_v20, %v3598_v63  ;;  %vm3601_vm3 = vcmp.eq.f32.partialorder %v8488_v20, 0.0  ;;  %v3577_v21 = vmul.f32 %v8541_v18, %v8455_v31  ;;  %v6348_v41 = vpop.eup %6347  ;;  %v6471_v52 = vld [vmem:[%s6838_s29 + $0x44] ss:$8 sps:$4 sm:$0xff]   ;;  %v6141_v63 = vld [vmem:[#allocation8 + $0x1f8] sm:$0xff]  }
 0x34d   : > { %v3589_v11 = vsel %vm3587_vm2, %v3588_v35, %v3586_v60  ;;  %v3603_v56 = vsel %vm3601_vm3, %v3602_v24, %v3600_v14  ;;  %v3591_v9 = vmul.f32 %v6338_v0, %v8477_v1  ;;  %v9446_v28 = vcombine.low %v8227_v5, %v8229_v47  ;;  %v6472_v60 = vld [vmem:[%s6838_s29 + $0x40] ss:$8 sps:$4 sm:$0xff]   ;;  %v6142_v12 = vld [vmem:[#allocation8 + $0x1b8] sm:$0xff]   ;;  %5920 = vmatprep.subr.bf16.mxu1 %v6141_v63 }
 0x34e   : > { %v3645_v62 = vpack.c.bf16 %v3603_v56, %v3589_v11  ;;  %vm3592_vm4 = vcmp.eq.f32.partialorder %v8477_v1, inf  ;;  %v5692_v4 = vcombine.low %v4214_v59, %v4215_v48  ;;  %v5693_v25 = vcombine.high %v4214_v59, %v4215_v48  ;;  %3849 = vmatmul.mubr.bf16.gmra.mxu0 %v3642_v38  ;;  %v6473_v35 = vld [vmem:[%s6838_s29 + $0x54] ss:$8 sps:$4 sm:$0xff]   ;;  %5921 = vmatpush3.bf16.msra.mxu1 %v6142_v12  ;;  %v6474_v24 = vld [vmem:[%s6838_s29 + $0x50] ss:$8 sps:$4 sm:$0xff]   ;;  %v6147_v56 = vld [vmem:[#allocation8 + $0x1e0] sm:$0xff]  }
 0x34f   : > { %4409 = vmatpush2.bf16.msra.mxu0 %v9446_v28  ;;  %vm3578_vm5 = vcmp.eq.f32.partialorder %v8455_v31, inf  ;;  %v3593_v20 = vsel %vm3592_vm4, %v8477_v1, %v3591_v9  ;;  %v3612_v18 = vmul.f32 %v6344_v10, %v8510_v33  ;;  %v5691_v19 = vcombine.high %v4212_v57, %v4213_v51  ;;  %v6469_v10 = vld [vmem:[%s6838_s29 + $0x34] ss:$8 sps:$4 sm:$0xff]   ;;  %v6475_v59 = vld [vmem:[%s6838_s29 + $0x64] ss:$8 sps:$4 sm:$0xff]  }
 0x350   : > { %4410 = vmatprep.subr.bf16.mxu0 %v5695_v23  ;;  %3856 = vmatprep.mubr.bf16.mxu0 %v3645_v62  ;;  %v3581_v26 = vand.u32 2147483648, %v8455_v31  ;;  %v3595_v5 = vand.u32 2147483648, %v8477_v1  ;;  %vm3613_vm6 = vcmp.eq.f32.partialorder %v8510_v33, inf  ;;  %v3626_v47 = vmul.f32 %v6348_v41, %v8534_v22  ;;  %v6143_v48 = vld [vmem:[#allocation8 + $0x1f0] sm:$0xff]   ;;  %v6476_v38 = vld [vmem:[%s6838_s29 + $0x60] ss:$8 sps:$4 sm:$0xff]  }
 0x351   : > { %v3579_v0 = vsel %vm3578_vm5, %v8455_v31, %v3577_v21  ;;  %vm3594_vm7 = vcmp.eq.f32.partialorder %v8477_v1, 0.0  ;;  %v3614_v61 = vsel %vm3613_vm6, %v8510_v33, %v3612_v18  ;;  %vm3627_vm8 = vcmp.eq.f32.partialorder %v8534_v22, inf  ;;  %5922 = vmatprep.subr.bf16.mxu1 %v6143_v48  ;;  %v6477_v14 = vld [vmem:[%s6838_s29 + $0x74] ss:$8 sps:$4 sm:$0xff]   ;;  %v6478_v11 = vld [vmem:[%s6838_s29 + $0x70] ss:$8 sps:$4 sm:$0xff]  }
 0x352   : > { %v3596_v2 = vsel %vm3594_vm7, %v3595_v5, %v3593_v20  ;;  %v3616_v8 = vand.u32 2147483648, %v8510_v33  ;;  %v3628_v37 = vsel %vm3627_vm8, %v8534_v22, %v3626_v47  ;;  %v3630_v40 = vand.u32 2147483648, %v8534_v22  ;;  %v6148_v21 = vld [vmem:[#allocation8 + $0x1a0] sm:$0xff]   ;;  %v6149_v41 = vld [vmem:[#allocation8 + $0x1d8] sm:$0xff]   ;;  %v6153_v20 = vld [vmem:[#allocation8 + $0x1c8] sm:$0xff]  }
 0x353   : > { %4411 = vmatpush2.bf16.msra.mxu0 %v5694_v15  ;;  %vm3580_vm9 = vcmp.eq.f32.partialorder %v8455_v31, 0.0  ;;  %vm3615_vm10 = vcmp.eq.f32.partialorder %v8510_v33, 0.0  ;;  %vm3629_vm11 = vcmp.eq.f32.partialorder %v8534_v22, 0.0  ;;  %v3619_v1 = vmul.f32 %v6346_v30, %v8521_v3  ;;  %v6144_v30 = vld [vmem:[#allocation8 + $0x1b0] sm:$0xff]   ;;  %v6150_v28 = vld [vmem:[#allocation8 + $0x198] sm:$0xff]   ;;  %v6156_v47 = vld [vmem:[#allocation8 + $0x180] sm:$0xff]  }
 0x354   : > { %4412 = vmatprep.subr.bf16.mxu0 %v5693_v25  ;;  %v3582_v29 = vsel %vm3580_vm9, %v3581_v26, %v3579_v0  ;;  %v3617_v17 = vsel %vm3615_vm10, %v3616_v8, %v3614_v61  ;;  %v3631_v6 = vsel %vm3629_vm11, %v3630_v40, %v3628_v37  ;;  %v3605_v15 = vmul.f32 %v8592_v13, %v8501_v55  ;;  %v6465_v13 = vld [vmem:[%s6838_s29 + $0x14] ss:$8 sps:$4 sm:$0xff]   ;;  %v6155_v26 = vld [vmem:[#allocation8 + $0x1c0] sm:$0xff]  }
 0x355   : > { %v3644_v36 = vpack.c.bf16 %v3596_v2, %v3582_v29  ;;  %v3647_v50 = vpack.c.bf16 %v3631_v6, %v3617_v17  ;;  %vm3620_vm12 = vcmp.eq.f32.partialorder %v8521_v3, inf  ;;  %v5690_v31 = vcombine.low %v4212_v57, %v4213_v51  ;;  %5923 = vmatpush3.bf16.msra.mxu1 %v6144_v30  ;;  %v6145_v57 = vld [vmem:[#allocation8 + $0x1e8] sm:$0xff]   ;;  %v6152_v25 = vld [vmem:[#allocation8 + $0x190] sm:$0xff]  }
 0x356   : > { %v3621_v33 = vsel %vm3620_vm12, %v8521_v3, %v3619_v1  ;;  %v5689_v22 = vcombine.high %v4210_v27, %v4211_v45  ;;  %vm3606_vm13 = vcmp.eq.f32.partialorder %v8501_v55, inf  ;;  %v3623_v44 = vand.u32 2147483648, %v8521_v3  ;;  %v6146_v51 = vld [vmem:[#allocation8 + $0x1a8] sm:$0xff]   ;;  %5924 = vmatprep.subr.bf16.mxu1 %v6145_v57 }
 0x357   : > { %4413 = vmatpush2.bf16.msra.mxu0 %v5692_v4  ;;  %v3607_v49 = vsel %vm3606_vm13, %v8501_v55, %v3605_v15  ;;  %vm3622_vm14 = vcmp.eq.f32.partialorder %v8521_v3, 0.0  ;;  %v3609_v58 = vand.u32 2147483648, %v8501_v55  ;;  %v5688_v23 = vcombine.low %v4210_v27, %v4211_v45  ;;  %v6464_v3 = vld [vmem:[%s6838_s29] ss:$8 sps:$4 sm:$0xff]   ;;  %v6151_v4 = vld [vmem:[#allocation8 + $0x1d0] sm:$0xff]  }
 0x358   : > { %3857 = vmatmul.mubr.bf16.gmra.mxu0 %v3644_v36  ;;  %4414 = vmatprep.subr.bf16.mxu0 %v5691_v19  ;;  %v3624_v34 = vsel %vm3622_vm14, %v3623_v44, %v3621_v33  ;;  %vm3608_vm15 = vcmp.eq.f32.partialorder %v8501_v55, 0.0  ;;  %v6467_v55 = vld [vmem:[%s6838_s29 + $0x24] ss:$8 sps:$4 sm:$0xff]  }
 0x359   : > { %3864 = vmatprep.mubr.bf16.mxu0 %v3647_v50  ;;  %v3610_v54 = vsel %vm3608_vm15, %v3609_v58, %v3607_v49  ;;  %5925 = vmatpush3.bf16.msra.mxu1 %v6146_v51  ;;  %v6154_v19 = vld [vmem:[#allocation8 + $0x188] sm:$0xff]  }
 0x35a   : > { %v3646_v16 = vpack.c.bf16 %v3624_v34, %v3610_v54  ;;  %5926 = vmatprep.subr.bf16.mxu1 %v6147_v56  ;;  %v9451_v56 = vld [vmem:[#allocation19_spill] sm:$0xff] }
 0x35b   : > { %4415 = vmatpush2.bf16.msra.mxu0 %v5690_v31 }
 0x35c   : > { %4416 = vmatprep.subr.bf16.mxu0 %v5689_v22 }
 0x35d   : > { %5927 = vmatpush3.bf16.msra.mxu1 %v6148_v21 }
 0x35e   : > { %5928 = vmatprep.subr.bf16.mxu1 %v6149_v41 }
 0x35f   : > { %4417 = vmatpush2.bf16.msra.mxu0 %v5688_v23 }
 0x360   : > { %3865 = vmatmul.mubr.bf16.gmra.mxu0 %v3646_v16  ;;  %v9447_v16 = vld [vmem:[#allocation15_spill] sm:$0xff] }
 0x361   : > { %4418 = vmatprep.mubr.bf16.mxu0 %v6463_v43  ;;  %5929 = vmatpush3.bf16.msra.mxu1 %v6150_v28 }
 0x362   : > { %5930 = vmatprep.subr.bf16.mxu1 %v6151_v4 }
 0x365   : > { %5931 = vmatpush3.bf16.msra.mxu1 %v6152_v25 }
 0x366   : > { %5932 = vmatprep.subr.bf16.mxu1 %v6153_v20 }
 0x368   : > { %4419 = vmatmul.mubr.bf16.vlgmr.msra.gmra.mxu0 %v6464_v3 }
 0x369   : > { %4428 = vmatprep.mubr.bf16.mxu0 %v6465_v13  ;;  %5933 = vmatpush3.bf16.msra.mxu1 %v6154_v19 }
 0x36a   : > { %5934 = vmatprep.subr.bf16.mxu1 %v6155_v26  ;;  %v9452_v26 = vld [vmem:[#allocation20_spill] sm:$0xff] }
 0x36d   : > { %5935 = vmatpush3.bf16.msra.mxu1 %v6156_v47 }
 0x370   : > { %4429 = vmatmul.mubr.bf16.gmra.mxu0 %v6466_v32 }
 0x371   : > { %4438 = vmatprep.mubr.bf16.mxu0 %v6467_v55 }
 0x378   : > { %4439 = vmatmul.mubr.bf16.gmra.mxu0 %v6468_v46  ;;  %v9448_v46 = vld [vmem:[#allocation16_spill] sm:$0xff] }
 0x379   : > { %4448 = vmatprep.mubr.bf16.mxu0 %v6469_v10 }
 0x380   : > { %4449 = vmatmul.mubr.bf16.gmra.mxu0 %v6470_v42 }
 0x381   : > { %4458 = vmatprep.mubr.bf16.mxu0 %v6471_v52 }
 0x388   : > { %4459 = vmatmul.mubr.bf16.gmra.mxu0 %v6472_v60  ;;  %v9449_v60 = vld [vmem:[#allocation17_spill] sm:$0xff] }
 0x389   : > { %4468 = vmatprep.mubr.bf16.mxu0 %v6473_v35 }
 0x390   : > { %4469 = vmatmul.mubr.bf16.gmra.mxu0 %v6474_v24 }
 0x391   : > { %4478 = vmatprep.mubr.bf16.mxu0 %v6475_v59 }
 0x392   : > { %v8664_v9 = vpop.f32.mrf.mxu1 }
 0x394   : > { %v8666_v62 = vpop.f32.mrf.mxu1 }
 0x396   : > { %v8668_v18 = vpop.f32.mrf.mxu1 }
 0x398   : > { %4479 = vmatmul.mubr.bf16.gmra.mxu0 %v6476_v38  ;;  %v8670_v5 = vpop.f32.mrf.mxu1  ;;  %v9450_v38 = vld [vmem:[#allocation18_spill] sm:$0xff] }
 0x399   : > { %4488 = vmatprep.mubr.bf16.mxu0 %v6477_v14 }
 0x39a   : > { %v8672_v0 = vpop.f32.mrf.mxu1 }
 0x39c   : > { %v8674_v61 = vpop.f32.mrf.mxu1 }
 0x39e   : > { %v8676_v2 = vpop.f32.mrf.mxu1 }
 0x3a0   : > { %4489 = vmatmul.mubr.bf16.gmra.mxu0 %v6478_v11  ;;  %v8678_v8 = vpop.f32.mrf.mxu1 }
 0x3a2   : > { %v8680_v37 = vpop.f32.mrf.mxu1 }
 0x3a4   : > { %v8682_v40 = vpop.f32.mrf.mxu1 }
 0x3a6   : > { %v8684_v17 = vpop.f32.mrf.mxu1 }
 0x3a8   : > { %v8689_v50 = vpop.f32.mrf.mxu1 }
 0x3aa   : > { %v8694_v44 = vpop.f32.mrf.mxu1 }
 0x3ac   : > { %v8699_v54 = vpop.f32.mrf.mxu1 }
 0x3ae   : > { %v8704_v13 = vpop.f32.mrf.mxu1 }
 0x3b0   : > { %v8709_v42 = vpop.f32.mrf.mxu1 }
 0x3b2   : > { %v8714_v12 = vpop.f32.mrf.mxu1 }
 0x3b4   : > { %v8716_v24 = vpop.f32.mrf.mxu1 }
 0x3b6   : > { %v8721_v57 = vpop.f32.mrf.mxu1 }
 0x3b8   : > { %v8726_v41 = vpop.f32.mrf.mxu1 }
 0x3ba   : > { %v8728_v20 = vpop.f32.mrf.mxu1 }
 0x3d9   : > { %v5872_v1 = vpop.f32.mrf.mxu0 }
 0x3db   : > { %v5873_v29 = vpop.f32.mrf.mxu0 }
 0x3dc   : > { %v5874_v6 = vadd.f32 %v5873_v29, %v5872_v1 }
 0x3dd   : > { %v5875_v27 = vpop.f32.mrf.mxu0 }
 0x3de   : > { %v8687_v45 = vadd.f32 %v5874_v6, %v8076_v39  ;;  %v8733_v6 = vpop.f32.mrf.mxu1 }
 0x3df   : > { %v5876_v36 = vpop.f32.mrf.mxu0 }
 0x3e0   : > { %v5877_v15 = vadd.f32 %v5876_v36, %v5875_v27  ;;  %v9453_v36 = vld [vmem:[#allocation21_spill] sm:$0xff] }
 0x3e2   : > { %v8692_v33 = vadd.f32 %v5877_v15, %v8080_v53 }
 0x3e5   : > { %v5878_v31 = vpop.f32.mrf.mxu0 }
 0x3e7   : > { %v5879_v22 = vpop.f32.mrf.mxu0 }
 0x3e8   : > { %v5880_v49 = vadd.f32 %v5879_v22, %v5878_v31 }
 0x3e9   : > { %v5881_v58 = vpop.f32.mrf.mxu0 }
 0x3ea   : > { %v8697_v34 = vadd.f32 %v5880_v49, %v8083_v7  ;;  %v8738_v49 = vpop.f32.mrf.mxu1 }
 0x3eb   : > { %v5882_v23 = vpop.f32.mrf.mxu0 }
 0x3ec   : > { %v5883_v39 = vadd.f32 %v5882_v23, %v5881_v58  ;;  %v9454_v23 = vld [vmem:[#allocation22_spill] sm:$0xff] }
 0x3ee   : > { %v8702_v43 = vadd.f32 %v5883_v39, %v9447_v16  ;;  %v5884_v3 = vpop.f32.mrf.mxu0 }
 0x3f0   : > { %v5885_v53 = vpop.f32.mrf.mxu0 }
 0x3f1   : > { %v5886_v32 = vadd.f32 %v5885_v53, %v5884_v3  ;;  %v8743_v53 = vpop.f32.mrf.mxu1 }
 0x3f2   : > { %v5887_v55 = vpop.f32.mrf.mxu0 }
 0x3f3   : > { %v8707_v10 = vadd.f32 %v5886_v32, %v9448_v46 }
 0x3f4   : > { %v5888_v7 = vpop.f32.mrf.mxu0 }
 0x3f5   : > { %v5889_v52 = vadd.f32 %v5888_v7, %v5887_v55  ;;  %v9455_v55 = vld [vmem:[#allocation23_spill] sm:$0xff] }
 0x3f7   : > { %v8712_v63 = vadd.f32 %v5889_v52, %v9449_v60  ;;  %v8748_v60 = vpop.f32.mrf.mxu1 }
 0x3fb   : > { %v5890_v35 = vpop.f32.mrf.mxu0 }
 0x3fd   : > { %v5891_v59 = vpop.f32.mrf.mxu0 }
 0x3fe   : > { %v5892_v48 = vadd.f32 %v5891_v59, %v5890_v35  ;;  %v9456_v59 = vld [vmem:[#allocation24_spill] sm:$0xff] }
 0x3ff   : > { %v5893_v30 = vpop.f32.mrf.mxu0 }
 0x400   : > { %v8719_v14 = vadd.f32 %v5892_v48, %v9450_v38 }
 0x401   : > { %v5894_v51 = vpop.f32.mrf.mxu0 }
 0x402   : > { %v5895_v11 = vadd.f32 %v5894_v51, %v5893_v30  ;;  %v8753_v51 = vpop.f32.mrf.mxu1 }
 0x404   : > { %v8724_v21 = vadd.f32 %v5895_v11, %v9451_v56  ;;  %v9457_v56 = vld [vmem:[#allocation25_spill] sm:$0xff] }
 0x406   : > { %v5896_v28 = vpop.f32.mrf.mxu0 }
 0x408   : > { %v5897_v4 = vpop.f32.mrf.mxu0 }
 0x409   : > { %v5898_v25 = vadd.f32 %v5897_v4, %v5896_v28 }
 0x40a   : > { %v5899_v19 = vpop.f32.mrf.mxu0 }
 0x40b   : > { %v8731_v47 = vadd.f32 %v5898_v25, %v9452_v26 }
 0x40c   : > { %v5900_v1 = vpop.f32.mrf.mxu0 }
 0x40d   : > { %v5901_v29 = vadd.f32 %v5900_v1, %v5899_v19  ;;  %v8758_v19 = vpop.f32.mrf.mxu1  ;;  %v9458_v1 = vld [vmem:[#allocation26_spill] sm:$0xff] }
 0x40e   : > { %v5902_v27 = vpop.f32.mrf.mxu0 }
 0x40f   : > { %v8736_v15 = vadd.f32 %v5901_v29, %v9453_v36  ;;  %v4499_v36 = vmul.f32 %v8664_v9, %v8664_v9  ;;  %v4502_v9 = vmul.f32 %v8670_v5, %v8670_v5 }
 0x410   : > { %v5903_v31 = vpop.f32.mrf.mxu0 }
 0x411   : > { %v5904_v22 = vadd.f32 %v5903_v31, %v5902_v27 }
 0x412   : > { %v5905_v58 = vpop.f32.mrf.mxu0 }
 0x413   : > { %v8741_v39 = vadd.f32 %v5904_v22, %v9454_v23  ;;  %v4181_v22 = vpop.f32.mrf.mxu1  ;;  %v9460_v23 = vld [vmem:[#allocation27_spill] sm:$0xff] }
 0x414   : > { %v5906_v16 = vpop.f32.mrf.mxu0 }
 0x415   : > { %v5907_v3 = vadd.f32 %v5906_v16, %v5905_v58 }
 0x417   : > { %v8746_v46 = vadd.f32 %v5907_v3, %v9455_v55 }
 0x418   : > { %v5908_v32 = vpop.f32.mrf.mxu0 }
 0x41a   : > { %v5909_v7 = vpop.f32.mrf.mxu0 }
 0x41b   : > { %v5910_v52 = vadd.f32 %v5909_v7, %v5908_v32 }
 0x41c   : > { %v5911_v35 = vpop.f32.mrf.mxu0 }
 0x41d   : > { %v8751_v48 = vadd.f32 %v5910_v52, %v9456_v59  ;;  %v4185_v52 = vpop.f32.mrf.mxu1 }
 0x41e   : > { %v5912_v30 = vpop.f32.mrf.mxu0 }
 0x41f   : > { %v5913_v38 = vadd.f32 %v5912_v30, %v5911_v35  ;;  %v4500_v35 = vmul.f32 %v8666_v62, %v8666_v62  ;;  %v4501_v30 = vmul.f32 %v8668_v18, %v8668_v18  ;;  %v4187_v18 = vpop.f32.mrf.mxu1 }
 0x420   : > { %v5914_v11 = vpop.f32.mrf.mxu0 }
 0x421   : > { %v8756_v28 = vadd.f32 %v5913_v38, %v9457_v56 }
 0x422   : > { %v5915_v4 = vpop.f32.mrf.mxu0 }
 0x423   : > { %v5916_v25 = vadd.f32 %v5915_v4, %v5914_v11  ;;  %v4503_v11 = vmul.f32 %v8672_v0, %v8672_v0  ;;  %v4506_v0 = vmul.f32 %v8678_v8, %v8678_v8  ;;  %v8807_v8 = vmul.f32 %v8694_v44, %v8694_v44 }
 0x424   : > { %v5917_v26 = vpop.f32.mrf.mxu0  ;;  %v8826_v44 = vmul.f32 %v8714_v12, %v8714_v12  ;;  %v8845_v12 = vmul.f32 %v8728_v20, %v8728_v20  ;;  %v8864_v20 = vmul.f32 %v8748_v60, %v8748_v60 }
 0x425   : > { %v8761_v29 = vadd.f32 %v5916_v25, %v9458_v1  ;;  %v4504_v25 = vmul.f32 %v8674_v61, %v8674_v61  ;;  %v4508_v61 = vmul.f32 %v8682_v40, %v8682_v40 }
 0x426   : > { %v5918_v27 = vpop.f32.mrf.mxu0 }
 0x427   : > { %9459 = vst [vmem:[#allocation15_spill] sm:$0xff] %v8761_v29  ;;  %v5919_v31 = vadd.f32 %v5918_v27, %v5917_v26  ;;  %v4505_v26 = vmul.f32 %v8676_v2, %v8676_v2  ;;  %v4507_v27 = vmul.f32 %v8680_v37, %v8680_v37  ;;  %v8798_v2 = vmul.f32 %v8684_v17, %v8684_v17 }
 0x428   : > { %v4420_v58 = vpop.f32.mrf.mxu0  ;;  %v8811_v37 = vmul.f32 %v8699_v54, %v8699_v54  ;;  %v8830_v54 = vmul.f32 %v8716_v24, %v8716_v24  ;;  %v8849_v24 = vmul.f32 %v8733_v6, %v8733_v6 }
 0x429   : > { %v8766_v16 = vadd.f32 %v5919_v31, %v9460_v23  ;;  %v4531_v3 = vmul.f32 %v4420_v58, %v4420_v58  ;;  %v8803_v23 = vmul.f32 %v8689_v50, %v8689_v50 }
 0x42a   : > { %v4422_v32 = vpop.f32.mrf.mxu0 }
 0x42b   : > { %9461 = vst [vmem:[#allocation16_spill] sm:$0xff] %v8766_v16  ;;  %v8768_v55 = vadd.f32 %v4531_v3, %v4499_v36  ;;  %v4532_v7 = vmul.f32 %v4422_v32, %v4422_v32  ;;  %v8818_v3 = vmul.f32 %v8704_v13, %v8704_v13  ;;  %v4189_v32 = vpop.f32.mrf.mxu1 }
 0x42c   : > { %v4424_v59 = vpop.f32.mrf.mxu0 }
 0x42d   : > { %v8776_v38 = vadd.f32 %v4532_v7, %v4500_v35  ;;  %v4533_v56 = vmul.f32 %v4424_v59, %v4424_v59  ;;  %6349 = vrsqrt.f32 %v8768_v55  ;;  %v8822_v7 = vmul.f32 %v8709_v42, %v8709_v42 }
 0x42e   : > { %v4426_v4 = vpop.f32.mrf.mxu0  ;;  %v8834_v35 = vmul.f32 %v8721_v57, %v8721_v57  ;;  %v8841_v42 = vmul.f32 %v8726_v41, %v8726_v41  ;;  %v8853_v57 = vmul.f32 %v8738_v49, %v8738_v49  ;;  %v8872_v49 = vmul.f32 %v8758_v19, %v8758_v19 }
 0x42f   : > { %v4534_v62 = vmul.f32 %v4426_v4, %v4426_v4  ;;  %6351 = vrsqrt.f32 %v8776_v38  ;;  %v8786_v5 = vadd.f32 %v4533_v56, %v4501_v30  ;;  %v4191_v56 = vpop.f32.mrf.mxu1  ;;  %v8868_v4 = vmul.f32 %v8753_v51, %v8753_v51 }
 0x430   : > { %v4430_v1 = vpop.f32.mrf.mxu0  ;;  %vm4597_vm0 = vcmp.eq.f32.partialorder %v8768_v55, inf  ;;  %v8887_v19 = vmul.f32 %v4191_v56, %v4191_v56  ;;  %vm4604_vm1 = vcmp.eq.f32.partialorder %v8776_v38, inf  ;;  %vm4606_vm4 = vcmp.eq.f32.partialorder %v8776_v38, 0.0 }
 0x431   : > { %v8792_v36 = vadd.f32 %v4534_v62, %v4502_v9  ;;  %v4535_v31 = vmul.f32 %v4430_v1, %v4430_v1  ;;  %6353 = vrsqrt.f32 %v8786_v5  ;;  %v8857_v9 = vmul.f32 %v8743_v53, %v8743_v53 }
 0x432   : > { %v4432_v58 = vpop.f32.mrf.mxu0  ;;  %v8874_v53 = vmul.f32 %v4181_v22, %v4181_v22  ;;  %vm4611_vm2 = vcmp.eq.f32.partialorder %v8786_v5, inf  ;;  %vm4613_vm3 = vcmp.eq.f32.partialorder %v8786_v5, 0.0  ;;  %vm4599_vm5 = vcmp.eq.f32.partialorder %v8768_v55, 0.0 }
 0x433   : > { %6355 = vrsqrt.f32 %v8792_v36  ;;  %v8814_v40 = vadd.f32 %v4535_v31, %v4503_v11  ;;  %v4536_v17 = vmul.f32 %v4432_v58, %v4432_v58  ;;  %v8885_v31 = vmul.f32 %v4189_v32, %v4189_v32 }
 0x434   : > { %v4434_v50 = vpop.f32.mrf.mxu0  ;;  %v4607_v58 = vand.u32 2147483648, %v8776_v38  ;;  %v4614_v32 = vand.u32 2147483648, %v8786_v5  ;;  %vm4618_vm6 = vcmp.eq.f32.partialorder %v8792_v36, inf  ;;  %vm4620_vm7 = vcmp.eq.f32.partialorder %v8792_v36, 0.0 }
 0x435   : > { %6357 = vrsqrt.f32 %v8814_v40  ;;  %v8837_v13 = vadd.f32 %v4536_v17, %v4504_v25  ;;  %v4537_v59 = vmul.f32 %v4434_v50, %v4434_v50  ;;  %v8876_v25 = vmul.f32 %v4185_v52, %v4185_v52 }
 0x436   : > { %v4436_v30 = vpop.f32.mrf.mxu0  ;;  %vm4625_vm8 = vcmp.eq.f32.partialorder %v8814_v40, inf  ;;  %vm4627_vm11 = vcmp.eq.f32.partialorder %v8814_v40, 0.0 }
 0x437   : > { %6359 = vrsqrt.f32 %v8837_v13  ;;  %v8860_v41 = vadd.f32 %v4537_v59, %v4505_v26  ;;  %v4538_v11 = vmul.f32 %v4436_v30, %v4436_v30  ;;  %v8881_v26 = vmul.f32 %v4187_v18, %v4187_v18 }
 0x438   : > { %v4440_v6 = vpop.f32.mrf.mxu0  ;;  %vm4632_vm9 = vcmp.eq.f32.partialorder %v8837_v13, inf  ;;  %vm4634_vm14 = vcmp.eq.f32.partialorder %v8837_v13, 0.0 }
 0x439   : > { %6361 = vrsqrt.f32 %v8860_v41  ;;  %v8879_v62 = vadd.f32 %v4538_v11, %v4506_v0  ;;  %v4539_v60 = vmul.f32 %v4440_v6, %v4440_v6  ;;  %v4621_v11 = vand.u32 2147483648, %v8792_v36 }
 0x43a   : > { %v4442_v1 = vpop.f32.mrf.mxu0  ;;  %v6350_v0 = vpop.eup %6349  ;;  %vm4639_vm10 = vcmp.eq.f32.partialorder %v8860_v41, inf  ;;  %vm4641_vm12 = vcmp.eq.f32.partialorder %v8860_v41, 0.0 }
 0x43b   : > { %6363 = vrsqrt.f32 %v8879_v62  ;;  %v8890_v22 = vadd.f32 %v4539_v60, %v4507_v27  ;;  %v4540_v52 = vmul.f32 %v4442_v1, %v4442_v1  ;;  %v4596_v6 = vmul.f32 %v6350_v0, %v8768_v55 }
 0x43c   : > { %v4444_v18 = vpop.f32.mrf.mxu0  ;;  %v6352_v17 = vpop.eup %6351  ;;  %vm4646_vm13 = vcmp.eq.f32.partialorder %v8879_v62, inf  ;;  %vm4648_vm15 = vcmp.eq.f32.partialorder %v8879_v62, 0.0 }
 0x43d   : > { %6365 = vrsqrt.f32 %v8890_v22  ;;  %v8900_v27 = vadd.f32 %v4540_v52, %v4508_v61  ;;  %v4541_v50 = vmul.f32 %v4444_v18, %v4444_v18  ;;  %v4603_v30 = vmul.f32 %v6352_v17, %v8776_v38 }
 0x43e   : > { %v4446_v59 = vpop.f32.mrf.mxu0  ;;  %v6354_v56 = vpop.eup %6353 }
 0x43f   : > { %6367 = vrsqrt.f32 %v8900_v27  ;;  %v8909_v60 = vadd.f32 %v4541_v50, %v8798_v2  ;;  %v4542_v61 = vmul.f32 %v4446_v59, %v4446_v59  ;;  %v4610_v52 = vmul.f32 %v6354_v56, %v8786_v5 }
 0x440   : > { %v6356_v1 = vpop.eup %6355  ;;  %v4450_v18 = vpop.f32.mrf.mxu0  ;;  %v4605_v2 = vsel %vm4604_vm1, %v8776_v38, %v4603_v30  ;;  %v4642_v30 = vand.u32 2147483648, %v8860_v41  ;;  %vm4660_vm1 = vcmp.eq.f32.partialorder %v8900_v27, inf }
 0x441   : > { %6369 = vrsqrt.f32 %v8909_v60  ;;  %v8917_v0 = vadd.f32 %v4542_v61, %v8803_v23  ;;  %v4543_v16 = vmul.f32 %v4450_v18, %v4450_v18  ;;  %v4612_v59 = vsel %vm4611_vm2, %v8786_v5, %v4610_v52 }
 0x442   : > { %v6358_v50 = vpop.eup %6357  ;;  %v4452_v56 = vpop.f32.mrf.mxu0  ;;  %v4617_v17 = vmul.f32 %v6356_v1, %v8792_v36  ;;  %v4598_v61 = vsel %vm4597_vm0, %v8768_v55, %v4596_v6  ;;  %v4608_v51 = vsel %vm4606_vm4, %v4607_v58, %v4605_v2  ;;  %v4615_v6 = vsel %vm4613_vm3, %v4614_v32, %v4612_v59 }
 0x443   : > { %6371 = vrsqrt.f32 %v8917_v0  ;;  %v8937_v18 = vadd.f32 %v4543_v16, %v8807_v8  ;;  %v4544_v52 = vmul.f32 %v4452_v56, %v4452_v56  ;;  %v4624_v16 = vmul.f32 %v6358_v50, %v8814_v40 }
 0x444   : > { %v6360_v1 = vpop.eup %6359  ;;  %v4454_v23 = vpop.f32.mrf.mxu0  ;;  %v4619_v29 = vsel %vm4618_vm6, %v8792_v36, %v4617_v17  ;;  %v9462_v5 = vand.u32 2147483648, %v8768_v55  ;;  %vm4653_vm0 = vcmp.eq.f32.partialorder %v8890_v22, inf  ;;  %vm4655_vm2 = vcmp.eq.f32.partialorder %v8890_v22, 0.0 }
 0x445   : > { %6373 = vrsqrt.f32 %v8937_v18  ;;  %v8952_v8 = vadd.f32 %v4544_v52, %v8811_v37  ;;  %v4545_v38 = vmul.f32 %v4454_v23, %v4454_v23  ;;  %v4622_v58 = vsel %vm4620_vm7, %v4621_v11, %v4619_v29 }
 0x446   : > { %v6362_v2 = vpop.eup %6361  ;;  %v4456_v17 = vpop.f32.mrf.mxu0  ;;  %v4820_v56 = vpack.c.bf16 %v4622_v58, %v4608_v51  ;;  %v4601_v32 = vsel %vm4599_vm5, %v9462_v5, %v4598_v61  ;;  %v4631_v59 = vmul.f32 %v6360_v1, %v8837_v13  ;;  %v4626_v51 = vsel %vm4625_vm8, %v8814_v40, %v4624_v16 }
 0x447   : > { %6375 = vrsqrt.f32 %v8952_v8  ;;  %v8964_v37 = vadd.f32 %v4545_v38, %v8818_v3  ;;  %v4546_v50 = vmul.f32 %v4456_v17, %v4456_v17  ;;  %v4819_v36 = vpack.c.bf16 %v4615_v6, %v4601_v32 }
 0x448   : > { %v6364_v29 = vpop.eup %6363  ;;  %4995 = vmatprep.mubr.bf16.mxu1 %v4820_v56  ;;  %v4460_v11 = vpop.f32.mrf.mxu0  ;;  %v4638_v55 = vmul.f32 %v6362_v2, %v8860_v41  ;;  %v4663_v23 = vand.u32 2147483648, %v8900_v27  ;;  %v4656_v52 = vand.u32 2147483648, %v8890_v22  ;;  %v4633_v16 = vsel %vm4632_vm9, %v8837_v13, %v4631_v59 }
 0x449   : > { %6377 = vrsqrt.f32 %v8964_v37  ;;  %v8974_v3 = vadd.f32 %v4546_v50, %v8822_v7  ;;  %v4547_v61 = vmul.f32 %v4460_v11, %v4460_v11  ;;  %4996 = vmatmul.mubr.bf16.vlgmr.msra.gmra.mxu1 %v4819_v36  ;;  %v4645_v38 = vmul.f32 %v6364_v29, %v8879_v62 }
 0x44a   : > { %v6366_v1 = vpop.eup %6365  ;;  %v4462_v6 = vpop.f32.mrf.mxu0  ;;  %v4640_v58 = vsel %vm4639_vm10, %v8860_v41, %v4638_v55  ;;  %vm4662_vm3 = vcmp.eq.f32.partialorder %v8900_v27, 0.0  ;;  %vm4667_vm4 = vcmp.eq.f32.partialorder %v8909_v60, inf  ;;  %v9463_v2 = vand.u32 2147483648, %v8814_v40 }
 0x44b   : > { %6379 = vrsqrt.f32 %v8974_v3  ;;  %v4548_v7 = vmul.f32 %v4462_v6, %v4462_v6  ;;  %v4643_v56 = vsel %vm4641_vm12, %v4642_v30, %v4640_v58  ;;  %vm4674_vm5 = vcmp.eq.f32.partialorder %v8917_v0, inf }
 0x44c   : > { %v4629_v17 = vsel %vm4627_vm11, %v9463_v2, %v4626_v51  ;;  %v6368_v5 = vpop.eup %6367  ;;  %v8996_v32 = vadd.f32 %v4547_v61, %v8826_v44  ;;  %v4464_v59 = vpop.f32.mrf.mxu0  ;;  %v4647_v50 = vsel %vm4646_vm13, %v8879_v62, %v4645_v38  ;;  %vm4676_vm6 = vcmp.eq.f32.partialorder %v8917_v0, 0.0 }
 0x44d   : > { %v4677_v36 = vand.u32 2147483648, %v8917_v0  ;;  %v4652_v40 = vmul.f32 %v6366_v1, %v8890_v22  ;;  %v9005_v41 = vadd.f32 %v4548_v7, %v8830_v54  ;;  %v4549_v30 = vmul.f32 %v4464_v59, %v4464_v59 }
 0x44e   : > { %v9464_v29 = vand.u32 2147483648, %v8837_v13  ;;  %v9465_v11 = vand.u32 2147483648, %v8879_v62  ;;  %v6370_v55 = vpop.eup %6369  ;;  %v4466_v61 = vpop.f32.mrf.mxu0  ;;  %v4821_v38 = vpack.c.bf16 %v4643_v56, %v4629_v17  ;;  %v4659_v1 = vmul.f32 %v6368_v5, %v8900_v27 }
 0x44f   : > { %vm4669_vm7 = vcmp.eq.f32.partialorder %v8909_v60, 0.0  ;;  %6381 = vrsqrt.f32 %v9005_v41  ;;  %v9019_v54 = vadd.f32 %v4549_v30, %v8834_v35  ;;  %v4550_v13 = vmul.f32 %v4466_v61, %v4466_v61 }
 0x450   : > { %v4636_v44 = vsel %vm4634_vm14, %v9464_v29, %v4633_v16  ;;  %v4650_v51 = vsel %vm4648_vm15, %v9465_v11, %v4647_v50  ;;  %v4654_v16 = vsel %vm4653_vm0, %v8890_v22, %v4652_v40  ;;  %v6372_v62 = vpop.eup %6371  ;;  %6383 = vrsqrt.f32 %v8996_v32  ;;  %v4470_v58 = vpop.f32.mrf.mxu0 }
 0x451   : > { %v4822_v6 = vpack.c.bf16 %v4650_v51, %v4636_v44  ;;  %v4661_v7 = vsel %vm4660_vm1, %v8900_v27, %v4659_v1  ;;  %v4666_v2 = vmul.f32 %v6370_v55, %v8909_v60  ;;  %v4670_v17 = vand.u32 2147483648, %v8909_v60 }
 0x452   : > { %v9031_v35 = vadd.f32 %v4550_v13, %v8841_v42  ;;  %v4551_v56 = vmul.f32 %v4470_v58, %v4470_v58  ;;  %vm4688_vm8 = vcmp.eq.f32.partialorder %v8952_v8, inf  ;;  %v4691_v5 = vand.u32 2147483648, %v8952_v8  ;;  %v6374_v59 = vpop.eup %6373  ;;  %v4472_v50 = vpop.f32.mrf.mxu0 }
 0x453   : > { %5003 = vmatprep.mubr.bf16.mxu1 %v4822_v6  ;;  %6385 = vrsqrt.f32 %v9019_v54  ;;  %v4673_v40 = vmul.f32 %v6372_v62, %v8917_v0  ;;  %v4657_v30 = vsel %vm4655_vm2, %v4656_v52, %v4654_v16  ;;  %v4668_v42 = vsel %vm4667_vm4, %v8909_v60, %v4666_v2 }
 0x454   : > { %5004 = vmatmul.mubr.bf16.gmra.mxu1 %v4821_v38  ;;  %vm4690_vm9 = vcmp.eq.f32.partialorder %v8952_v8, 0.0  ;;  %6387 = vrsqrt.f32 %v9031_v35  ;;  %v4552_v29 = vmul.f32 %v4472_v50, %v4472_v50  ;;  %v4664_v44 = vsel %vm4662_vm3, %v4663_v23, %v4661_v7  ;;  %v6376_v51 = vpop.eup %6375  ;;  %v4474_v52 = vpop.f32.mrf.mxu0 }
 0x455   : > { %v4671_v11 = vsel %vm4669_vm7, %v4670_v17, %v4668_v42  ;;  %vm4702_vm10 = vcmp.eq.f32.partialorder %v8974_v3, inf  ;;  %v9050_v22 = vadd.f32 %v4551_v56, %v8845_v12  ;;  %v4675_v55 = vsel %vm4674_vm5, %v8917_v0, %v4673_v40 }
 0x456   : > { %vm4704_vm11 = vcmp.eq.f32.partialorder %v8974_v3, 0.0  ;;  %v4680_v61 = vmul.f32 %v6374_v59, %v8937_v18  ;;  %vm4681_vm12 = vcmp.eq.f32.partialorder %v8937_v18, inf  ;;  %v9059_v27 = vadd.f32 %v4552_v29, %v8849_v24  ;;  %v6378_v6 = vpop.eup %6377  ;;  %v4476_v38 = vpop.f32.mrf.mxu0 }
 0x457   : > { %v4553_v60 = vmul.f32 %v4474_v52, %v4474_v52  ;;  %v4678_v23 = vsel %vm4676_vm6, %v4677_v36, %v4675_v55  ;;  %v4823_v12 = vpack.c.bf16 %v4671_v11, %v4657_v30  ;;  %v4687_v13 = vmul.f32 %v6376_v51, %v8952_v8 }
 0x458   : > { %v4824_v1 = vpack.c.bf16 %v4678_v23, %v4664_v44  ;;  %v4682_v16 = vsel %vm4681_vm12, %v8937_v18, %v4680_v61  ;;  %v4684_v62 = vand.u32 2147483648, %v8937_v18  ;;  %6389 = vrsqrt.f32 %v9059_v27  ;;  %v6380_v0 = vpop.eup %6379  ;;  %v4480_v36 = vpop.f32.mrf.mxu0 }
 0x459   : > { %v9068_v58 = vadd.f32 %v4553_v60, %v8853_v57  ;;  %v4554_v24 = vmul.f32 %v4476_v38, %v4476_v38  ;;  %v4694_v7 = vmul.f32 %v6378_v6, %v8964_v37  ;;  %6391 = vrsqrt.f32 %v9050_v22 }
 0x45a   : > { %5011 = vmatprep.mubr.bf16.mxu1 %v4824_v1  ;;  %v4689_v2 = vsel %vm4688_vm8, %v8952_v8, %v4687_v13  ;;  %v4705_v17 = vand.u32 2147483648, %v8974_v3  ;;  %vm4683_vm13 = vcmp.eq.f32.partialorder %v8937_v18, 0.0  ;;  %v4555_v57 = vmul.f32 %v4480_v36, %v4480_v36  ;;  %v4482_v50 = vpop.f32.mrf.mxu0 }
 0x45b   : > { %v9078_v56 = vadd.f32 %v4554_v24, %v8857_v9  ;;  %v4685_v59 = vsel %vm4683_vm13, %v4684_v62, %v4682_v16  ;;  %vm4695_vm14 = vcmp.eq.f32.partialorder %v8964_v37, inf  ;;  %6393 = vrsqrt.f32 %v9068_v58 }
 0x45c   : > { %5012 = vmatmul.mubr.bf16.gmra.mxu1 %v4823_v12  ;;  %v4701_v40 = vmul.f32 %v6380_v0, %v8974_v3  ;;  %v4696_v30 = vsel %vm4695_vm14, %v8964_v37, %v4694_v7  ;;  %v4698_v42 = vand.u32 2147483648, %v8964_v37  ;;  %v4556_v18 = vmul.f32 %v4482_v50, %v4482_v50  ;;  %v6382_v29 = vpop.eup %6381  ;;  %v4484_v11 = vpop.f32.mrf.mxu0 }
 0x45d   : > { %6395 = vrsqrt.f32 %v9078_v56  ;;  %v4692_v9 = vsel %vm4690_vm9, %v4691_v5, %v4689_v2  ;;  %vm4697_vm15 = vcmp.eq.f32.partialorder %v8964_v37, 0.0  ;;  %v9090_v44 = vadd.f32 %v4555_v57, %v8864_v20  ;;  %v6384_v55 = vpop.eup %6383 }
 0x45e   : > { %v4703_v51 = vsel %vm4702_vm10, %v8974_v3, %v4701_v40  ;;  %v4699_v52 = vsel %vm4697_vm15, %v4698_v42, %v4696_v30  ;;  %vm4716_vm0 = vcmp.eq.f32.partialorder %v9005_v41, inf  ;;  %v9097_v61 = vadd.f32 %v4556_v18, %v8868_v4  ;;  %v4486_v20 = vpop.f32.mrf.mxu0 }
 0x45f   : > { %v4557_v8 = vmul.f32 %v4484_v11, %v4484_v11  ;;  %v4706_v37 = vsel %vm4704_vm11, %v4705_v17, %v4703_v51  ;;  %vm4718_vm1 = vcmp.eq.f32.partialorder %v9005_v41, 0.0  ;;  %v4715_v60 = vmul.f32 %v6382_v29, %v9005_v41 }
 0x460   : > { %v4826_v5 = vpack.c.bf16 %v4706_v37, %v4692_v9  ;;  %v4719_v23 = vand.u32 2147483648, %v9005_v41  ;;  %vm4730_vm2 = vcmp.eq.f32.partialorder %v9031_v35, inf  ;;  %v6386_v12 = vpop.eup %6385  ;;  %6397 = vrsqrt.f32 %v9097_v61  ;;  %v4490_v1 = vpop.f32.mrf.mxu0 }
 0x461   : > { %v9107_v4 = vadd.f32 %v4557_v8, %v8872_v49  ;;  %v4558_v6 = vmul.f32 %v4486_v20, %v4486_v20  ;;  %v4825_v38 = vpack.c.bf16 %v4699_v52, %v4685_v59  ;;  %v6388_v3 = vpop.eup %6387  ;;  %6399 = vrsqrt.f32 %v9090_v44 }
 0x462   : > { %5019 = vmatprep.mubr.bf16.mxu1 %v4826_v5  ;;  %v4717_v13 = vsel %vm4716_vm0, %v9005_v41, %v4715_v60  ;;  %vm4732_vm3 = vcmp.eq.f32.partialorder %v9031_v35, 0.0  ;;  %v4708_v16 = vmul.f32 %v6384_v55, %v8996_v32  ;;  %v4559_v49 = vmul.f32 %v4490_v1, %v4490_v1  ;;  %v4492_v7 = vpop.f32.mrf.mxu0 }
 0x463   : > { %v9116_v62 = vadd.f32 %v4558_v6, %v8874_v53  ;;  %v4733_v24 = vand.u32 2147483648, %v9031_v35  ;;  %vm4709_vm4 = vcmp.eq.f32.partialorder %v8996_v32, inf  ;;  %6401 = vrsqrt.f32 %v9107_v4 }
 0x464   : > { %5020 = vmatmul.mubr.bf16.gmra.mxu1 %v4825_v38  ;;  %v4729_v0 = vmul.f32 %v6388_v3, %v9031_v35  ;;  %vm4711_vm5 = vcmp.eq.f32.partialorder %v8996_v32, 0.0  ;;  %v4722_v36 = vmul.f32 %v6386_v12, %v9019_v54  ;;  %v4560_v2 = vmul.f32 %v4492_v7, %v4492_v7  ;;  %v4494_v50 = vpop.f32.mrf.mxu0 }
 0x465   : > { %6403 = vrsqrt.f32 %v9116_v62  ;;  %v4720_v53 = vsel %vm4718_vm1, %v4719_v23, %v4717_v13  ;;  %v4710_v17 = vsel %vm4709_vm4, %v8996_v32, %v4708_v16  ;;  %v6390_v57 = vpop.eup %6389  ;;  %v9129_v59 = vadd.f32 %v4559_v49, %v8876_v25 }
 0x466   : > { %v4731_v40 = vsel %vm4730_vm2, %v9031_v35, %v4729_v0  ;;  %v4712_v30 = vand.u32 2147483648, %v8996_v32  ;;  %vm4723_vm6 = vcmp.eq.f32.partialorder %v9019_v54, inf  ;;  %v6392_v42 = vpop.eup %6391  ;;  %v9137_v18 = vadd.f32 %v4560_v2, %v8881_v26  ;;  %v4496_v29 = vpop.f32.mrf.mxu0 }
 0x467   : > { %v4561_v41 = vmul.f32 %v4494_v50, %v4494_v50  ;;  %v4734_v9 = vsel %vm4732_vm3, %v4733_v24, %v4731_v40  ;;  %v4724_v25 = vsel %vm4723_vm6, %v9019_v54, %v4722_v36  ;;  %vm4725_vm7 = vcmp.eq.f32.partialorder %v9019_v54, 0.0 }
 0x468   : > { %v4828_v11 = vpack.c.bf16 %v4734_v9, %v4720_v53  ;;  %v4726_v51 = vand.u32 2147483648, %v9019_v54  ;;  %v4743_v52 = vmul.f32 %v6390_v57, %v9059_v27  ;;  %v6394_v55 = vpop.eup %6393  ;;  %6405 = vrsqrt.f32 %v9137_v18 }
 0x469   : > { %v9147_v26 = vadd.f32 %v4561_v41, %v8885_v31  ;;  %v4562_v8 = vmul.f32 %v4496_v29, %v4496_v29  ;;  %vm4744_vm8 = vcmp.eq.f32.partialorder %v9059_v27, inf  ;;  %6407 = vrsqrt.f32 %v9129_v59 }
 0x46a   : > { %v6396_v35 = vpop.eup %6395  ;;  %5027 = vmatprep.mubr.bf16.mxu1 %v4828_v11  ;;  %v4713_v37 = vsel %vm4711_vm5, %v4712_v30, %v4710_v17  ;;  %v4727_v20 = vsel %vm4725_vm7, %v4726_v51, %v4724_v25  ;;  %v4745_v54 = vsel %vm4744_vm8, %v9059_v27, %v4743_v52  ;;  %v4747_v23 = vand.u32 2147483648, %v9059_v27 }
 0x46b   : > { %6409 = vrsqrt.f32 %v9147_v26  ;;  %v9156_v5 = vadd.f32 %v4562_v8, %v8887_v19  ;;  %v4827_v31 = vpack.c.bf16 %v4727_v20, %v4713_v37  ;;  %v4757_v60 = vmul.f32 %v6396_v35, %v9078_v56 }
 0x46c   : > { %vm4758_vm9 = vcmp.eq.f32.partialorder %v9078_v56, inf  ;;  %v4761_v12 = vand.u32 2147483648, %v9078_v56  ;;  %v4736_v32 = vmul.f32 %v6392_v42, %v9050_v22  ;;  %vm4746_vm10 = vcmp.eq.f32.partialorder %v9059_v27, 0.0 }
 0x46d   : > { %6411 = vrsqrt.f32 %v9156_v5  ;;  %5028 = vmatmul.mubr.bf16.gmra.mxu1 %v4827_v31  ;;  %v4759_v6 = vsel %vm4758_vm9, %v9078_v56, %v4757_v60  ;;  %vm4760_vm11 = vcmp.eq.f32.partialorder %v9078_v56, 0.0  ;;  %v6398_v19 = vpop.eup %6397  ;;  %v4748_v38 = vsel %vm4746_vm10, %v4747_v23, %v4745_v54 }
 0x46e   : > { %v4762_v3 = vsel %vm4760_vm11, %v4761_v12, %v4759_v6  ;;  %vm4737_vm12 = vcmp.eq.f32.partialorder %v9050_v22, inf  ;;  %v4750_v1 = vmul.f32 %v6394_v55, %v9068_v58  ;;  %v6400_v13 = vpop.eup %6399  ;;  %vm4751_vm13 = vcmp.eq.f32.partialorder %v9068_v58, inf }
 0x46f   : > { %v4830_v16 = vpack.c.bf16 %v4762_v3, %v4748_v38  ;;  %v4738_v49 = vsel %vm4737_vm12, %v9050_v22, %v4736_v32  ;;  %v4754_v24 = vand.u32 2147483648, %v9068_v58  ;;  %v4740_v27 = vand.u32 2147483648, %v9050_v22 }
 0x470   : > { %v4752_v7 = vsel %vm4751_vm13, %v9068_v58, %v4750_v1  ;;  %vm4753_vm14 = vcmp.eq.f32.partialorder %v9068_v58, 0.0  ;;  %v4771_v56 = vmul.f32 %v6398_v19, %v9097_v61  ;;  %v6402_v0 = vpop.eup %6401  ;;  %vm4739_vm15 = vcmp.eq.f32.partialorder %v9050_v22, 0.0 }
 0x471   : > { %5035 = vmatprep.mubr.bf16.mxu1 %v4830_v16  ;;  %v4755_v36 = vsel %vm4753_vm14, %v4754_v24, %v4752_v7  ;;  %vm4772_vm0 = vcmp.eq.f32.partialorder %v9097_v61, inf  ;;  %v4741_v53 = vsel %vm4739_vm15, %v4740_v27, %v4738_v49  ;;  %v4775_v50 = vand.u32 2147483648, %v9097_v61 }
 0x472   : > { %v6404_v2 = vpop.eup %6403  ;;  %v4773_v17 = vsel %vm4772_vm0, %v9097_v61, %v4771_v56  ;;  %v4829_v57 = vpack.c.bf16 %v4755_v36, %v4741_v53  ;;  %v4764_v58 = vmul.f32 %v6400_v13, %v9090_v44  ;;  %vm4774_vm1 = vcmp.eq.f32.partialorder %v9097_v61, 0.0 }
 0x473   : > { %v4785_v40 = vmul.f32 %v6404_v2, %v9116_v62  ;;  %vm4786_vm2 = vcmp.eq.f32.partialorder %v9116_v62, inf  ;;  %v4789_v22 = vand.u32 2147483648, %v9116_v62  ;;  %v4778_v30 = vmul.f32 %v6402_v0, %v9107_v4 }
 0x474   : > { %v4776_v42 = vsel %vm4774_vm1, %v4775_v50, %v4773_v17  ;;  %vm4788_vm3 = vcmp.eq.f32.partialorder %v9116_v62, 0.0  ;;  %vm4779_vm4 = vcmp.eq.f32.partialorder %v9107_v4, inf  ;;  %vm4765_vm5 = vcmp.eq.f32.partialorder %v9090_v44, inf }
 0x475   : > { %5036 = vmatmul.mubr.bf16.gmra.mxu1 %v4829_v57  ;;  %v4787_v41 = vsel %vm4786_vm2, %v9116_v62, %v4785_v40  ;;  %v6406_v9 = vpop.eup %6405  ;;  %v4780_v61 = vsel %vm4779_vm4, %v9107_v4, %v4778_v30  ;;  %v4782_v29 = vand.u32 2147483648, %v9107_v4  ;;  %v4766_v52 = vsel %vm4765_vm5, %v9090_v44, %v4764_v58 }
 0x476   : > { %v4790_v25 = vsel %vm4788_vm3, %v4789_v22, %v4787_v41  ;;  %v6408_v11 = vpop.eup %6407  ;;  %vm4781_vm6 = vcmp.eq.f32.partialorder %v9107_v4, 0.0  ;;  %v4799_v55 = vmul.f32 %v6406_v9, %v9137_v18  ;;  %v4768_v62 = vand.u32 2147483648, %v9090_v44 }
 0x477   : > { %v4832_v51 = vpack.c.bf16 %v4790_v25, %v4776_v42  ;;  %v4783_v35 = vsel %vm4781_vm6, %v4782_v29, %v4780_v61  ;;  %vm4767_vm7 = vcmp.eq.f32.partialorder %v9090_v44, 0.0  ;;  %vm4800_vm8 = vcmp.eq.f32.partialorder %v9137_v18, inf }
 0x478   : > { %v6410_v8 = vpop.eup %6409  ;;  %v4769_v20 = vsel %vm4767_vm7, %v4768_v62, %v4766_v52  ;;  %v4801_v60 = vsel %vm4800_vm8, %v9137_v18, %v4799_v55  ;;  %v4792_v23 = vmul.f32 %v6408_v11, %v9129_v59  ;;  %v4803_v12 = vand.u32 2147483648, %v9137_v18 }
 0x479   : > { %5043 = vmatprep.mubr.bf16.mxu1 %v4832_v51  ;;  %v4806_v54 = vmul.f32 %v6410_v8, %v9147_v26  ;;  %v4831_v31 = vpack.c.bf16 %v4783_v35, %v4769_v20  ;;  %vm4814_vm9 = vcmp.eq.f32.partialorder %v9156_v5, inf  ;;  %v4817_v32 = vand.u32 2147483648, %v9156_v5 }
 0x47a   : > { %v6412_v37 = vpop.eup %6411  ;;  %vm4807_vm10 = vcmp.eq.f32.partialorder %v9147_v26, inf  ;;  %vm4802_vm11 = vcmp.eq.f32.partialorder %v9137_v18, 0.0  ;;  %vm4816_vm12 = vcmp.eq.f32.partialorder %v9156_v5, 0.0  ;;  %vm4793_vm13 = vcmp.eq.f32.partialorder %v9129_v59, inf }
 0x47b   : > { %v4813_v4 = vmul.f32 %v6412_v37, %v9156_v5  ;;  %v4808_v6 = vsel %vm4807_vm10, %v9147_v26, %v4806_v54  ;;  %v4804_v19 = vsel %vm4802_vm11, %v4803_v12, %v4801_v60  ;;  %v4810_v3 = vand.u32 2147483648, %v9147_v26 }
 0x47c   : > { %v4794_v13 = vsel %vm4793_vm13, %v9129_v59, %v4792_v23  ;;  %vm4809_vm14 = vcmp.eq.f32.partialorder %v9147_v26, 0.0  ;;  %v4796_v16 = vand.u32 2147483648, %v9129_v59  ;;  %vm4795_vm15 = vcmp.eq.f32.partialorder %v9129_v59, 0.0 }
 0x47d   : > { %5044 = vmatmul.mubr.bf16.gmra.mxu1 %v4831_v31  ;;  %v4815_v44 = vsel %vm4814_vm9, %v9156_v5, %v4813_v4  ;;  %v4811_v18 = vsel %vm4809_vm14, %v4810_v3, %v4808_v6 }
 0x47e   : > { %v4818_v38 = vsel %vm4816_vm12, %v4817_v32, %v4815_v44  ;;  %v4797_v5 = vsel %vm4795_vm15, %v4796_v16, %v4794_v13 }
 0x47f   : > { %v4834_v1 = vpack.c.bf16 %v4818_v38, %v4804_v19  ;;  %v4833_v49 = vpack.c.bf16 %v4811_v18, %v4797_v5 }
 0x481   : > { %5051 = vmatprep.mubr.bf16.mxu1 %v4834_v1 }
 0x485   : > { %5052 = vmatmul.mubr.bf16.gmra.mxu1 %v4833_v49 }
 0x509   : > { %v5936_v24 = vpop.f32.mrf.mxu1 }
 0x50b   : > { %v5937_v27 = vpop.f32.mrf.mxu1 }
 0x50c   : > { %v5938_v7 = vadd.f32 %v5937_v27, %v5936_v24 }
 0x50d   : > { %v5939_v56 = vpop.f32.mrf.mxu1 }
 0x50e   : > { %v5060_v0 = vadd.f32 %v5938_v7, %v8687_v45 }
 0x50f   : > { %v5940_v36 = vpop.f32.mrf.mxu1 }
 0x510   : > { %v5076_v2 = vadd.f32 1.0, %v5060_v0  ;;  %v5941_v53 = vadd.f32 %v5940_v36, %v5939_v56  ;;  %v5079_v30 = vmul.f32 -0.5, %v5060_v0  ;;  %v5082_v51 = vand.u32 2147483647, %v5060_v0 }
 0x512   : > { %6413 = vlog2.f32 %v5076_v2  ;;  %v5061_v26 = vadd.f32 %v5941_v53, %v8692_v33  ;;  %v5080_v61 = vadd.f32 1.0, %v5079_v30  ;;  %vm5083_vm0 = vcmp.lt.f32.partialorder %v5082_v51, 0.0004427343 }
 0x514   : > { %v5942_v17 = vpop.f32.mrf.mxu1  ;;  %v5085_v50 = vadd.f32 1.0, %v5061_v26  ;;  %v5088_v29 = vmul.f32 -0.5, %v5061_v26  ;;  %v5081_v35 = vmul.f32 %v5080_v61, %v5060_v0  ;;  %v5091_v20 = vand.u32 2147483647, %v5061_v26 }
 0x516   : > { %v5943_v57 = vpop.f32.mrf.mxu1  ;;  %6415 = vlog2.f32 %v5085_v50  ;;  %v5089_v37 = vadd.f32 1.0, %v5088_v29  ;;  %vm5092_vm1 = vcmp.lt.f32.partialorder %v5091_v20, 0.0004427343 }
 0x517   : > { %v5944_v40 = vadd.f32 %v5943_v57, %v5942_v17 }
 0x518   : > { %v5945_v59 = vpop.f32.mrf.mxu1  ;;  %v5090_v19 = vmul.f32 %v5089_v37, %v5061_v26 }
 0x519   : > { %v5062_v58 = vadd.f32 %v5944_v40, %v8697_v34 }
 0x51a   : > { %v5946_v22 = vpop.f32.mrf.mxu1 }
 0x51b   : > { %v5947_v42 = vadd.f32 %v5946_v22, %v5945_v59  ;;  %v5094_v41 = vadd.f32 1.0, %v5062_v58  ;;  %v5097_v54 = vmul.f32 -0.5, %v5062_v58  ;;  %v5100_v18 = vand.u32 2147483647, %v5062_v58 }
 0x51c   : > { %v5948_v9 = vpop.f32.mrf.mxu1 }
 0x51d   : > { %v9220_v45 = vadd.f32 %v5947_v42, %v8702_v43  ;;  %6417 = vlog2.f32 %v5094_v41  ;;  %v5098_v3 = vadd.f32 1.0, %v5097_v54  ;;  %vm5101_vm2 = vcmp.lt.f32.partialorder %v5100_v18, 0.0004427343 }
 0x51e   : > { %v5949_v25 = vpop.f32.mrf.mxu1 }
 0x51f   : > { %v5103_v33 = vadd.f32 1.0, %v9220_v45  ;;  %v5950_v11 = vadd.f32 %v5949_v25, %v5948_v9  ;;  %v6414_v55 = vpop.eup %6413  ;;  %v5099_v2 = vmul.f32 %v5098_v3, %v5062_v58  ;;  %v5109_v53 = vand.u32 2147483647, %v9220_v45 }
 0x520   : > { %v5951_v52 = vpop.f32.mrf.mxu1  ;;  %v5078_v62 = vmul.f32 0.6931472, %v6414_v55 }
 0x521   : > { %6419 = vlog2.f32 %v5103_v33  ;;  %v9224_v34 = vadd.f32 %v5950_v11, %v8707_v10  ;;  %v5106_v10 = vmul.f32 -0.5, %v9220_v45  ;;  %vm5110_vm3 = vcmp.lt.f32.partialorder %v5109_v53, 0.0004427343 }
 0x522   : > { %v5952_v8 = vpop.f32.mrf.mxu1  ;;  %v5084_v4 = vsel %vm5083_vm0, %v5081_v35, %v5078_v62 }
 0x523   : > { %v5112_v43 = vadd.f32 1.0, %v9224_v34  ;;  %v5953_v31 = vadd.f32 %v5952_v8, %v5951_v52  ;;  %v6416_v23 = vpop.eup %6415  ;;  %v5220_v12 = vmul.f32 0.4342945, %v5084_v4  ;;  %v5107_v49 = vadd.f32 1.0, %v5106_v10 }
 0x524   : > { %v5954_v60 = vpop.f32.mrf.mxu1  ;;  %v5087_v6 = vmul.f32 0.6931472, %v6416_v23  ;;  %v5115_v7 = vmul.f32 -0.5, %v9224_v34  ;;  %v5118_v58 = vand.u32 2147483647, %v9224_v34 }
 0x525   : > { %6421 = vlog2.f32 %v5112_v43  ;;  %v9229_v32 = vadd.f32 %v5953_v31, %v8712_v63  ;;  %5236 = vst [vmem:[%s9233_s21] sm:$0xff] %v5220_v12  ;;  %v5108_v57 = vmul.f32 %v5107_v49, %v9220_v45 }
 0x526   : > { %v5955_v44 = vpop.f32.mrf.mxu1  ;;  %v5093_v16 = vsel %vm5092_vm1, %v5090_v19, %v5087_v6  ;;  %v5116_v22 = vadd.f32 1.0, %v5115_v7  ;;  %vm5119_vm4 = vcmp.lt.f32.partialorder %v5118_v58, 0.0004427343 }
 0x527   : > { %v5956_v38 = vadd.f32 %v5955_v44, %v5954_v60  ;;  %v5121_v1 = vadd.f32 1.0, %v9229_v32  ;;  %v5221_v5 = vmul.f32 0.4342945, %v5093_v16  ;;  %v5124_v42 = vmul.f32 -0.5, %v9229_v32 }
 0x528   : > { %v5957_v13 = vpop.f32.mrf.mxu1  ;;  %v5117_v11 = vmul.f32 %v5116_v22, %v9224_v34  ;;  %v5127_v62 = vand.u32 2147483647, %v9229_v32 }
 0x529   : > { %v9238_v63 = vadd.f32 %v5956_v38, %v8719_v14  ;;  %6423 = vlog2.f32 %v5121_v1  ;;  %5237 = vst [vmem:[%s9233_s21 + $0x8] sm:$0xff] %v5221_v5  ;;  %v5125_v52 = vadd.f32 1.0, %v5124_v42 }
 0x52a   : > { %v5958_v24 = vpop.f32.mrf.mxu1  ;;  %v6418_v27 = vpop.eup %6417  ;;  %vm5128_vm5 = vcmp.lt.f32.partialorder %v5127_v62, 0.0004427343 }
 0x52b   : > { %v5130_v56 = vadd.f32 1.0, %v9238_v63  ;;  %v5959_v0 = vadd.f32 %v5958_v24, %v5957_v13  ;;  %v5096_v36 = vmul.f32 0.6931472, %v6418_v27  ;;  %v5133_v45 = vmul.f32 -0.5, %v9238_v63 }
 0x52c   : > { %v5126_v60 = vmul.f32 %v5125_v52, %v9229_v32  ;;  %v5136_v4 = vand.u32 2147483647, %v9238_v63 }
 0x52d   : > { %6425 = vlog2.f32 %v5130_v56  ;;  %v9245_v14 = vadd.f32 %v5959_v0, %v8724_v21  ;;  %v5102_v26 = vsel %vm5101_vm2, %v5099_v2, %v5096_v36  ;;  %v5960_v50 = vpop.f32.mrf.mxu1  ;;  %v5134_v43 = vadd.f32 1.0, %v5133_v45 }
 0x52e   : > { %v6420_v17 = vpop.eup %6419  ;;  %v5222_v40 = vmul.f32 0.4342945, %v5102_v26  ;;  %vm5137_vm6 = vcmp.lt.f32.partialorder %v5136_v4, 0.0004427343 }
 0x52f   : > { %v5105_v59 = vmul.f32 0.6931472, %v6420_v17  ;;  %v5139_v30 = vadd.f32 1.0, %v9245_v14  ;;  %v5961_v41 = vpop.f32.mrf.mxu1  ;;  %v5142_v34 = vmul.f32 -0.5, %v9245_v14  ;;  %v5135_v19 = vmul.f32 %v5134_v43, %v9238_v63 }
 0x530   : > { %5238 = vst [vmem:[%s9233_s21 + $0x10] sm:$0xff] %v5222_v40  ;;  %v5962_v9 = vadd.f32 %v5961_v41, %v5960_v50 }
 0x531   : > { %v5111_v21 = vsel %vm5110_vm3, %v5108_v57, %v5105_v59  ;;  %6427 = vlog2.f32 %v5139_v30  ;;  %v5963_v29 = vpop.f32.mrf.mxu1  ;;  %v5143_v16 = vadd.f32 1.0, %v5142_v34 }
 0x532   : > { %v6422_v25 = vpop.eup %6421  ;;  %v5223_v61 = vmul.f32 0.4342945, %v5111_v21  ;;  %v9255_v51 = vadd.f32 %v5962_v9, %v8731_v47 }
 0x533   : > { %v5114_v33 = vmul.f32 0.6931472, %v6422_v25  ;;  %v5964_v55 = vpop.f32.mrf.mxu1 }
 0x534   : > { %5239 = vst [vmem:[%s9233_s21 + $0x18] sm:$0xff] %v5223_v61  ;;  %v5148_v35 = vadd.f32 1.0, %v9255_v51  ;;  %v5965_v20 = vadd.f32 %v5964_v55, %v5963_v29  ;;  %v5151_v49 = vmul.f32 -0.5, %v9255_v51  ;;  %v5154_v50 = vand.u32 2147483647, %v9255_v51 }
 0x535   : > { %v5120_v8 = vsel %vm5119_vm4, %v5117_v11, %v5114_v33  ;;  %v5966_v54 = vpop.f32.mrf.mxu1 }
 0x536   : > { %v5224_v37 = vmul.f32 0.4342945, %v5120_v8  ;;  %v6424_v31 = vpop.eup %6423  ;;  %6429 = vlog2.f32 %v5148_v35  ;;  %v9265_v23 = vadd.f32 %v5965_v20, %v8736_v15  ;;  %v5145_v15 = vand.u32 2147483647, %v9245_v14 }
 0x537   : > { %v5123_v47 = vmul.f32 0.6931472, %v6424_v31  ;;  %v5967_v12 = vpop.f32.mrf.mxu1  ;;  %v5152_v17 = vadd.f32 1.0, %v5151_v49  ;;  %vm5155_vm8 = vcmp.lt.f32.partialorder %v5154_v50, 0.0004427343 }
 0x538   : > { %5240 = vst [vmem:[%s9233_s21 + $0x20] sm:$0xff] %v5224_v37  ;;  %v5968_v10 = vadd.f32 %v5967_v12, %v5966_v54  ;;  %v5157_v38 = vadd.f32 1.0, %v9265_v23  ;;  %vm5146_vm7 = vcmp.lt.f32.partialorder %v5145_v15, 0.0004427343  ;;  %v5160_v40 = vmul.f32 -0.5, %v9265_v23  ;;  %v9466_v54 = vld [vmem:[#allocation15_spill] sm:$0xff] }
 0x539   : > { %v5129_v6 = vsel %vm5128_vm5, %v5126_v60, %v5123_v47  ;;  %v5969_v3 = vpop.f32.mrf.mxu1  ;;  %v5153_v41 = vmul.f32 %v5152_v17, %v9255_v51 }
 0x53a   : > { %v6426_v44 = vpop.eup %6425  ;;  %v5225_v1 = vmul.f32 0.4342945, %v5129_v6  ;;  %v9270_v32 = vadd.f32 %v5968_v10, %v8741_v39  ;;  %6431 = vlog2.f32 %v5157_v38  ;;  %v5144_v39 = vmul.f32 %v5143_v16, %v9245_v14 }
 0x53b   : > { %v5132_v13 = vmul.f32 0.6931472, %v6426_v44  ;;  %v5970_v18 = vpop.f32.mrf.mxu1  ;;  %v5161_v9 = vadd.f32 1.0, %v5160_v40 }
 0x53c   : > { %5241 = vst [vmem:[%s9233_s21 + $0x28] sm:$0xff] %v5225_v1  ;;  %v5166_v63 = vadd.f32 1.0, %v9270_v32  ;;  %v5971_v7 = vadd.f32 %v5970_v18, %v5969_v3  ;;  %v5172_v8 = vand.u32 2147483647, %v9270_v32  ;;  %v9467_v1 = vld [vmem:[#allocation16_spill] sm:$0xff] }
 0x53d   : > { %v5138_v5 = vsel %vm5137_vm6, %v5135_v19, %v5132_v13  ;;  %v5972_v56 = vpop.f32.mrf.mxu1  ;;  %v5162_v35 = vmul.f32 %v5161_v9, %v9265_v23 }
 0x53e   : > { %v6428_v24 = vpop.eup %6427  ;;  %v5226_v27 = vmul.f32 0.4342945, %v5138_v5  ;;  %6433 = vlog2.f32 %v5166_v63  ;;  %v9279_v36 = vadd.f32 %v5971_v7, %v8746_v46  ;;  %v5169_v46 = vmul.f32 -0.5, %v9270_v32 }
 0x53f   : > { %v5141_v0 = vmul.f32 0.6931472, %v6428_v24  ;;  %v5973_v2 = vpop.f32.mrf.mxu1  ;;  %vm5173_vm10 = vcmp.lt.f32.partialorder %v5172_v8, 0.0004427343 }
 0x540   : > { %5242 = vst [vmem:[%s9233_s21 + $0x30] sm:$0xff] %v5226_v27  ;;  %v5974_v26 = vadd.f32 %v5973_v2, %v5972_v56  ;;  %v5175_v59 = vadd.f32 1.0, %v9279_v36  ;;  %v5170_v33 = vadd.f32 1.0, %v5169_v46  ;;  %v5178_v37 = vmul.f32 -0.5, %v9279_v36 }
 0x541   : > { %v5147_v53 = vsel %vm5146_vm7, %v5144_v39, %v5141_v0  ;;  %v5975_v22 = vpop.f32.mrf.mxu1  ;;  %v5181_v38 = vand.u32 2147483647, %v9279_v36 }
 0x542   : > { %v5227_v57 = vmul.f32 0.4342945, %v5147_v53  ;;  %v9285_v14 = vadd.f32 %v5974_v26, %v8751_v48  ;;  %6435 = vlog2.f32 %v5175_v59  ;;  %v5163_v48 = vand.u32 2147483647, %v9265_v23 }
 0x543   : > { %v6430_v30 = vpop.eup %6429  ;;  %v5976_v58 = vpop.f32.mrf.mxu1  ;;  %v5179_v44 = vadd.f32 1.0, %v5178_v37  ;;  %vm5182_vm11 = vcmp.lt.f32.partialorder %v5181_v38, 0.0004427343 }
 0x544   : > { %5243 = vst [vmem:[%s9233_s21 + $0x38] sm:$0xff] %v5227_v57  ;;  %v5150_v42 = vmul.f32 0.6931472, %v6430_v30  ;;  %v5184_v21 = vadd.f32 1.0, %v9285_v14  ;;  %v5977_v25 = vadd.f32 %v5976_v58, %v5975_v22  ;;  %vm5164_vm9 = vcmp.lt.f32.partialorder %v5163_v48, 0.0004427343 }
 0x545   : > { %v5978_v61 = vpop.f32.mrf.mxu1  ;;  %v5187_v10 = vmul.f32 -0.5, %v9285_v14  ;;  %v5190_v15 = vand.u32 2147483647, %v9285_v14  ;;  %v5180_v5 = vmul.f32 %v5179_v44, %v9279_v36 }
 0x546   : > { %v5156_v45 = vsel %vm5155_vm8, %v5153_v41, %v5150_v42  ;;  %6437 = vlog2.f32 %v5184_v21  ;;  %v5073_v11 = vadd.f32 %v5977_v25, %v8756_v28  ;;  %v5171_v28 = vmul.f32 %v5170_v33, %v9270_v32 }
 0x547   : > { %v5228_v29 = vmul.f32 0.4342945, %v5156_v45  ;;  %v5979_v52 = vpop.f32.mrf.mxu1  ;;  %v6432_v55 = vpop.eup %6431  ;;  %v5188_v32 = vadd.f32 1.0, %v5187_v10  ;;  %vm5191_vm12 = vcmp.lt.f32.partialorder %v5190_v15, 0.0004427343 }
 0x548   : > { %v5980_v51 = vadd.f32 %v5979_v52, %v5978_v61  ;;  %v5159_v62 = vmul.f32 0.6931472, %v6432_v55  ;;  %v5193_v43 = vadd.f32 1.0, %v5073_v11  ;;  %v5196_v49 = vmul.f32 -0.5, %v5073_v11 }
 0x549   : > { %5244 = vst [vmem:[%s9233_s21 + $0x40] sm:$0xff] %v5228_v29  ;;  %v5981_v20 = vpop.f32.mrf.mxu1  ;;  %v5189_v0 = vmul.f32 %v5188_v32, %v9285_v14  ;;  %v5199_v17 = vand.u32 2147483647, %v5073_v11 }
 0x54a   : > { %v5074_v31 = vadd.f32 %v5980_v51, %v9466_v54  ;;  %v5165_v47 = vsel %vm5164_vm9, %v5162_v35, %v5159_v62  ;;  %6439 = vlog2.f32 %v5193_v43  ;;  %v5197_v2 = vadd.f32 1.0, %v5196_v49 }
 0x54b   : > { %v6434_v34 = vpop.eup %6433  ;;  %v5982_v60 = vpop.f32.mrf.mxu1  ;;  %v5229_v4 = vmul.f32 0.4342945, %v5165_v47  ;;  %vm5200_vm13 = vcmp.lt.f32.partialorder %v5199_v17, 0.0004427343 }
 0x54c   : > { %v5168_v12 = vmul.f32 0.6931472, %v6434_v34  ;;  %v5202_v23 = vadd.f32 1.0, %v5074_v31  ;;  %v5983_v6 = vadd.f32 %v5982_v60, %v5981_v20  ;;  %v5205_v39 = vmul.f32 -0.5, %v5074_v31 }
 0x54d   : > { %5245 = vst [vmem:[%s9233_s21 + $0x48] sm:$0xff] %v5229_v4  ;;  %v5198_v40 = vmul.f32 %v5197_v2, %v5073_v11  ;;  %v5208_v59 = vand.u32 2147483647, %v5074_v31 }
 0x54e   : > { %v5174_v19 = vsel %vm5173_vm10, %v5171_v28, %v5168_v12  ;;  %6441 = vlog2.f32 %v5202_v23  ;;  %v5075_v13 = vadd.f32 %v5983_v6, %v9467_v1  ;;  %v5206_v57 = vadd.f32 1.0, %v5205_v39 }
 0x54f   : > { %v5230_v3 = vmul.f32 0.4342945, %v5174_v19  ;;  %v6436_v16 = vpop.eup %6435  ;;  %vm5209_vm14 = vcmp.lt.f32.partialorder %v5208_v59, 0.0004427343 }
 0x550   : > { %v5177_v18 = vmul.f32 0.6931472, %v6436_v16  ;;  %v5211_v63 = vadd.f32 1.0, %v5075_v13  ;;  %v5214_v22 = vmul.f32 -0.5, %v5075_v13  ;;  %v5207_v42 = vmul.f32 %v5206_v57, %v5074_v31 }
 0x551   : > { %5246 = vst [vmem:[%s9233_s21 + $0x50] sm:$0xff] %v5230_v3  ;;  %v5217_v9 = vand.u32 2147483647, %v5075_v13 }
 0x552   : > { %v5183_v27 = vsel %vm5182_vm11, %v5180_v5, %v5177_v18  ;;  %6443 = vlog2.f32 %v5211_v63  ;;  %v5215_v41 = vadd.f32 1.0, %v5214_v22 }
 0x553   : > { %v6438_v24 = vpop.eup %6437  ;;  %v5231_v7 = vmul.f32 0.4342945, %v5183_v27  ;;  %vm5218_vm15 = vcmp.lt.f32.partialorder %v5217_v9, 0.0004427343 }
 0x554   : > { %v5186_v56 = vmul.f32 0.6931472, %v6438_v24  ;;  %v5216_v48 = vmul.f32 %v5215_v41, %v5075_v13 }
 0x555   : > { %5247 = vst [vmem:[%s9233_s21 + $0x58] sm:$0xff] %v5231_v7 }
 0x556   : > { %v5192_v53 = vsel %vm5191_vm12, %v5189_v0, %v5186_v56 }
 0x557   : > { %v5232_v26 = vmul.f32 0.4342945, %v5192_v53  ;;  %v6440_v36 = vpop.eup %6439 }
 0x558   : > { %v5195_v50 = vmul.f32 0.6931472, %v6440_v36 }
 0x559   : > { %5248 = vst [vmem:[%s9233_s21 + $0x60] sm:$0xff] %v5232_v26 }
 0x55a   : > { %v5201_v30 = vsel %vm5200_vm13, %v5198_v40, %v5195_v50 }
 0x55b   : > { %v6442_v14 = vpop.eup %6441  ;;  %v5233_v46 = vmul.f32 0.4342945, %v5201_v30 }
 0x55c   : > { %v5204_v58 = vmul.f32 0.6931472, %v6442_v14 }
 0x55d   : > { %5249 = vst [vmem:[%s9233_s21 + $0x68] sm:$0xff] %v5233_v46 }
 0x55e   : > { %v5210_v21 = vsel %vm5209_vm14, %v5207_v42, %v5204_v58 }
 0x55f   : > { %v5234_v25 = vmul.f32 0.4342945, %v5210_v21  ;;  %v6444_v61 = vpop.eup %6443 }
 0x560   : > { %v5213_v45 = vmul.f32 0.6931472, %v6444_v61 }
 0x561   : > { %5250 = vst [vmem:[%s9233_s21 + $0x70] sm:$0xff] %v5234_v25 }
 0x562   : > { %v5219_v29 = vsel %vm5218_vm15, %v5216_v48, %v5213_v45 }
 0x563   : > { %v5235_v33 = vmul.f32 0.4342945, %v5219_v29 }
 0x565   : > { %5251 = vst [vmem:[%s9233_s21 + $0x78] sm:$0xff] %v5235_v33 }
 0x566   : > { %6598 = shalt.err (!%p6595_p9)
}
 0x567   : > { %s6599_s9 = scalar_lea.hbm %s9316_s14, 2048  ;;  %s6603_s25 = scalar_lea.hbm %s9366_s4, 4096 }
 0x568   : > { %p6600_p1 = scmp.ne.s32.totalorder %s9316_s14, %s6599_s9  ;;  %p6604_p11 = scmp.lt.s32.totalorder %s9316_s14, %s9366_s4 }
 0x569   : > { %p6605_p13 = scmp.lt.s32.totalorder %s6603_s25, %s6599_s9 }
 0x56a   : > { %p6601_p8 = pnand %p6600_p1, %p9468_p6 }
 0x56b   : > { %p6606_p2 = por %p6605_p13, %p6604_p11 }
 0x56c   : > { %p6602_p10 = pneg %p6601_p8 }
 0x56e   : > { %p6607_p4 = pnand %p6606_p2, %p6602_p10 }
 0x570   : > { %6610 = shalt.err (!%p6607_p4)
}
 0x571   : > { %s6670_s21 = smov 128   ;;  %s6671_s23 = smov 8  }
 0x572   : > { %5998 = dma.vmem_to_hbm [thread:$0]  (%p9468_p6), %s9318_s10, 2048, %s9316_s14, %s5253_s7, %s6670_s21, %s6670_s21, %s6671_s23  }
 0x573 PF: > { %s5281_s12 = sand.u32 1, %s6645_s15   ;;  %p9469_p12 = scmp.ne.s32.totalorder %s9372_s22, 0 }
 0x574   : > { %p9470_p0 = scmp.ge.s32.totalorder %s6657_s18, 2  ;;  %s5282_s13 = scalar_lea.sflag [#allocation4], %s5281_s12 }
 0x576   : > { %p6015_p5 = pnand %p9470_p0, %p9469_p12 }
 0x578   : > { %p6016_p3 = pneg %p6015_p5 }
 0x57a   : > { %6640 = dma.done.wait (%p6016_p3), %s5282_s13, 2048  }
 0x57b   : > { %6642 = vsyncadd (%p6016_p3), %s5282_s13, 4294965248  ;;  %p19_p7 = scmp.ge.s32.totalorder %s6777_s27, 4   ;;  %s9471_s15 = smov %s6649_s16 }
 0x57c   : > { %s9472_s16 = smov %s6653_s17  ;;  %s9473_s17 = smov %s6787_s5 }
 0x57d   : > { %s9474_s18 = smov %s6777_s27  ;;  %21 = sbr.rel (!%p19_p7) target bundleno = 7 (0x7), region = 93 }
 0x582   :  { %5287 = vsyncpa [#allocation3], 1 }
 0x583   :  { %5289 = vsyncpa [#allocation3 + $0x1], 1 }
 0x584   :  { %5290 = vsyncpa [#allocation6], 1 }
 0x585   :  { %5291 = vsyncpa [#allocation9], 1 }
 0x586   :  { %5292 = vsyncpa [#allocation4], 1 }
 0x587   :  { %5294 = vsyncpa [#allocation4 + $0x1], 1 }

</bundles_post_ra>
